<compile_context>
chip_gen: v7x
topology: tpu7x:2x2x1
jax: 0.10.0
libtpu: 0.0.40
codegen_flags: <defaults>
</compile_context>

<pallas_src>
import numpy as np

import jax
import jax.numpy as jnp
from jax.experimental import pallas as pl
from jax.experimental.pallas import tpu as pltpu


COMPUTE_DTYPE = jnp.bfloat16   # MXU inputs / inter-layer activations
LANE = 128                     # TPU lane width (pad narrow output channels)
BN_EPS = 1e-5
LRELU_SLOPE = 0.2

# (cout, kernel, stride, pad, has_bn, activation)
_LAYER_DEFS = [
    (64, 4, 2, 1, False, "leaky"),
    (128, 4, 2, 1, True, "leaky"),
    (256, 4, 2, 1, True, "leaky"),
    (512, 4, 2, 1, True, "leaky"),
    (1, 3, 1, 1, False, "sigmoid"),
]


def _out_hw(h, w, k, s, p):
    return (h + 2 * p - k) // s + 1, (w + 2 * p - k) // s + 1


# ------------------------------ fused kernel --------------------------------

def _make_kernel(meta):
    """Build the fused whole-network kernel.

    Ref order: p0, w0, b0, then per hidden/output layer:
      G (n_off, m_out, m_prev) bf16 0/1 gather matrices,
      W (n_off, c_prev, cout[_padded]) bf16,
      b (1, cout[_padded]) f32,
      [gamma (1, cout) f32, beta (1, cout) f32]   (BN layers only)
    and finally the (m_out_last, cout_pad) f32 output ref.
    """

    def kernel(*refs):
        out_ref = refs[-1]
        it = iter(refs[:-1])

        # ---- layer 0: patches(M0, K0) @ W0(K0, 64) + bias, LeakyReLU(0.2) ----
        p0_ref = next(it)
        w0_ref = next(it)
        b0_ref = next(it)
        acc = jnp.dot(p0_ref[...], w0_ref[...],
                      preferred_element_type=jnp.float32)
        acc = acc + b0_ref[...]
        acc = jnp.where(acc >= 0.0, acc, LRELU_SLOPE * acc)
        a = acc.astype(COMPUTE_DTYPE)

        # ---- hidden / output layers ----
        n_tail = len(meta)
        for li, lm in enumerate(meta):
            g_ref = next(it)
            w_ref = next(it)
            b_ref = next(it)
            if lm["has_bn"]:
                gamma_ref = next(it)
                beta_ref = next(it)

            acc = None
            for o in range(lm["n_off"]):
                if lm["ident"][o]:
                    rows = a                                  # offset is identity
                else:
                    # MXU row-gather: 0/1 selection matrix picks the input rows
                    # belonging to this kernel offset (zeros = conv padding).
                    rows = jnp.dot(g_ref[o], a,
                                   preferred_element_type=jnp.float32
                                   ).astype(COMPUTE_DTYPE)
                term = jnp.dot(rows, w_ref[o],
                               preferred_element_type=jnp.float32)
                acc = term if acc is None else acc + term
            acc = acc + b_ref[...]

            if lm["has_bn"]:
                # Training-mode BatchNorm over (N, H, W) with centered variance.
                inv_n = 1.0 / float(lm["m_out"])
                mean = jnp.sum(acc, axis=0, keepdims=True) * inv_n
                cent = acc - mean
                var = jnp.sum(cent * cent, axis=0, keepdims=True) * inv_n
                scale = gamma_ref[...] * jax.lax.rsqrt(var + BN_EPS)
                acc = cent * scale + beta_ref[...]

            if lm["act"] == "leaky":
                acc = jnp.where(acc >= 0.0, acc, LRELU_SLOPE * acc)
            else:  # sigmoid (EUP exp)
                acc = 1.0 / (1.0 + jnp.exp(-acc))

            if li + 1 < n_tail:
                a = acc.astype(COMPUTE_DTYPE)

        out_ref[...] = acc

    return kernel


# ------------------------------ preparation ----------------------------------

def _build_patch_indices(batch, h, w, cin, k, s, p):
    """Indices into the flattened, spatially padded NHWC input producing the
    layer-0 im2col patches (column order (kh, kw, cin))."""
    hp, wp = h + 2 * p, w + 2 * p
    oh, ow = _out_hw(h, w, k, s, p)
    idx = np.zeros((batch * oh * ow, k * k * cin), np.int32)
    for n in range(batch):
        for a in range(oh):
            for b in range(ow):
                m = (n * oh + a) * ow + b
                for i in range(k):
                    for j in range(k):
                        hh = s * a + i      # coords in padded array
                        ww = s * b + j
                        base = ((n * hp + hh) * wp + ww) * cin
                        for ci in range(cin):
                            idx[m, (i * k + j) * cin + ci] = base + ci
    return idx


def _build_offset_selectors(batch, h, w, oh, ow, k, s, p):
    """Per kernel offset (i,j): 0/1 matrix S (m_out, m_prev) selecting the input
    row feeding each output row (zero row where the offset hits conv padding).
    Offsets that never touch a valid input are dropped."""
    m_prev = batch * h * w
    m_out = batch * oh * ow
    sels, offsets, ident = [], [], []
    for i in range(k):
        for j in range(k):
            S = np.zeros((m_out, m_prev), np.float32)
            valid = False
            for n in range(batch):
                for a in range(oh):
                    hh = s * a + i - p
                    if not (0 <= hh < h):
                        continue
                    for b in range(ow):
                        ww = s * b + j - p
                        if not (0 <= ww < w):
                            continue
                        S[(n * oh + a) * ow + b, (n * h + hh) * w + ww] = 1.0
                        valid = True
            if valid:
                sels.append(S)
                offsets.append((i, j))
                ident.append(m_out == m_prev
                             and bool(np.array_equal(S, np.eye(m_out, dtype=np.float32))))
    G = np.stack(sels, axis=0)          # (n_off, m_out, m_prev)
    return offsets, G, tuple(ident)


def prepare_network(params, bn_params, batch, height, width):
    """Precompute (once) all DMA-ready kernel operands + static metadata."""
    arrays = []
    meta = []

    in_ch = params[0][0].shape[1]

    # Layer 0: weight as (k*k*cin, cout) matching the outside patch gather.
    cout0, k0, s0, p0, _, _ = _LAYER_DEFS[0]
    w0, b0 = params[0]
    w0_2d = jnp.transpose(w0, (2, 3, 1, 0)).reshape(k0 * k0 * in_ch, cout0)
    arrays.append(w0_2d.astype(COMPUTE_DTYPE))
    arrays.append(jnp.reshape(b0, (1, -1)).astype(jnp.float32))
    idx0 = _build_patch_indices(batch, height, width, in_ch, k0, s0, p0)

    h, w = _out_hw(height, width, k0, s0, p0)
    bn_i = 0
    for li in range(1, len(_LAYER_DEFS)):
        cout, k, s, p, has_bn, act = _LAYER_DEFS[li]
        wt, bt = params[li]
        oh, ow = _out_hw(h, w, k, s, p)

        offs, G, ident = _build_offset_selectors(batch, h, w, oh, ow, k, s, p)
        n_off = len(offs)

        wt_np = np.asarray(wt, np.float32)              # (cout, c_prev, k, k)
        w_stack = np.stack([wt_np[:, :, i, j].T for (i, j) in offs], axis=0)
        bias = np.asarray(bt, np.float32).reshape(1, cout)

        cout_store = cout
        if cout < LANE:                                  # lane-pad narrow output
            padn = LANE - cout
            w_stack = np.pad(w_stack, ((0, 0), (0, 0), (0, padn)))
            bias = np.pad(bias, ((0, 0), (0, padn)))
            cout_store = LANE

        arrays.append(jnp.asarray(G, COMPUTE_DTYPE))
        arrays.append(jnp.asarray(w_stack, COMPUTE_DTYPE))
        arrays.append(jnp.asarray(bias, jnp.float32))
        if has_bn:
            gamma, beta = bn_params[bn_i]
            bn_i += 1
            arrays.append(jnp.reshape(gamma, (1, -1)).astype(jnp.float32))
            arrays.append(jnp.reshape(beta, (1, -1)).astype(jnp.float32))

        meta.append(dict(n_off=n_off, m_out=batch * oh * ow, cout=cout,
                         cout_store=cout_store, has_bn=has_bn, act=act,
                         ident=ident))
        h, w = oh, ow

    info = dict(batch=batch, p0=p0, oh_last=h, ow_last=w,
                cout_last=_LAYER_DEFS[-1][0],
                m_out_last=batch * h * w,
                cout_pad=meta[-1]["cout_store"])
    return tuple(arrays), idx0, tuple(meta), info


def build_forward(idx0, meta, info):
    idx0 = jnp.asarray(idx0, jnp.int32)

    def forward(x_nchw, arrays):
        p = info["p0"]
        # Layer-0 patch gather on the tiny network input (NCHW -> padded NHWC
        # -> one XLA gather); everything downstream lives in the fused kernel.
        xh = jnp.transpose(x_nchw, (0, 2, 3, 1))
        xp = jnp.pad(xh, ((0, 0), (p, p), (p, p), (0, 0)))
        patches0 = jnp.take(xp.reshape(-1), idx0, axis=0).astype(COMPUTE_DTYPE)

        n_ops = 1 + len(arrays)
        y = pl.pallas_call(
            _make_kernel(meta),
            out_shape=jax.ShapeDtypeStruct(
                (info["m_out_last"], info["cout_pad"]), jnp.float32),
            in_specs=[pl.BlockSpec(memory_space=pltpu.MemorySpace.VMEM)] * n_ops,
            out_specs=pl.BlockSpec(memory_space=pltpu.MemorySpace.VMEM),
        )(patches0, *arrays)

        y = y[:, :info["cout_last"]]
        y = y.reshape(info["batch"], info["oh_last"], info["ow_last"],
                      info["cout_last"])
        return jnp.transpose(y, (0, 3, 1, 2)).astype(jnp.float32)

    return forward


# ------------------------------ parameter init -------------------------------

def spectral_normalize(w, u):
    """One power iteration on w reshaped to (Cout, -1), divide by sigma."""
    eps = 1e-12
    cout = w.shape[0]
    wm = w.reshape(cout, -1)
    v = wm.T @ u
    v = v / (jnp.linalg.norm(v) + eps)
    u_new = wm @ v
    u_new = u_new / (jnp.linalg.norm(u_new) + eps)
    sigma = u_new @ (wm @ v)
    return w / sigma


def init_params(key, in_channels=1):
    params = []
    cin = in_channels
    for (cout, k, _s, _p, _bn, _act) in _LAYER_DEFS:
        key, kw_, kb_, ku_ = jax.random.split(key, 4)
        fan_in = cin * k * k
        bound = 1.0 / float(np.sqrt(fan_in))
        w = jax.random.uniform(kw_, (cout, cin, k, k), jnp.float32, -bound, bound)
        b = jax.random.uniform(kb_, (cout,), jnp.float32, -bound, bound)
        u = jax.random.normal(ku_, (cout,), jnp.float32)
        w = spectral_normalize(w, u)
        params.append((w, b))
        cin = cout
    bn_params = [(jnp.ones((c,), jnp.float32), jnp.zeros((c,), jnp.float32))
                 for (c, _k, _s, _p, bn, _a) in _LAYER_DEFS if bn]
    return params, bn_params


# ---------------------------------- main --------------------------------------

if __name__ == "__main__":
    key = jax.random.PRNGKey(0)
    kx, kp = jax.random.split(key)

    batch, in_channels, size = 2, 1, 16
    x = jax.random.normal(kx, (batch, in_channels, size, size), jnp.float32)

    params, bn_params = init_params(kp, in_channels=in_channels)
    arrays, idx0, meta, info = prepare_network(params, bn_params,
                                               batch, size, size)

    fwd = jax.jit(build_forward(idx0, meta, info))
    out = fwd(x, arrays)
    jax.block_until_ready(out)

    assert out.shape == (batch, 1, 1, 1), out.shape
    assert bool(jnp.all(jnp.isfinite(out)))
    assert bool(jnp.all((out >= 0.0) & (out <= 1.0)))
    print("KERNEL_OK")
</pallas_src>

<mosaic_0001>
module attributes {stable_mosaic.version = 11 : i64} {
  func.func @kernel(%arg0: memref<128x16xbf16, #tpu.memory_space<vmem>>, %arg1: memref<16x64xbf16, #tpu.memory_space<vmem>>, %arg2: memref<1x64xf32, #tpu.memory_space<vmem>>, %arg3: memref<16x32x128xbf16, #tpu.memory_space<vmem>>, %arg4: memref<16x64x128xbf16, #tpu.memory_space<vmem>>, %arg5: memref<1x128xf32, #tpu.memory_space<vmem>>, %arg6: memref<1x128xf32, #tpu.memory_space<vmem>>, %arg7: memref<1x128xf32, #tpu.memory_space<vmem>>, %arg8: memref<16x8x32xbf16, #tpu.memory_space<vmem>>, %arg9: memref<16x128x256xbf16, #tpu.memory_space<vmem>>, %arg10: memref<1x256xf32, #tpu.memory_space<vmem>>, %arg11: memref<1x256xf32, #tpu.memory_space<vmem>>, %arg12: memref<1x256xf32, #tpu.memory_space<vmem>>, %arg13: memref<4x2x8xbf16, #tpu.memory_space<vmem>>, %arg14: memref<4x256x512xbf16, #tpu.memory_space<vmem>>, %arg15: memref<1x512xf32, #tpu.memory_space<vmem>>, %arg16: memref<1x512xf32, #tpu.memory_space<vmem>>, %arg17: memref<1x512xf32, #tpu.memory_space<vmem>>, %arg18: memref<1x2x2xbf16, #tpu.memory_space<vmem>>, %arg19: memref<1x512x128xbf16, #tpu.memory_space<vmem>>, %arg20: memref<1x128xf32, #tpu.memory_space<vmem>>, %arg21: memref<2x128xf32, #tpu.memory_space<vmem>>) attributes {dimension_semantics = [], scalar_prefetch = 0 : i64, scratch_operands = 0 : i64, tpu.core_type = #tpu.core_type<tc>} {
    %c0 = arith.constant 0 : index
    %c0_0 = arith.constant 0 : index
    %0 = vector.load %arg0[%c0, %c0_0] : memref<128x16xbf16, #tpu.memory_space<vmem>>, vector<128x16xbf16>
    %c0_1 = arith.constant 0 : index
    %c0_2 = arith.constant 0 : index
    %1 = vector.load %arg1[%c0_1, %c0_2] : memref<16x64xbf16, #tpu.memory_space<vmem>>, vector<16x64xbf16>
    %cst = arith.constant dense<0.000000e+00> : vector<128x64xf32>
    %2 = tpu.matmul %0, %1, %cst {dimension_numbers = #tpu.dot_dimension_numbers<[1], [0], [0], [1], [0, 0, 1, 1], [], []>} : vector<128x16xbf16>, vector<16x64xbf16>, vector<128x64xf32> -> vector<128x64xf32>
    %c0_3 = arith.constant 0 : index
    %c0_4 = arith.constant 0 : index
    %3 = vector.load %arg2[%c0_3, %c0_4] : memref<1x64xf32, #tpu.memory_space<vmem>>, vector<1x64xf32>
    %4 = vector.broadcast %3 : vector<1x64xf32> to vector<128x64xf32>
    %5 = arith.addf %2, %4 : vector<128x64xf32>
    %cst_5 = arith.constant 0.000000e+00 : f32
    %6 = vector.broadcast %cst_5 : f32 to vector<128x64xf32>
    %7 = arith.cmpf oge, %5, %6 : vector<128x64xf32>
    %cst_6 = arith.constant 2.000000e-01 : f32
    %8 = vector.broadcast %cst_6 : f32 to vector<128x64xf32>
    %9 = arith.mulf %8, %5 : vector<128x64xf32>
    %10 = arith.select %7, %5, %9 : vector<128x64xi1>, vector<128x64xf32>
    %11 = arith.truncf %10 : vector<128x64xf32> to vector<128x64xbf16>
    %c0_7 = arith.constant 0 : index
    %c0_8 = arith.constant 0 : index
    %c0_9 = arith.constant 0 : index
    %12 = vector.load %arg3[%c0_7, %c0_8, %c0_9] : memref<16x32x128xbf16, #tpu.memory_space<vmem>>, vector<1x32x128xbf16>
    %13 = vector.shape_cast %12 : vector<1x32x128xbf16> to vector<32x128xbf16>
    %cst_10 = arith.constant dense<0.000000e+00> : vector<32x64xf32>
    %14 = tpu.matmul %13, %11, %cst_10 {dimension_numbers = #tpu.dot_dimension_numbers<[1], [0], [0], [1], [0, 0, 1, 1], [], []>} : vector<32x128xbf16>, vector<128x64xbf16>, vector<32x64xf32> -> vector<32x64xf32>
    %15 = arith.truncf %14 : vector<32x64xf32> to vector<32x64xbf16>
    %c0_11 = arith.constant 0 : index
    %c0_12 = arith.constant 0 : index
    %c0_13 = arith.constant 0 : index
    %16 = vector.load %arg4[%c0_11, %c0_12, %c0_13] : memref<16x64x128xbf16, #tpu.memory_space<vmem>>, vector<1x64x128xbf16>
    %17 = vector.shape_cast %16 : vector<1x64x128xbf16> to vector<64x128xbf16>
    %cst_14 = arith.constant dense<0.000000e+00> : vector<32x128xf32>
    %18 = tpu.matmul %15, %17, %cst_14 {dimension_numbers = #tpu.dot_dimension_numbers<[1], [0], [0], [1], [0, 0, 1, 1], [], []>} : vector<32x64xbf16>, vector<64x128xbf16>, vector<32x128xf32> -> vector<32x128xf32>
    %c1 = arith.constant 1 : index
    %c0_15 = arith.constant 0 : index
    %c0_16 = arith.constant 0 : index
    %19 = vector.load %arg3[%c1, %c0_15, %c0_16] : memref<16x32x128xbf16, #tpu.memory_space<vmem>>, vector<1x32x128xbf16>
    %20 = vector.shape_cast %19 : vector<1x32x128xbf16> to vector<32x128xbf16>
    %cst_17 = arith.constant dense<0.000000e+00> : vector<32x64xf32>
    %21 = tpu.matmul %20, %11, %cst_17 {dimension_numbers = #tpu.dot_dimension_numbers<[1], [0], [0], [1], [0, 0, 1, 1], [], []>} : vector<32x128xbf16>, vector<128x64xbf16>, vector<32x64xf32> -> vector<32x64xf32>
    %22 = arith.truncf %21 : vector<32x64xf32> to vector<32x64xbf16>
    %c1_18 = arith.constant 1 : index
    %c0_19 = arith.constant 0 : index
    %c0_20 = arith.constant 0 : index
    %23 = vector.load %arg4[%c1_18, %c0_19, %c0_20] : memref<16x64x128xbf16, #tpu.memory_space<vmem>>, vector<1x64x128xbf16>
    %24 = vector.shape_cast %23 : vector<1x64x128xbf16> to vector<64x128xbf16>
    %cst_21 = arith.constant dense<0.000000e+00> : vector<32x128xf32>
    %25 = tpu.matmul %22, %24, %cst_21 {dimension_numbers = #tpu.dot_dimension_numbers<[1], [0], [0], [1], [0, 0, 1, 1], [], []>} : vector<32x64xbf16>, vector<64x128xbf16>, vector<32x128xf32> -> vector<32x128xf32>
    %26 = arith.addf %18, %25 : vector<32x128xf32>
    %c2 = arith.constant 2 : index
    %c0_22 = arith.constant 0 : index
    %c0_23 = arith.constant 0 : index
    %27 = vector.load %arg3[%c2, %c0_22, %c0_23] : memref<16x32x128xbf16, #tpu.memory_space<vmem>>, vector<1x32x128xbf16>
    %28 = vector.shape_cast %27 : vector<1x32x128xbf16> to vector<32x128xbf16>
    %cst_24 = arith.constant dense<0.000000e+00> : vector<32x64xf32>
    %29 = tpu.matmul %28, %11, %cst_24 {dimension_numbers = #tpu.dot_dimension_numbers<[1], [0], [0], [1], [0, 0, 1, 1], [], []>} : vector<32x128xbf16>, vector<128x64xbf16>, vector<32x64xf32> -> vector<32x64xf32>
    %30 = arith.truncf %29 : vector<32x64xf32> to vector<32x64xbf16>
    %c2_25 = arith.constant 2 : index
    %c0_26 = arith.constant 0 : index
    %c0_27 = arith.constant 0 : index
    %31 = vector.load %arg4[%c2_25, %c0_26, %c0_27] : memref<16x64x128xbf16, #tpu.memory_space<vmem>>, vector<1x64x128xbf16>
    %32 = vector.shape_cast %31 : vector<1x64x128xbf16> to vector<64x128xbf16>
    %cst_28 = arith.constant dense<0.000000e+00> : vector<32x128xf32>
    %33 = tpu.matmul %30, %32, %cst_28 {dimension_numbers = #tpu.dot_dimension_numbers<[1], [0], [0], [1], [0, 0, 1, 1], [], []>} : vector<32x64xbf16>, vector<64x128xbf16>, vector<32x128xf32> -> vector<32x128xf32>
    %34 = arith.addf %26, %33 : vector<32x128xf32>
    %c3 = arith.constant 3 : index
    %c0_29 = arith.constant 0 : index
    %c0_30 = arith.constant 0 : index
    %35 = vector.load %arg3[%c3, %c0_29, %c0_30] : memref<16x32x128xbf16, #tpu.memory_space<vmem>>, vector<1x32x128xbf16>
    %36 = vector.shape_cast %35 : vector<1x32x128xbf16> to vector<32x128xbf16>
    %cst_31 = arith.constant dense<0.000000e+00> : vector<32x64xf32>
    %37 = tpu.matmul %36, %11, %cst_31 {dimension_numbers = #tpu.dot_dimension_numbers<[1], [0], [0], [1], [0, 0, 1, 1], [], []>} : vector<32x128xbf16>, vector<128x64xbf16>, vector<32x64xf32> -> vector<32x64xf32>
    %38 = arith.truncf %37 : vector<32x64xf32> to vector<32x64xbf16>
    %c3_32 = arith.constant 3 : index
    %c0_33 = arith.constant 0 : index
    %c0_34 = arith.constant 0 : index
    %39 = vector.load %arg4[%c3_32, %c0_33, %c0_34] : memref<16x64x128xbf16, #tpu.memory_space<vmem>>, vector<1x64x128xbf16>
    %40 = vector.shape_cast %39 : vector<1x64x128xbf16> to vector<64x128xbf16>
    %cst_35 = arith.constant dense<0.000000e+00> : vector<32x128xf32>
    %41 = tpu.matmul %38, %40, %cst_35 {dimension_numbers = #tpu.dot_dimension_numbers<[1], [0], [0], [1], [0, 0, 1, 1], [], []>} : vector<32x64xbf16>, vector<64x128xbf16>, vector<32x128xf32> -> vector<32x128xf32>
    %42 = arith.addf %34, %41 : vector<32x128xf32>
    %c4 = arith.constant 4 : index
    %c0_36 = arith.constant 0 : index
    %c0_37 = arith.constant 0 : index
    %43 = vector.load %arg3[%c4, %c0_36, %c0_37] : memref<16x32x128xbf16, #tpu.memory_space<vmem>>, vector<1x32x128xbf16>
    %44 = vector.shape_cast %43 : vector<1x32x128xbf16> to vector<32x128xbf16>
    %cst_38 = arith.constant dense<0.000000e+00> : vector<32x64xf32>
    %45 = tpu.matmul %44, %11, %cst_38 {dimension_numbers = #tpu.dot_dimension_numbers<[1], [0], [0], [1], [0, 0, 1, 1], [], []>} : vector<32x128xbf16>, vector<128x64xbf16>, vector<32x64xf32> -> vector<32x64xf32>
    %46 = arith.truncf %45 : vector<32x64xf32> to vector<32x64xbf16>
    %c4_39 = arith.constant 4 : index
    %c0_40 = arith.constant 0 : index
    %c0_41 = arith.constant 0 : index
    %47 = vector.load %arg4[%c4_39, %c0_40, %c0_41] : memref<16x64x128xbf16, #tpu.memory_space<vmem>>, vector<1x64x128xbf16>
    %48 = vector.shape_cast %47 : vector<1x64x128xbf16> to vector<64x128xbf16>
    %cst_42 = arith.constant dense<0.000000e+00> : vector<32x128xf32>
    %49 = tpu.matmul %46, %48, %cst_42 {dimension_numbers = #tpu.dot_dimension_numbers<[1], [0], [0], [1], [0, 0, 1, 1], [], []>} : vector<32x64xbf16>, vector<64x128xbf16>, vector<32x128xf32> -> vector<32x128xf32>
    %50 = arith.addf %42, %49 : vector<32x128xf32>
    %c5 = arith.constant 5 : index
    %c0_43 = arith.constant 0 : index
    %c0_44 = arith.constant 0 : index
    %51 = vector.load %arg3[%c5, %c0_43, %c0_44] : memref<16x32x128xbf16, #tpu.memory_space<vmem>>, vector<1x32x128xbf16>
    %52 = vector.shape_cast %51 : vector<1x32x128xbf16> to vector<32x128xbf16>
    %cst_45 = arith.constant dense<0.000000e+00> : vector<32x64xf32>
    %53 = tpu.matmul %52, %11, %cst_45 {dimension_numbers = #tpu.dot_dimension_numbers<[1], [0], [0], [1], [0, 0, 1, 1], [], []>} : vector<32x128xbf16>, vector<128x64xbf16>, vector<32x64xf32> -> vector<32x64xf32>
    %54 = arith.truncf %53 : vector<32x64xf32> to vector<32x64xbf16>
    %c5_46 = arith.constant 5 : index
    %c0_47 = arith.constant 0 : index
    %c0_48 = arith.constant 0 : index
    %55 = vector.load %arg4[%c5_46, %c0_47, %c0_48] : memref<16x64x128xbf16, #tpu.memory_space<vmem>>, vector<1x64x128xbf16>
    %56 = vector.shape_cast %55 : vector<1x64x128xbf16> to vector<64x128xbf16>
    %cst_49 = arith.constant dense<0.000000e+00> : vector<32x128xf32>
    %57 = tpu.matmul %54, %56, %cst_49 {dimension_numbers = #tpu.dot_dimension_numbers<[1], [0], [0], [1], [0, 0, 1, 1], [], []>} : vector<32x64xbf16>, vector<64x128xbf16>, vector<32x128xf32> -> vector<32x128xf32>
    %58 = arith.addf %50, %57 : vector<32x128xf32>
    %c6 = arith.constant 6 : index
    %c0_50 = arith.constant 0 : index
    %c0_51 = arith.constant 0 : index
    %59 = vector.load %arg3[%c6, %c0_50, %c0_51] : memref<16x32x128xbf16, #tpu.memory_space<vmem>>, vector<1x32x128xbf16>
    %60 = vector.shape_cast %59 : vector<1x32x128xbf16> to vector<32x128xbf16>
    %cst_52 = arith.constant dense<0.000000e+00> : vector<32x64xf32>
    %61 = tpu.matmul %60, %11, %cst_52 {dimension_numbers = #tpu.dot_dimension_numbers<[1], [0], [0], [1], [0, 0, 1, 1], [], []>} : vector<32x128xbf16>, vector<128x64xbf16>, vector<32x64xf32> -> vector<32x64xf32>
    %62 = arith.truncf %61 : vector<32x64xf32> to vector<32x64xbf16>
    %c6_53 = arith.constant 6 : index
    %c0_54 = arith.constant 0 : index
    %c0_55 = arith.constant 0 : index
    %63 = vector.load %arg4[%c6_53, %c0_54, %c0_55] : memref<16x64x128xbf16, #tpu.memory_space<vmem>>, vector<1x64x128xbf16>
    %64 = vector.shape_cast %63 : vector<1x64x128xbf16> to vector<64x128xbf16>
    %cst_56 = arith.constant dense<0.000000e+00> : vector<32x128xf32>
    %65 = tpu.matmul %62, %64, %cst_56 {dimension_numbers = #tpu.dot_dimension_numbers<[1], [0], [0], [1], [0, 0, 1, 1], [], []>} : vector<32x64xbf16>, vector<64x128xbf16>, vector<32x128xf32> -> vector<32x128xf32>
    %66 = arith.addf %58, %65 : vector<32x128xf32>
    %c7 = arith.constant 7 : index
    %c0_57 = arith.constant 0 : index
    %c0_58 = arith.constant 0 : index
    %67 = vector.load %arg3[%c7, %c0_57, %c0_58] : memref<16x32x128xbf16, #tpu.memory_space<vmem>>, vector<1x32x128xbf16>
    %68 = vector.shape_cast %67 : vector<1x32x128xbf16> to vector<32x128xbf16>
    %cst_59 = arith.constant dense<0.000000e+00> : vector<32x64xf32>
    %69 = tpu.matmul %68, %11, %cst_59 {dimension_numbers = #tpu.dot_dimension_numbers<[1], [0], [0], [1], [0, 0, 1, 1], [], []>} : vector<32x128xbf16>, vector<128x64xbf16>, vector<32x64xf32> -> vector<32x64xf32>
    %70 = arith.truncf %69 : vector<32x64xf32> to vector<32x64xbf16>
    %c7_60 = arith.constant 7 : index
    %c0_61 = arith.constant 0 : index
    %c0_62 = arith.constant 0 : index
    %71 = vector.load %arg4[%c7_60, %c0_61, %c0_62] : memref<16x64x128xbf16, #tpu.memory_space<vmem>>, vector<1x64x128xbf16>
    %72 = vector.shape_cast %71 : vector<1x64x128xbf16> to vector<64x128xbf16>
    %cst_63 = arith.constant dense<0.000000e+00> : vector<32x128xf32>
    %73 = tpu.matmul %70, %72, %cst_63 {dimension_numbers = #tpu.dot_dimension_numbers<[1], [0], [0], [1], [0, 0, 1, 1], [], []>} : vector<32x64xbf16>, vector<64x128xbf16>, vector<32x128xf32> -> vector<32x128xf32>
    %74 = arith.addf %66, %73 : vector<32x128xf32>
    %c8 = arith.constant 8 : index
    %c0_64 = arith.constant 0 : index
    %c0_65 = arith.constant 0 : index
    %75 = vector.load %arg3[%c8, %c0_64, %c0_65] : memref<16x32x128xbf16, #tpu.memory_space<vmem>>, vector<1x32x128xbf16>
    %76 = vector.shape_cast %75 : vector<1x32x128xbf16> to vector<32x128xbf16>
    %cst_66 = arith.constant dense<0.000000e+00> : vector<32x64xf32>
    %77 = tpu.matmul %76, %11, %cst_66 {dimension_numbers = #tpu.dot_dimension_numbers<[1], [0], [0], [1], [0, 0, 1, 1], [], []>} : vector<32x128xbf16>, vector<128x64xbf16>, vector<32x64xf32> -> vector<32x64xf32>
    %78 = arith.truncf %77 : vector<32x64xf32> to vector<32x64xbf16>
    %c8_67 = arith.constant 8 : index
    %c0_68 = arith.constant 0 : index
    %c0_69 = arith.constant 0 : index
    %79 = vector.load %arg4[%c8_67, %c0_68, %c0_69] : memref<16x64x128xbf16, #tpu.memory_space<vmem>>, vector<1x64x128xbf16>
    %80 = vector.shape_cast %79 : vector<1x64x128xbf16> to vector<64x128xbf16>
    %cst_70 = arith.constant dense<0.000000e+00> : vector<32x128xf32>
    %81 = tpu.matmul %78, %80, %cst_70 {dimension_numbers = #tpu.dot_dimension_numbers<[1], [0], [0], [1], [0, 0, 1, 1], [], []>} : vector<32x64xbf16>, vector<64x128xbf16>, vector<32x128xf32> -> vector<32x128xf32>
    %82 = arith.addf %74, %81 : vector<32x128xf32>
    %c9 = arith.constant 9 : index
    %c0_71 = arith.constant 0 : index
    %c0_72 = arith.constant 0 : index
    %83 = vector.load %arg3[%c9, %c0_71, %c0_72] : memref<16x32x128xbf16, #tpu.memory_space<vmem>>, vector<1x32x128xbf16>
    %84 = vector.shape_cast %83 : vector<1x32x128xbf16> to vector<32x128xbf16>
    %cst_73 = arith.constant dense<0.000000e+00> : vector<32x64xf32>
    %85 = tpu.matmul %84, %11, %cst_73 {dimension_numbers = #tpu.dot_dimension_numbers<[1], [0], [0], [1], [0, 0, 1, 1], [], []>} : vector<32x128xbf16>, vector<128x64xbf16>, vector<32x64xf32> -> vector<32x64xf32>
    %86 = arith.truncf %85 : vector<32x64xf32> to vector<32x64xbf16>
    %c9_74 = arith.constant 9 : index
    %c0_75 = arith.constant 0 : index
    %c0_76 = arith.constant 0 : index
    %87 = vector.load %arg4[%c9_74, %c0_75, %c0_76] : memref<16x64x128xbf16, #tpu.memory_space<vmem>>, vector<1x64x128xbf16>
    %88 = vector.shape_cast %87 : vector<1x64x128xbf16> to vector<64x128xbf16>
    %cst_77 = arith.constant dense<0.000000e+00> : vector<32x128xf32>
    %89 = tpu.matmul %86, %88, %cst_77 {dimension_numbers = #tpu.dot_dimension_numbers<[1], [0], [0], [1], [0, 0, 1, 1], [], []>} : vector<32x64xbf16>, vector<64x128xbf16>, vector<32x128xf32> -> vector<32x128xf32>
    %90 = arith.addf %82, %89 : vector<32x128xf32>
    %c10 = arith.constant 10 : index
    %c0_78 = arith.constant 0 : index
    %c0_79 = arith.constant 0 : index
    %91 = vector.load %arg3[%c10, %c0_78, %c0_79] : memref<16x32x128xbf16, #tpu.memory_space<vmem>>, vector<1x32x128xbf16>
    %92 = vector.shape_cast %91 : vector<1x32x128xbf16> to vector<32x128xbf16>
    %cst_80 = arith.constant dense<0.000000e+00> : vector<32x64xf32>
    %93 = tpu.matmul %92, %11, %cst_80 {dimension_numbers = #tpu.dot_dimension_numbers<[1], [0], [0], [1], [0, 0, 1, 1], [], []>} : vector<32x128xbf16>, vector<128x64xbf16>, vector<32x64xf32> -> vector<32x64xf32>
    %94 = arith.truncf %93 : vector<32x64xf32> to vector<32x64xbf16>
    %c10_81 = arith.constant 10 : index
    %c0_82 = arith.constant 0 : index
    %c0_83 = arith.constant 0 : index
    %95 = vector.load %arg4[%c10_81, %c0_82, %c0_83] : memref<16x64x128xbf16, #tpu.memory_space<vmem>>, vector<1x64x128xbf16>
    %96 = vector.shape_cast %95 : vector<1x64x128xbf16> to vector<64x128xbf16>
    %cst_84 = arith.constant dense<0.000000e+00> : vector<32x128xf32>
    %97 = tpu.matmul %94, %96, %cst_84 {dimension_numbers = #tpu.dot_dimension_numbers<[1], [0], [0], [1], [0, 0, 1, 1], [], []>} : vector<32x64xbf16>, vector<64x128xbf16>, vector<32x128xf32> -> vector<32x128xf32>
    %98 = arith.addf %90, %97 : vector<32x128xf32>
    %c11 = arith.constant 11 : index
    %c0_85 = arith.constant 0 : index
    %c0_86 = arith.constant 0 : index
    %99 = vector.load %arg3[%c11, %c0_85, %c0_86] : memref<16x32x128xbf16, #tpu.memory_space<vmem>>, vector<1x32x128xbf16>
    %100 = vector.shape_cast %99 : vector<1x32x128xbf16> to vector<32x128xbf16>
    %cst_87 = arith.constant dense<0.000000e+00> : vector<32x64xf32>
    %101 = tpu.matmul %100, %11, %cst_87 {dimension_numbers = #tpu.dot_dimension_numbers<[1], [0], [0], [1], [0, 0, 1, 1], [], []>} : vector<32x128xbf16>, vector<128x64xbf16>, vector<32x64xf32> -> vector<32x64xf32>
    %102 = arith.truncf %101 : vector<32x64xf32> to vector<32x64xbf16>
    %c11_88 = arith.constant 11 : index
    %c0_89 = arith.constant 0 : index
    %c0_90 = arith.constant 0 : index
    %103 = vector.load %arg4[%c11_88, %c0_89, %c0_90] : memref<16x64x128xbf16, #tpu.memory_space<vmem>>, vector<1x64x128xbf16>
    %104 = vector.shape_cast %103 : vector<1x64x128xbf16> to vector<64x128xbf16>
    %cst_91 = arith.constant dense<0.000000e+00> : vector<32x128xf32>
    %105 = tpu.matmul %102, %104, %cst_91 {dimension_numbers = #tpu.dot_dimension_numbers<[1], [0], [0], [1], [0, 0, 1, 1], [], []>} : vector<32x64xbf16>, vector<64x128xbf16>, vector<32x128xf32> -> vector<32x128xf32>
    %106 = arith.addf %98, %105 : vector<32x128xf32>
    %c12 = arith.constant 12 : index
    %c0_92 = arith.constant 0 : index
    %c0_93 = arith.constant 0 : index
    %107 = vector.load %arg3[%c12, %c0_92, %c0_93] : memref<16x32x128xbf16, #tpu.memory_space<vmem>>, vector<1x32x128xbf16>
    %108 = vector.shape_cast %107 : vector<1x32x128xbf16> to vector<32x128xbf16>
    %cst_94 = arith.constant dense<0.000000e+00> : vector<32x64xf32>
    %109 = tpu.matmul %108, %11, %cst_94 {dimension_numbers = #tpu.dot_dimension_numbers<[1], [0], [0], [1], [0, 0, 1, 1], [], []>} : vector<32x128xbf16>, vector<128x64xbf16>, vector<32x64xf32> -> vector<32x64xf32>
    %110 = arith.truncf %109 : vector<32x64xf32> to vector<32x64xbf16>
    %c12_95 = arith.constant 12 : index
    %c0_96 = arith.constant 0 : index
    %c0_97 = arith.constant 0 : index
    %111 = vector.load %arg4[%c12_95, %c0_96, %c0_97] : memref<16x64x128xbf16, #tpu.memory_space<vmem>>, vector<1x64x128xbf16>
    %112 = vector.shape_cast %111 : vector<1x64x128xbf16> to vector<64x128xbf16>
    %cst_98 = arith.constant dense<0.000000e+00> : vector<32x128xf32>
    %113 = tpu.matmul %110, %112, %cst_98 {dimension_numbers = #tpu.dot_dimension_numbers<[1], [0], [0], [1], [0, 0, 1, 1], [], []>} : vector<32x64xbf16>, vector<64x128xbf16>, vector<32x128xf32> -> vector<32x128xf32>
    %114 = arith.addf %106, %113 : vector<32x128xf32>
    %c13 = arith.constant 13 : index
    %c0_99 = arith.constant 0 : index
    %c0_100 = arith.constant 0 : index
    %115 = vector.load %arg3[%c13, %c0_99, %c0_100] : memref<16x32x128xbf16, #tpu.memory_space<vmem>>, vector<1x32x128xbf16>
    %116 = vector.shape_cast %115 : vector<1x32x128xbf16> to vector<32x128xbf16>
    %cst_101 = arith.constant dense<0.000000e+00> : vector<32x64xf32>
    %117 = tpu.matmul %116, %11, %cst_101 {dimension_numbers = #tpu.dot_dimension_numbers<[1], [0], [0], [1], [0, 0, 1, 1], [], []>} : vector<32x128xbf16>, vector<128x64xbf16>, vector<32x64xf32> -> vector<32x64xf32>
    %118 = arith.truncf %117 : vector<32x64xf32> to vector<32x64xbf16>
    %c13_102 = arith.constant 13 : index
    %c0_103 = arith.constant 0 : index
    %c0_104 = arith.constant 0 : index
    %119 = vector.load %arg4[%c13_102, %c0_103, %c0_104] : memref<16x64x128xbf16, #tpu.memory_space<vmem>>, vector<1x64x128xbf16>
    %120 = vector.shape_cast %119 : vector<1x64x128xbf16> to vector<64x128xbf16>
    %cst_105 = arith.constant dense<0.000000e+00> : vector<32x128xf32>
    %121 = tpu.matmul %118, %120, %cst_105 {dimension_numbers = #tpu.dot_dimension_numbers<[1], [0], [0], [1], [0, 0, 1, 1], [], []>} : vector<32x64xbf16>, vector<64x128xbf16>, vector<32x128xf32> -> vector<32x128xf32>
    %122 = arith.addf %114, %121 : vector<32x128xf32>
    %c14 = arith.constant 14 : index
    %c0_106 = arith.constant 0 : index
    %c0_107 = arith.constant 0 : index
    %123 = vector.load %arg3[%c14, %c0_106, %c0_107] : memref<16x32x128xbf16, #tpu.memory_space<vmem>>, vector<1x32x128xbf16>
    %124 = vector.shape_cast %123 : vector<1x32x128xbf16> to vector<32x128xbf16>
    %cst_108 = arith.constant dense<0.000000e+00> : vector<32x64xf32>
    %125 = tpu.matmul %124, %11, %cst_108 {dimension_numbers = #tpu.dot_dimension_numbers<[1], [0], [0], [1], [0, 0, 1, 1], [], []>} : vector<32x128xbf16>, vector<128x64xbf16>, vector<32x64xf32> -> vector<32x64xf32>
    %126 = arith.truncf %125 : vector<32x64xf32> to vector<32x64xbf16>
    %c14_109 = arith.constant 14 : index
    %c0_110 = arith.constant 0 : index
    %c0_111 = arith.constant 0 : index
    %127 = vector.load %arg4[%c14_109, %c0_110, %c0_111] : memref<16x64x128xbf16, #tpu.memory_space<vmem>>, vector<1x64x128xbf16>
    %128 = vector.shape_cast %127 : vector<1x64x128xbf16> to vector<64x128xbf16>
    %cst_112 = arith.constant dense<0.000000e+00> : vector<32x128xf32>
    %129 = tpu.matmul %126, %128, %cst_112 {dimension_numbers = #tpu.dot_dimension_numbers<[1], [0], [0], [1], [0, 0, 1, 1], [], []>} : vector<32x64xbf16>, vector<64x128xbf16>, vector<32x128xf32> -> vector<32x128xf32>
    %130 = arith.addf %122, %129 : vector<32x128xf32>
    %c15 = arith.constant 15 : index
    %c0_113 = arith.constant 0 : index
    %c0_114 = arith.constant 0 : index
    %131 = vector.load %arg3[%c15, %c0_113, %c0_114] : memref<16x32x128xbf16, #tpu.memory_space<vmem>>, vector<1x32x128xbf16>
    %132 = vector.shape_cast %131 : vector<1x32x128xbf16> to vector<32x128xbf16>
    %cst_115 = arith.constant dense<0.000000e+00> : vector<32x64xf32>
    %133 = tpu.matmul %132, %11, %cst_115 {dimension_numbers = #tpu.dot_dimension_numbers<[1], [0], [0], [1], [0, 0, 1, 1], [], []>} : vector<32x128xbf16>, vector<128x64xbf16>, vector<32x64xf32> -> vector<32x64xf32>
    %134 = arith.truncf %133 : vector<32x64xf32> to vector<32x64xbf16>
    %c15_116 = arith.constant 15 : index
    %c0_117 = arith.constant 0 : index
    %c0_118 = arith.constant 0 : index
    %135 = vector.load %arg4[%c15_116, %c0_117, %c0_118] : memref<16x64x128xbf16, #tpu.memory_space<vmem>>, vector<1x64x128xbf16>
    %136 = vector.shape_cast %135 : vector<1x64x128xbf16> to vector<64x128xbf16>
    %cst_119 = arith.constant dense<0.000000e+00> : vector<32x128xf32>
    %137 = tpu.matmul %134, %136, %cst_119 {dimension_numbers = #tpu.dot_dimension_numbers<[1], [0], [0], [1], [0, 0, 1, 1], [], []>} : vector<32x64xbf16>, vector<64x128xbf16>, vector<32x128xf32> -> vector<32x128xf32>
    %138 = arith.addf %130, %137 : vector<32x128xf32>
    %c0_120 = arith.constant 0 : index
    %c0_121 = arith.constant 0 : index
    %139 = vector.load %arg5[%c0_120, %c0_121] : memref<1x128xf32, #tpu.memory_space<vmem>>, vector<1x128xf32>
    %140 = vector.broadcast %139 : vector<1x128xf32> to vector<32x128xf32>
    %141 = arith.addf %138, %140 : vector<32x128xf32>
    %cst_122 = arith.constant dense<0.000000e+00> : vector<128xf32>
    %142 = vector.multi_reduction <add>, %141, %cst_122 [0] : vector<32x128xf32> to vector<128xf32>
    %143 = vector.shape_cast %142 : vector<128xf32> to vector<1x128xf32>
    %cst_123 = arith.constant 3.125000e-02 : f32
    %144 = vector.broadcast %cst_123 : f32 to vector<1x128xf32>
    %145 = arith.mulf %143, %144 : vector<1x128xf32>
    %146 = vector.broadcast %145 : vector<1x128xf32> to vector<32x128xf32>
    %147 = arith.subf %141, %146 : vector<32x128xf32>
    %148 = arith.mulf %147, %147 : vector<32x128xf32>
    %cst_124 = arith.constant dense<0.000000e+00> : vector<128xf32>
    %149 = vector.multi_reduction <add>, %148, %cst_124 [0] : vector<32x128xf32> to vector<128xf32>
    %150 = vector.shape_cast %149 : vector<128xf32> to vector<1x128xf32>
    %cst_125 = arith.constant 3.125000e-02 : f32
    %151 = vector.broadcast %cst_125 : f32 to vector<1x128xf32>
    %152 = arith.mulf %150, %151 : vector<1x128xf32>
    %c0_126 = arith.constant 0 : index
    %c0_127 = arith.constant 0 : index
    %153 = vector.load %arg6[%c0_126, %c0_127] : memref<1x128xf32, #tpu.memory_space<vmem>>, vector<1x128xf32>
    %cst_128 = arith.constant 9.99999974E-6 : f32
    %154 = vector.broadcast %cst_128 : f32 to vector<1x128xf32>
    %155 = arith.addf %152, %154 : vector<1x128xf32>
    %156 = math.rsqrt %155 : vector<1x128xf32>
    %157 = arith.mulf %153, %156 : vector<1x128xf32>
    %158 = vector.broadcast %157 : vector<1x128xf32> to vector<32x128xf32>
    %159 = arith.mulf %147, %158 : vector<32x128xf32>
    %c0_129 = arith.constant 0 : index
    %c0_130 = arith.constant 0 : index
    %160 = vector.load %arg7[%c0_129, %c0_130] : memref<1x128xf32, #tpu.memory_space<vmem>>, vector<1x128xf32>
    %161 = vector.broadcast %160 : vector<1x128xf32> to vector<32x128xf32>
    %162 = arith.addf %159, %161 : vector<32x128xf32>
    %cst_131 = arith.constant 0.000000e+00 : f32
    %163 = vector.broadcast %cst_131 : f32 to vector<32x128xf32>
    %164 = arith.cmpf oge, %162, %163 : vector<32x128xf32>
    %cst_132 = arith.constant 2.000000e-01 : f32
    %165 = vector.broadcast %cst_132 : f32 to vector<32x128xf32>
    %166 = arith.mulf %165, %162 : vector<32x128xf32>
    %167 = arith.select %164, %162, %166 : vector<32x128xi1>, vector<32x128xf32>
    %168 = arith.truncf %167 : vector<32x128xf32> to vector<32x128xbf16>
    %c0_133 = arith.constant 0 : index
    %c0_134 = arith.constant 0 : index
    %c0_135 = arith.constant 0 : index
    %169 = vector.load %arg8[%c0_133, %c0_134, %c0_135] : memref<16x8x32xbf16, #tpu.memory_space<vmem>>, vector<1x8x32xbf16>
    %170 = vector.shape_cast %169 : vector<1x8x32xbf16> to vector<8x32xbf16>
    %cst_136 = arith.constant dense<0.000000e+00> : vector<8x128xf32>
    %171 = tpu.matmul %170, %168, %cst_136 {dimension_numbers = #tpu.dot_dimension_numbers<[1], [0], [0], [1], [0, 0, 1, 1], [], []>} : vector<8x32xbf16>, vector<32x128xbf16>, vector<8x128xf32> -> vector<8x128xf32>
    %172 = arith.truncf %171 : vector<8x128xf32> to vector<8x128xbf16>
    %c0_137 = arith.constant 0 : index
    %c0_138 = arith.constant 0 : index
    %c0_139 = arith.constant 0 : index
    %173 = vector.load %arg9[%c0_137, %c0_138, %c0_139] : memref<16x128x256xbf16, #tpu.memory_space<vmem>>, vector<1x128x256xbf16>
    %174 = vector.shape_cast %173 : vector<1x128x256xbf16> to vector<128x256xbf16>
    %cst_140 = arith.constant dense<0.000000e+00> : vector<8x256xf32>
    %175 = tpu.matmul %172, %174, %cst_140 {dimension_numbers = #tpu.dot_dimension_numbers<[1], [0], [0], [1], [0, 0, 1, 1], [], []>} : vector<8x128xbf16>, vector<128x256xbf16>, vector<8x256xf32> -> vector<8x256xf32>
    %c1_141 = arith.constant 1 : index
    %c0_142 = arith.constant 0 : index
    %c0_143 = arith.constant 0 : index
    %176 = vector.load %arg8[%c1_141, %c0_142, %c0_143] : memref<16x8x32xbf16, #tpu.memory_space<vmem>>, vector<1x8x32xbf16>
    %177 = vector.shape_cast %176 : vector<1x8x32xbf16> to vector<8x32xbf16>
    %cst_144 = arith.constant dense<0.000000e+00> : vector<8x128xf32>
    %178 = tpu.matmul %177, %168, %cst_144 {dimension_numbers = #tpu.dot_dimension_numbers<[1], [0], [0], [1], [0, 0, 1, 1], [], []>} : vector<8x32xbf16>, vector<32x128xbf16>, vector<8x128xf32> -> vector<8x128xf32>
    %179 = arith.truncf %178 : vector<8x128xf32> to vector<8x128xbf16>
    %c1_145 = arith.constant 1 : index
    %c0_146 = arith.constant 0 : index
    %c0_147 = arith.constant 0 : index
    %180 = vector.load %arg9[%c1_145, %c0_146, %c0_147] : memref<16x128x256xbf16, #tpu.memory_space<vmem>>, vector<1x128x256xbf16>
    %181 = vector.shape_cast %180 : vector<1x128x256xbf16> to vector<128x256xbf16>
    %cst_148 = arith.constant dense<0.000000e+00> : vector<8x256xf32>
    %182 = tpu.matmul %179, %181, %cst_148 {dimension_numbers = #tpu.dot_dimension_numbers<[1], [0], [0], [1], [0, 0, 1, 1], [], []>} : vector<8x128xbf16>, vector<128x256xbf16>, vector<8x256xf32> -> vector<8x256xf32>
    %183 = arith.addf %175, %182 : vector<8x256xf32>
    %c2_149 = arith.constant 2 : index
    %c0_150 = arith.constant 0 : index
    %c0_151 = arith.constant 0 : index
    %184 = vector.load %arg8[%c2_149, %c0_150, %c0_151] : memref<16x8x32xbf16, #tpu.memory_space<vmem>>, vector<1x8x32xbf16>
    %185 = vector.shape_cast %184 : vector<1x8x32xbf16> to vector<8x32xbf16>
    %cst_152 = arith.constant dense<0.000000e+00> : vector<8x128xf32>
    %186 = tpu.matmul %185, %168, %cst_152 {dimension_numbers = #tpu.dot_dimension_numbers<[1], [0], [0], [1], [0, 0, 1, 1], [], []>} : vector<8x32xbf16>, vector<32x128xbf16>, vector<8x128xf32> -> vector<8x128xf32>
    %187 = arith.truncf %186 : vector<8x128xf32> to vector<8x128xbf16>
    %c2_153 = arith.constant 2 : index
    %c0_154 = arith.constant 0 : index
    %c0_155 = arith.constant 0 : index
    %188 = vector.load %arg9[%c2_153, %c0_154, %c0_155] : memref<16x128x256xbf16, #tpu.memory_space<vmem>>, vector<1x128x256xbf16>
    %189 = vector.shape_cast %188 : vector<1x128x256xbf16> to vector<128x256xbf16>
    %cst_156 = arith.constant dense<0.000000e+00> : vector<8x256xf32>
    %190 = tpu.matmul %187, %189, %cst_156 {dimension_numbers = #tpu.dot_dimension_numbers<[1], [0], [0], [1], [0, 0, 1, 1], [], []>} : vector<8x128xbf16>, vector<128x256xbf16>, vector<8x256xf32> -> vector<8x256xf32>
    %191 = arith.addf %183, %190 : vector<8x256xf32>
    %c3_157 = arith.constant 3 : index
    %c0_158 = arith.constant 0 : index
    %c0_159 = arith.constant 0 : index
    %192 = vector.load %arg8[%c3_157, %c0_158, %c0_159] : memref<16x8x32xbf16, #tpu.memory_space<vmem>>, vector<1x8x32xbf16>
    %193 = vector.shape_cast %192 : vector<1x8x32xbf16> to vector<8x32xbf16>
    %cst_160 = arith.constant dense<0.000000e+00> : vector<8x128xf32>
    %194 = tpu.matmul %193, %168, %cst_160 {dimension_numbers = #tpu.dot_dimension_numbers<[1], [0], [0], [1], [0, 0, 1, 1], [], []>} : vector<8x32xbf16>, vector<32x128xbf16>, vector<8x128xf32> -> vector<8x128xf32>
    %195 = arith.truncf %194 : vector<8x128xf32> to vector<8x128xbf16>
    %c3_161 = arith.constant 3 : index
    %c0_162 = arith.constant 0 : index
    %c0_163 = arith.constant 0 : index
    %196 = vector.load %arg9[%c3_161, %c0_162, %c0_163] : memref<16x128x256xbf16, #tpu.memory_space<vmem>>, vector<1x128x256xbf16>
    %197 = vector.shape_cast %196 : vector<1x128x256xbf16> to vector<128x256xbf16>
    %cst_164 = arith.constant dense<0.000000e+00> : vector<8x256xf32>
    %198 = tpu.matmul %195, %197, %cst_164 {dimension_numbers = #tpu.dot_dimension_numbers<[1], [0], [0], [1], [0, 0, 1, 1], [], []>} : vector<8x128xbf16>, vector<128x256xbf16>, vector<8x256xf32> -> vector<8x256xf32>
    %199 = arith.addf %191, %198 : vector<8x256xf32>
    %c4_165 = arith.constant 4 : index
    %c0_166 = arith.constant 0 : index
    %c0_167 = arith.constant 0 : index
    %200 = vector.load %arg8[%c4_165, %c0_166, %c0_167] : memref<16x8x32xbf16, #tpu.memory_space<vmem>>, vector<1x8x32xbf16>
    %201 = vector.shape_cast %200 : vector<1x8x32xbf16> to vector<8x32xbf16>
    %cst_168 = arith.constant dense<0.000000e+00> : vector<8x128xf32>
    %202 = tpu.matmul %201, %168, %cst_168 {dimension_numbers = #tpu.dot_dimension_numbers<[1], [0], [0], [1], [0, 0, 1, 1], [], []>} : vector<8x32xbf16>, vector<32x128xbf16>, vector<8x128xf32> -> vector<8x128xf32>
    %203 = arith.truncf %202 : vector<8x128xf32> to vector<8x128xbf16>
    %c4_169 = arith.constant 4 : index
    %c0_170 = arith.constant 0 : index
    %c0_171 = arith.constant 0 : index
    %204 = vector.load %arg9[%c4_169, %c0_170, %c0_171] : memref<16x128x256xbf16, #tpu.memory_space<vmem>>, vector<1x128x256xbf16>
    %205 = vector.shape_cast %204 : vector<1x128x256xbf16> to vector<128x256xbf16>
    %cst_172 = arith.constant dense<0.000000e+00> : vector<8x256xf32>
    %206 = tpu.matmul %203, %205, %cst_172 {dimension_numbers = #tpu.dot_dimension_numbers<[1], [0], [0], [1], [0, 0, 1, 1], [], []>} : vector<8x128xbf16>, vector<128x256xbf16>, vector<8x256xf32> -> vector<8x256xf32>
    %207 = arith.addf %199, %206 : vector<8x256xf32>
    %c5_173 = arith.constant 5 : index
    %c0_174 = arith.constant 0 : index
    %c0_175 = arith.constant 0 : index
    %208 = vector.load %arg8[%c5_173, %c0_174, %c0_175] : memref<16x8x32xbf16, #tpu.memory_space<vmem>>, vector<1x8x32xbf16>
    %209 = vector.shape_cast %208 : vector<1x8x32xbf16> to vector<8x32xbf16>
    %cst_176 = arith.constant dense<0.000000e+00> : vector<8x128xf32>
    %210 = tpu.matmul %209, %168, %cst_176 {dimension_numbers = #tpu.dot_dimension_numbers<[1], [0], [0], [1], [0, 0, 1, 1], [], []>} : vector<8x32xbf16>, vector<32x128xbf16>, vector<8x128xf32> -> vector<8x128xf32>
    %211 = arith.truncf %210 : vector<8x128xf32> to vector<8x128xbf16>
    %c5_177 = arith.constant 5 : index
    %c0_178 = arith.constant 0 : index
    %c0_179 = arith.constant 0 : index
    %212 = vector.load %arg9[%c5_177, %c0_178, %c0_179] : memref<16x128x256xbf16, #tpu.memory_space<vmem>>, vector<1x128x256xbf16>
    %213 = vector.shape_cast %212 : vector<1x128x256xbf16> to vector<128x256xbf16>
    %cst_180 = arith.constant dense<0.000000e+00> : vector<8x256xf32>
    %214 = tpu.matmul %211, %213, %cst_180 {dimension_numbers = #tpu.dot_dimension_numbers<[1], [0], [0], [1], [0, 0, 1, 1], [], []>} : vector<8x128xbf16>, vector<128x256xbf16>, vector<8x256xf32> -> vector<8x256xf32>
    %215 = arith.addf %207, %214 : vector<8x256xf32>
    %c6_181 = arith.constant 6 : index
    %c0_182 = arith.constant 0 : index
    %c0_183 = arith.constant 0 : index
    %216 = vector.load %arg8[%c6_181, %c0_182, %c0_183] : memref<16x8x32xbf16, #tpu.memory_space<vmem>>, vector<1x8x32xbf16>
    %217 = vector.shape_cast %216 : vector<1x8x32xbf16> to vector<8x32xbf16>
    %cst_184 = arith.constant dense<0.000000e+00> : vector<8x128xf32>
    %218 = tpu.matmul %217, %168, %cst_184 {dimension_numbers = #tpu.dot_dimension_numbers<[1], [0], [0], [1], [0, 0, 1, 1], [], []>} : vector<8x32xbf16>, vector<32x128xbf16>, vector<8x128xf32> -> vector<8x128xf32>
    %219 = arith.truncf %218 : vector<8x128xf32> to vector<8x128xbf16>
    %c6_185 = arith.constant 6 : index
    %c0_186 = arith.constant 0 : index
    %c0_187 = arith.constant 0 : index
    %220 = vector.load %arg9[%c6_185, %c0_186, %c0_187] : memref<16x128x256xbf16, #tpu.memory_space<vmem>>, vector<1x128x256xbf16>
    %221 = vector.shape_cast %220 : vector<1x128x256xbf16> to vector<128x256xbf16>
    %cst_188 = arith.constant dense<0.000000e+00> : vector<8x256xf32>
    %222 = tpu.matmul %219, %221, %cst_188 {dimension_numbers = #tpu.dot_dimension_numbers<[1], [0], [0], [1], [0, 0, 1, 1], [], []>} : vector<8x128xbf16>, vector<128x256xbf16>, vector<8x256xf32> -> vector<8x256xf32>
    %223 = arith.addf %215, %222 : vector<8x256xf32>
    %c7_189 = arith.constant 7 : index
    %c0_190 = arith.constant 0 : index
    %c0_191 = arith.constant 0 : index
    %224 = vector.load %arg8[%c7_189, %c0_190, %c0_191] : memref<16x8x32xbf16, #tpu.memory_space<vmem>>, vector<1x8x32xbf16>
    %225 = vector.shape_cast %224 : vector<1x8x32xbf16> to vector<8x32xbf16>
    %cst_192 = arith.constant dense<0.000000e+00> : vector<8x128xf32>
    %226 = tpu.matmul %225, %168, %cst_192 {dimension_numbers = #tpu.dot_dimension_numbers<[1], [0], [0], [1], [0, 0, 1, 1], [], []>} : vector<8x32xbf16>, vector<32x128xbf16>, vector<8x128xf32> -> vector<8x128xf32>
    %227 = arith.truncf %226 : vector<8x128xf32> to vector<8x128xbf16>
    %c7_193 = arith.constant 7 : index
    %c0_194 = arith.constant 0 : index
    %c0_195 = arith.constant 0 : index
    %228 = vector.load %arg9[%c7_193, %c0_194, %c0_195] : memref<16x128x256xbf16, #tpu.memory_space<vmem>>, vector<1x128x256xbf16>
    %229 = vector.shape_cast %228 : vector<1x128x256xbf16> to vector<128x256xbf16>
    %cst_196 = arith.constant dense<0.000000e+00> : vector<8x256xf32>
    %230 = tpu.matmul %227, %229, %cst_196 {dimension_numbers = #tpu.dot_dimension_numbers<[1], [0], [0], [1], [0, 0, 1, 1], [], []>} : vector<8x128xbf16>, vector<128x256xbf16>, vector<8x256xf32> -> vector<8x256xf32>
    %231 = arith.addf %223, %230 : vector<8x256xf32>
    %c8_197 = arith.constant 8 : index
    %c0_198 = arith.constant 0 : index
    %c0_199 = arith.constant 0 : index
    %232 = vector.load %arg8[%c8_197, %c0_198, %c0_199] : memref<16x8x32xbf16, #tpu.memory_space<vmem>>, vector<1x8x32xbf16>
    %233 = vector.shape_cast %232 : vector<1x8x32xbf16> to vector<8x32xbf16>
    %cst_200 = arith.constant dense<0.000000e+00> : vector<8x128xf32>
    %234 = tpu.matmul %233, %168, %cst_200 {dimension_numbers = #tpu.dot_dimension_numbers<[1], [0], [0], [1], [0, 0, 1, 1], [], []>} : vector<8x32xbf16>, vector<32x128xbf16>, vector<8x128xf32> -> vector<8x128xf32>
    %235 = arith.truncf %234 : vector<8x128xf32> to vector<8x128xbf16>
    %c8_201 = arith.constant 8 : index
    %c0_202 = arith.constant 0 : index
    %c0_203 = arith.constant 0 : index
    %236 = vector.load %arg9[%c8_201, %c0_202, %c0_203] : memref<16x128x256xbf16, #tpu.memory_space<vmem>>, vector<1x128x256xbf16>
    %237 = vector.shape_cast %236 : vector<1x128x256xbf16> to vector<128x256xbf16>
    %cst_204 = arith.constant dense<0.000000e+00> : vector<8x256xf32>
    %238 = tpu.matmul %235, %237, %cst_204 {dimension_numbers = #tpu.dot_dimension_numbers<[1], [0], [0], [1], [0, 0, 1, 1], [], []>} : vector<8x128xbf16>, vector<128x256xbf16>, vector<8x256xf32> -> vector<8x256xf32>
    %239 = arith.addf %231, %238 : vector<8x256xf32>
    %c9_205 = arith.constant 9 : index
    %c0_206 = arith.constant 0 : index
    %c0_207 = arith.constant 0 : index
    %240 = vector.load %arg8[%c9_205, %c0_206, %c0_207] : memref<16x8x32xbf16, #tpu.memory_space<vmem>>, vector<1x8x32xbf16>
    %241 = vector.shape_cast %240 : vector<1x8x32xbf16> to vector<8x32xbf16>
    %cst_208 = arith.constant dense<0.000000e+00> : vector<8x128xf32>
    %242 = tpu.matmul %241, %168, %cst_208 {dimension_numbers = #tpu.dot_dimension_numbers<[1], [0], [0], [1], [0, 0, 1, 1], [], []>} : vector<8x32xbf16>, vector<32x128xbf16>, vector<8x128xf32> -> vector<8x128xf32>
    %243 = arith.truncf %242 : vector<8x128xf32> to vector<8x128xbf16>
    %c9_209 = arith.constant 9 : index
    %c0_210 = arith.constant 0 : index
    %c0_211 = arith.constant 0 : index
    %244 = vector.load %arg9[%c9_209, %c0_210, %c0_211] : memref<16x128x256xbf16, #tpu.memory_space<vmem>>, vector<1x128x256xbf16>
    %245 = vector.shape_cast %244 : vector<1x128x256xbf16> to vector<128x256xbf16>
    %cst_212 = arith.constant dense<0.000000e+00> : vector<8x256xf32>
    %246 = tpu.matmul %243, %245, %cst_212 {dimension_numbers = #tpu.dot_dimension_numbers<[1], [0], [0], [1], [0, 0, 1, 1], [], []>} : vector<8x128xbf16>, vector<128x256xbf16>, vector<8x256xf32> -> vector<8x256xf32>
    %247 = arith.addf %239, %246 : vector<8x256xf32>
    %c10_213 = arith.constant 10 : index
    %c0_214 = arith.constant 0 : index
    %c0_215 = arith.constant 0 : index
    %248 = vector.load %arg8[%c10_213, %c0_214, %c0_215] : memref<16x8x32xbf16, #tpu.memory_space<vmem>>, vector<1x8x32xbf16>
    %249 = vector.shape_cast %248 : vector<1x8x32xbf16> to vector<8x32xbf16>
    %cst_216 = arith.constant dense<0.000000e+00> : vector<8x128xf32>
    %250 = tpu.matmul %249, %168, %cst_216 {dimension_numbers = #tpu.dot_dimension_numbers<[1], [0], [0], [1], [0, 0, 1, 1], [], []>} : vector<8x32xbf16>, vector<32x128xbf16>, vector<8x128xf32> -> vector<8x128xf32>
    %251 = arith.truncf %250 : vector<8x128xf32> to vector<8x128xbf16>
    %c10_217 = arith.constant 10 : index
    %c0_218 = arith.constant 0 : index
    %c0_219 = arith.constant 0 : index
    %252 = vector.load %arg9[%c10_217, %c0_218, %c0_219] : memref<16x128x256xbf16, #tpu.memory_space<vmem>>, vector<1x128x256xbf16>
    %253 = vector.shape_cast %252 : vector<1x128x256xbf16> to vector<128x256xbf16>
    %cst_220 = arith.constant dense<0.000000e+00> : vector<8x256xf32>
    %254 = tpu.matmul %251, %253, %cst_220 {dimension_numbers = #tpu.dot_dimension_numbers<[1], [0], [0], [1], [0, 0, 1, 1], [], []>} : vector<8x128xbf16>, vector<128x256xbf16>, vector<8x256xf32> -> vector<8x256xf32>
    %255 = arith.addf %247, %254 : vector<8x256xf32>
    %c11_221 = arith.constant 11 : index
    %c0_222 = arith.constant 0 : index
    %c0_223 = arith.constant 0 : index
    %256 = vector.load %arg8[%c11_221, %c0_222, %c0_223] : memref<16x8x32xbf16, #tpu.memory_space<vmem>>, vector<1x8x32xbf16>
    %257 = vector.shape_cast %256 : vector<1x8x32xbf16> to vector<8x32xbf16>
    %cst_224 = arith.constant dense<0.000000e+00> : vector<8x128xf32>
    %258 = tpu.matmul %257, %168, %cst_224 {dimension_numbers = #tpu.dot_dimension_numbers<[1], [0], [0], [1], [0, 0, 1, 1], [], []>} : vector<8x32xbf16>, vector<32x128xbf16>, vector<8x128xf32> -> vector<8x128xf32>
    %259 = arith.truncf %258 : vector<8x128xf32> to vector<8x128xbf16>
    %c11_225 = arith.constant 11 : index
    %c0_226 = arith.constant 0 : index
    %c0_227 = arith.constant 0 : index
    %260 = vector.load %arg9[%c11_225, %c0_226, %c0_227] : memref<16x128x256xbf16, #tpu.memory_space<vmem>>, vector<1x128x256xbf16>
    %261 = vector.shape_cast %260 : vector<1x128x256xbf16> to vector<128x256xbf16>
    %cst_228 = arith.constant dense<0.000000e+00> : vector<8x256xf32>
    %262 = tpu.matmul %259, %261, %cst_228 {dimension_numbers = #tpu.dot_dimension_numbers<[1], [0], [0], [1], [0, 0, 1, 1], [], []>} : vector<8x128xbf16>, vector<128x256xbf16>, vector<8x256xf32> -> vector<8x256xf32>
    %263 = arith.addf %255, %262 : vector<8x256xf32>
    %c12_229 = arith.constant 12 : index
    %c0_230 = arith.constant 0 : index
    %c0_231 = arith.constant 0 : index
    %264 = vector.load %arg8[%c12_229, %c0_230, %c0_231] : memref<16x8x32xbf16, #tpu.memory_space<vmem>>, vector<1x8x32xbf16>
    %265 = vector.shape_cast %264 : vector<1x8x32xbf16> to vector<8x32xbf16>
    %cst_232 = arith.constant dense<0.000000e+00> : vector<8x128xf32>
    %266 = tpu.matmul %265, %168, %cst_232 {dimension_numbers = #tpu.dot_dimension_numbers<[1], [0], [0], [1], [0, 0, 1, 1], [], []>} : vector<8x32xbf16>, vector<32x128xbf16>, vector<8x128xf32> -> vector<8x128xf32>
    %267 = arith.truncf %266 : vector<8x128xf32> to vector<8x128xbf16>
    %c12_233 = arith.constant 12 : index
    %c0_234 = arith.constant 0 : index
    %c0_235 = arith.constant 0 : index
    %268 = vector.load %arg9[%c12_233, %c0_234, %c0_235] : memref<16x128x256xbf16, #tpu.memory_space<vmem>>, vector<1x128x256xbf16>
    %269 = vector.shape_cast %268 : vector<1x128x256xbf16> to vector<128x256xbf16>
    %cst_236 = arith.constant dense<0.000000e+00> : vector<8x256xf32>
    %270 = tpu.matmul %267, %269, %cst_236 {dimension_numbers = #tpu.dot_dimension_numbers<[1], [0], [0], [1], [0, 0, 1, 1], [], []>} : vector<8x128xbf16>, vector<128x256xbf16>, vector<8x256xf32> -> vector<8x256xf32>
    %271 = arith.addf %263, %270 : vector<8x256xf32>
    %c13_237 = arith.constant 13 : index
    %c0_238 = arith.constant 0 : index
    %c0_239 = arith.constant 0 : index
    %272 = vector.load %arg8[%c13_237, %c0_238, %c0_239] : memref<16x8x32xbf16, #tpu.memory_space<vmem>>, vector<1x8x32xbf16>
    %273 = vector.shape_cast %272 : vector<1x8x32xbf16> to vector<8x32xbf16>
    %cst_240 = arith.constant dense<0.000000e+00> : vector<8x128xf32>
    %274 = tpu.matmul %273, %168, %cst_240 {dimension_numbers = #tpu.dot_dimension_numbers<[1], [0], [0], [1], [0, 0, 1, 1], [], []>} : vector<8x32xbf16>, vector<32x128xbf16>, vector<8x128xf32> -> vector<8x128xf32>
    %275 = arith.truncf %274 : vector<8x128xf32> to vector<8x128xbf16>
    %c13_241 = arith.constant 13 : index
    %c0_242 = arith.constant 0 : index
    %c0_243 = arith.constant 0 : index
    %276 = vector.load %arg9[%c13_241, %c0_242, %c0_243] : memref<16x128x256xbf16, #tpu.memory_space<vmem>>, vector<1x128x256xbf16>
    %277 = vector.shape_cast %276 : vector<1x128x256xbf16> to vector<128x256xbf16>
    %cst_244 = arith.constant dense<0.000000e+00> : vector<8x256xf32>
    %278 = tpu.matmul %275, %277, %cst_244 {dimension_numbers = #tpu.dot_dimension_numbers<[1], [0], [0], [1], [0, 0, 1, 1], [], []>} : vector<8x128xbf16>, vector<128x256xbf16>, vector<8x256xf32> -> vector<8x256xf32>
    %279 = arith.addf %271, %278 : vector<8x256xf32>
    %c14_245 = arith.constant 14 : index
    %c0_246 = arith.constant 0 : index
    %c0_247 = arith.constant 0 : index
    %280 = vector.load %arg8[%c14_245, %c0_246, %c0_247] : memref<16x8x32xbf16, #tpu.memory_space<vmem>>, vector<1x8x32xbf16>
    %281 = vector.shape_cast %280 : vector<1x8x32xbf16> to vector<8x32xbf16>
    %cst_248 = arith.constant dense<0.000000e+00> : vector<8x128xf32>
    %282 = tpu.matmul %281, %168, %cst_248 {dimension_numbers = #tpu.dot_dimension_numbers<[1], [0], [0], [1], [0, 0, 1, 1], [], []>} : vector<8x32xbf16>, vector<32x128xbf16>, vector<8x128xf32> -> vector<8x128xf32>
    %283 = arith.truncf %282 : vector<8x128xf32> to vector<8x128xbf16>
    %c14_249 = arith.constant 14 : index
    %c0_250 = arith.constant 0 : index
    %c0_251 = arith.constant 0 : index
    %284 = vector.load %arg9[%c14_249, %c0_250, %c0_251] : memref<16x128x256xbf16, #tpu.memory_space<vmem>>, vector<1x128x256xbf16>
    %285 = vector.shape_cast %284 : vector<1x128x256xbf16> to vector<128x256xbf16>
    %cst_252 = arith.constant dense<0.000000e+00> : vector<8x256xf32>
    %286 = tpu.matmul %283, %285, %cst_252 {dimension_numbers = #tpu.dot_dimension_numbers<[1], [0], [0], [1], [0, 0, 1, 1], [], []>} : vector<8x128xbf16>, vector<128x256xbf16>, vector<8x256xf32> -> vector<8x256xf32>
    %287 = arith.addf %279, %286 : vector<8x256xf32>
    %c15_253 = arith.constant 15 : index
    %c0_254 = arith.constant 0 : index
    %c0_255 = arith.constant 0 : index
    %288 = vector.load %arg8[%c15_253, %c0_254, %c0_255] : memref<16x8x32xbf16, #tpu.memory_space<vmem>>, vector<1x8x32xbf16>
    %289 = vector.shape_cast %288 : vector<1x8x32xbf16> to vector<8x32xbf16>
    %cst_256 = arith.constant dense<0.000000e+00> : vector<8x128xf32>
    %290 = tpu.matmul %289, %168, %cst_256 {dimension_numbers = #tpu.dot_dimension_numbers<[1], [0], [0], [1], [0, 0, 1, 1], [], []>} : vector<8x32xbf16>, vector<32x128xbf16>, vector<8x128xf32> -> vector<8x128xf32>
    %291 = arith.truncf %290 : vector<8x128xf32> to vector<8x128xbf16>
    %c15_257 = arith.constant 15 : index
    %c0_258 = arith.constant 0 : index
    %c0_259 = arith.constant 0 : index
    %292 = vector.load %arg9[%c15_257, %c0_258, %c0_259] : memref<16x128x256xbf16, #tpu.memory_space<vmem>>, vector<1x128x256xbf16>
    %293 = vector.shape_cast %292 : vector<1x128x256xbf16> to vector<128x256xbf16>
    %cst_260 = arith.constant dense<0.000000e+00> : vector<8x256xf32>
    %294 = tpu.matmul %291, %293, %cst_260 {dimension_numbers = #tpu.dot_dimension_numbers<[1], [0], [0], [1], [0, 0, 1, 1], [], []>} : vector<8x128xbf16>, vector<128x256xbf16>, vector<8x256xf32> -> vector<8x256xf32>
    %295 = arith.addf %287, %294 : vector<8x256xf32>
    %c0_261 = arith.constant 0 : index
    %c0_262 = arith.constant 0 : index
    %296 = vector.load %arg10[%c0_261, %c0_262] : memref<1x256xf32, #tpu.memory_space<vmem>>, vector<1x256xf32>
    %297 = vector.broadcast %296 : vector<1x256xf32> to vector<8x256xf32>
    %298 = arith.addf %295, %297 : vector<8x256xf32>
    %cst_263 = arith.constant dense<0.000000e+00> : vector<256xf32>
    %299 = vector.multi_reduction <add>, %298, %cst_263 [0] : vector<8x256xf32> to vector<256xf32>
    %300 = vector.shape_cast %299 : vector<256xf32> to vector<1x256xf32>
    %cst_264 = arith.constant 1.250000e-01 : f32
    %301 = vector.broadcast %cst_264 : f32 to vector<1x256xf32>
    %302 = arith.mulf %300, %301 : vector<1x256xf32>
    %303 = vector.broadcast %302 : vector<1x256xf32> to vector<8x256xf32>
    %304 = arith.subf %298, %303 : vector<8x256xf32>
    %305 = arith.mulf %304, %304 : vector<8x256xf32>
    %cst_265 = arith.constant dense<0.000000e+00> : vector<256xf32>
    %306 = vector.multi_reduction <add>, %305, %cst_265 [0] : vector<8x256xf32> to vector<256xf32>
    %307 = vector.shape_cast %306 : vector<256xf32> to vector<1x256xf32>
    %cst_266 = arith.constant 1.250000e-01 : f32
    %308 = vector.broadcast %cst_266 : f32 to vector<1x256xf32>
    %309 = arith.mulf %307, %308 : vector<1x256xf32>
    %c0_267 = arith.constant 0 : index
    %c0_268 = arith.constant 0 : index
    %310 = vector.load %arg11[%c0_267, %c0_268] : memref<1x256xf32, #tpu.memory_space<vmem>>, vector<1x256xf32>
    %cst_269 = arith.constant 9.99999974E-6 : f32
    %311 = vector.broadcast %cst_269 : f32 to vector<1x256xf32>
    %312 = arith.addf %309, %311 : vector<1x256xf32>
    %313 = math.rsqrt %312 : vector<1x256xf32>
    %314 = arith.mulf %310, %313 : vector<1x256xf32>
    %315 = vector.broadcast %314 : vector<1x256xf32> to vector<8x256xf32>
    %316 = arith.mulf %304, %315 : vector<8x256xf32>
    %c0_270 = arith.constant 0 : index
    %c0_271 = arith.constant 0 : index
    %317 = vector.load %arg12[%c0_270, %c0_271] : memref<1x256xf32, #tpu.memory_space<vmem>>, vector<1x256xf32>
    %318 = vector.broadcast %317 : vector<1x256xf32> to vector<8x256xf32>
    %319 = arith.addf %316, %318 : vector<8x256xf32>
    %cst_272 = arith.constant 0.000000e+00 : f32
    %320 = vector.broadcast %cst_272 : f32 to vector<8x256xf32>
    %321 = arith.cmpf oge, %319, %320 : vector<8x256xf32>
    %cst_273 = arith.constant 2.000000e-01 : f32
    %322 = vector.broadcast %cst_273 : f32 to vector<8x256xf32>
    %323 = arith.mulf %322, %319 : vector<8x256xf32>
    %324 = arith.select %321, %319, %323 : vector<8x256xi1>, vector<8x256xf32>
    %325 = arith.truncf %324 : vector<8x256xf32> to vector<8x256xbf16>
    %c0_274 = arith.constant 0 : index
    %c0_275 = arith.constant 0 : index
    %c0_276 = arith.constant 0 : index
    %326 = vector.load %arg13[%c0_274, %c0_275, %c0_276] : memref<4x2x8xbf16, #tpu.memory_space<vmem>>, vector<1x2x8xbf16>
    %327 = vector.shape_cast %326 : vector<1x2x8xbf16> to vector<2x8xbf16>
    %cst_277 = arith.constant dense<0.000000e+00> : vector<2x256xf32>
    %328 = tpu.matmul %327, %325, %cst_277 {dimension_numbers = #tpu.dot_dimension_numbers<[1], [0], [0], [1], [0, 0, 1, 1], [], []>} : vector<2x8xbf16>, vector<8x256xbf16>, vector<2x256xf32> -> vector<2x256xf32>
    %329 = arith.truncf %328 : vector<2x256xf32> to vector<2x256xbf16>
    %c0_278 = arith.constant 0 : index
    %c0_279 = arith.constant 0 : index
    %c0_280 = arith.constant 0 : index
    %330 = vector.load %arg14[%c0_278, %c0_279, %c0_280] : memref<4x256x512xbf16, #tpu.memory_space<vmem>>, vector<1x256x512xbf16>
    %331 = vector.shape_cast %330 : vector<1x256x512xbf16> to vector<256x512xbf16>
    %cst_281 = arith.constant dense<0.000000e+00> : vector<2x512xf32>
    %332 = tpu.matmul %329, %331, %cst_281 {dimension_numbers = #tpu.dot_dimension_numbers<[1], [0], [0], [1], [0, 0, 1, 1], [], []>} : vector<2x256xbf16>, vector<256x512xbf16>, vector<2x512xf32> -> vector<2x512xf32>
    %c1_282 = arith.constant 1 : index
    %c0_283 = arith.constant 0 : index
    %c0_284 = arith.constant 0 : index
    %333 = vector.load %arg13[%c1_282, %c0_283, %c0_284] : memref<4x2x8xbf16, #tpu.memory_space<vmem>>, vector<1x2x8xbf16>
    %334 = vector.shape_cast %333 : vector<1x2x8xbf16> to vector<2x8xbf16>
    %cst_285 = arith.constant dense<0.000000e+00> : vector<2x256xf32>
    %335 = tpu.matmul %334, %325, %cst_285 {dimension_numbers = #tpu.dot_dimension_numbers<[1], [0], [0], [1], [0, 0, 1, 1], [], []>} : vector<2x8xbf16>, vector<8x256xbf16>, vector<2x256xf32> -> vector<2x256xf32>
    %336 = arith.truncf %335 : vector<2x256xf32> to vector<2x256xbf16>
    %c1_286 = arith.constant 1 : index
    %c0_287 = arith.constant 0 : index
    %c0_288 = arith.constant 0 : index
    %337 = vector.load %arg14[%c1_286, %c0_287, %c0_288] : memref<4x256x512xbf16, #tpu.memory_space<vmem>>, vector<1x256x512xbf16>
    %338 = vector.shape_cast %337 : vector<1x256x512xbf16> to vector<256x512xbf16>
    %cst_289 = arith.constant dense<0.000000e+00> : vector<2x512xf32>
    %339 = tpu.matmul %336, %338, %cst_289 {dimension_numbers = #tpu.dot_dimension_numbers<[1], [0], [0], [1], [0, 0, 1, 1], [], []>} : vector<2x256xbf16>, vector<256x512xbf16>, vector<2x512xf32> -> vector<2x512xf32>
    %340 = arith.addf %332, %339 : vector<2x512xf32>
    %c2_290 = arith.constant 2 : index
    %c0_291 = arith.constant 0 : index
    %c0_292 = arith.constant 0 : index
    %341 = vector.load %arg13[%c2_290, %c0_291, %c0_292] : memref<4x2x8xbf16, #tpu.memory_space<vmem>>, vector<1x2x8xbf16>
    %342 = vector.shape_cast %341 : vector<1x2x8xbf16> to vector<2x8xbf16>
    %cst_293 = arith.constant dense<0.000000e+00> : vector<2x256xf32>
    %343 = tpu.matmul %342, %325, %cst_293 {dimension_numbers = #tpu.dot_dimension_numbers<[1], [0], [0], [1], [0, 0, 1, 1], [], []>} : vector<2x8xbf16>, vector<8x256xbf16>, vector<2x256xf32> -> vector<2x256xf32>
    %344 = arith.truncf %343 : vector<2x256xf32> to vector<2x256xbf16>
    %c2_294 = arith.constant 2 : index
    %c0_295 = arith.constant 0 : index
    %c0_296 = arith.constant 0 : index
    %345 = vector.load %arg14[%c2_294, %c0_295, %c0_296] : memref<4x256x512xbf16, #tpu.memory_space<vmem>>, vector<1x256x512xbf16>
    %346 = vector.shape_cast %345 : vector<1x256x512xbf16> to vector<256x512xbf16>
    %cst_297 = arith.constant dense<0.000000e+00> : vector<2x512xf32>
    %347 = tpu.matmul %344, %346, %cst_297 {dimension_numbers = #tpu.dot_dimension_numbers<[1], [0], [0], [1], [0, 0, 1, 1], [], []>} : vector<2x256xbf16>, vector<256x512xbf16>, vector<2x512xf32> -> vector<2x512xf32>
    %348 = arith.addf %340, %347 : vector<2x512xf32>
    %c3_298 = arith.constant 3 : index
    %c0_299 = arith.constant 0 : index
    %c0_300 = arith.constant 0 : index
    %349 = vector.load %arg13[%c3_298, %c0_299, %c0_300] : memref<4x2x8xbf16, #tpu.memory_space<vmem>>, vector<1x2x8xbf16>
    %350 = vector.shape_cast %349 : vector<1x2x8xbf16> to vector<2x8xbf16>
    %cst_301 = arith.constant dense<0.000000e+00> : vector<2x256xf32>
    %351 = tpu.matmul %350, %325, %cst_301 {dimension_numbers = #tpu.dot_dimension_numbers<[1], [0], [0], [1], [0, 0, 1, 1], [], []>} : vector<2x8xbf16>, vector<8x256xbf16>, vector<2x256xf32> -> vector<2x256xf32>
    %352 = arith.truncf %351 : vector<2x256xf32> to vector<2x256xbf16>
    %c3_302 = arith.constant 3 : index
    %c0_303 = arith.constant 0 : index
    %c0_304 = arith.constant 0 : index
    %353 = vector.load %arg14[%c3_302, %c0_303, %c0_304] : memref<4x256x512xbf16, #tpu.memory_space<vmem>>, vector<1x256x512xbf16>
    %354 = vector.shape_cast %353 : vector<1x256x512xbf16> to vector<256x512xbf16>
    %cst_305 = arith.constant dense<0.000000e+00> : vector<2x512xf32>
    %355 = tpu.matmul %352, %354, %cst_305 {dimension_numbers = #tpu.dot_dimension_numbers<[1], [0], [0], [1], [0, 0, 1, 1], [], []>} : vector<2x256xbf16>, vector<256x512xbf16>, vector<2x512xf32> -> vector<2x512xf32>
    %356 = arith.addf %348, %355 : vector<2x512xf32>
    %c0_306 = arith.constant 0 : index
    %c0_307 = arith.constant 0 : index
    %357 = vector.load %arg15[%c0_306, %c0_307] : memref<1x512xf32, #tpu.memory_space<vmem>>, vector<1x512xf32>
    %358 = vector.broadcast %357 : vector<1x512xf32> to vector<2x512xf32>
    %359 = arith.addf %356, %358 : vector<2x512xf32>
    %cst_308 = arith.constant dense<0.000000e+00> : vector<512xf32>
    %360 = vector.multi_reduction <add>, %359, %cst_308 [0] : vector<2x512xf32> to vector<512xf32>
    %361 = vector.shape_cast %360 : vector<512xf32> to vector<1x512xf32>
    %cst_309 = arith.constant 5.000000e-01 : f32
    %362 = vector.broadcast %cst_309 : f32 to vector<1x512xf32>
    %363 = arith.mulf %361, %362 : vector<1x512xf32>
    %364 = vector.broadcast %363 : vector<1x512xf32> to vector<2x512xf32>
    %365 = arith.subf %359, %364 : vector<2x512xf32>
    %366 = arith.mulf %365, %365 : vector<2x512xf32>
    %cst_310 = arith.constant dense<0.000000e+00> : vector<512xf32>
    %367 = vector.multi_reduction <add>, %366, %cst_310 [0] : vector<2x512xf32> to vector<512xf32>
    %368 = vector.shape_cast %367 : vector<512xf32> to vector<1x512xf32>
    %cst_311 = arith.constant 5.000000e-01 : f32
    %369 = vector.broadcast %cst_311 : f32 to vector<1x512xf32>
    %370 = arith.mulf %368, %369 : vector<1x512xf32>
    %c0_312 = arith.constant 0 : index
    %c0_313 = arith.constant 0 : index
    %371 = vector.load %arg16[%c0_312, %c0_313] : memref<1x512xf32, #tpu.memory_space<vmem>>, vector<1x512xf32>
    %cst_314 = arith.constant 9.99999974E-6 : f32
    %372 = vector.broadcast %cst_314 : f32 to vector<1x512xf32>
    %373 = arith.addf %370, %372 : vector<1x512xf32>
    %374 = math.rsqrt %373 : vector<1x512xf32>
    %375 = arith.mulf %371, %374 : vector<1x512xf32>
    %376 = vector.broadcast %375 : vector<1x512xf32> to vector<2x512xf32>
    %377 = arith.mulf %365, %376 : vector<2x512xf32>
    %c0_315 = arith.constant 0 : index
    %c0_316 = arith.constant 0 : index
    %378 = vector.load %arg17[%c0_315, %c0_316] : memref<1x512xf32, #tpu.memory_space<vmem>>, vector<1x512xf32>
    %379 = vector.broadcast %378 : vector<1x512xf32> to vector<2x512xf32>
    %380 = arith.addf %377, %379 : vector<2x512xf32>
    %cst_317 = arith.constant 0.000000e+00 : f32
    %381 = vector.broadcast %cst_317 : f32 to vector<2x512xf32>
    %382 = arith.cmpf oge, %380, %381 : vector<2x512xf32>
    %cst_318 = arith.constant 2.000000e-01 : f32
    %383 = vector.broadcast %cst_318 : f32 to vector<2x512xf32>
    %384 = arith.mulf %383, %380 : vector<2x512xf32>
    %385 = arith.select %382, %380, %384 : vector<2x512xi1>, vector<2x512xf32>
    %386 = arith.truncf %385 : vector<2x512xf32> to vector<2x512xbf16>
    %c0_319 = arith.constant 0 : index
    %c0_320 = arith.constant 0 : index
    %c0_321 = arith.constant 0 : index
    %387 = vector.load %arg19[%c0_319, %c0_320, %c0_321] : memref<1x512x128xbf16, #tpu.memory_space<vmem>>, vector<1x512x128xbf16>
    %388 = vector.shape_cast %387 : vector<1x512x128xbf16> to vector<512x128xbf16>
    %cst_322 = arith.constant dense<0.000000e+00> : vector<2x128xf32>
    %389 = tpu.matmul %386, %388, %cst_322 {dimension_numbers = #tpu.dot_dimension_numbers<[1], [0], [0], [1], [0, 0, 1, 1], [], []>} : vector<2x512xbf16>, vector<512x128xbf16>, vector<2x128xf32> -> vector<2x128xf32>
    %c0_323 = arith.constant 0 : index
    %c0_324 = arith.constant 0 : index
    %390 = vector.load %arg20[%c0_323, %c0_324] : memref<1x128xf32, #tpu.memory_space<vmem>>, vector<1x128xf32>
    %391 = vector.broadcast %390 : vector<1x128xf32> to vector<2x128xf32>
    %392 = arith.addf %389, %391 : vector<2x128xf32>
    %cst_325 = arith.constant 0.000000e+00 : f32
    %393 = vector.broadcast %cst_325 : f32 to vector<2x128xf32>
    %394 = arith.subf %393, %392 : vector<2x128xf32>
    %395 = math.exp %394 : vector<2x128xf32>
    %cst_326 = arith.constant 1.000000e+00 : f32
    %396 = vector.broadcast %cst_326 : f32 to vector<2x128xf32>
    %397 = arith.addf %396, %395 : vector<2x128xf32>
    %cst_327 = arith.constant 1.000000e+00 : f32
    %398 = vector.broadcast %cst_327 : f32 to vector<2x128xf32>
    %399 = arith.divf %398, %397 : vector<2x128xf32>
    %c0_328 = arith.constant 0 : index
    %c0_329 = arith.constant 0 : index
    %400 = vector.load %arg21[%c0_328, %c0_329] : memref<2x128xf32, #tpu.memory_space<vmem>>, vector<2x128xf32>
    tpu.vector_store %arg21[%c0_328, %c0_329], %399 {strides = array<i32>} : memref<2x128xf32, #tpu.memory_space<vmem>>, vector<2x128xf32>,
    return
  }
}

</mosaic_0001>

<bundles_post_ra>
// kernel: forward.1
= control target key start
LH: loop header
LB: loop body
LE: loop exit
PB: predicated region body
PF: predicated region fallthrough
CT: control target
= control target key end

     0   :  { %vm140_vm0 = vcmask 130048   ;;  %s14846_s1 = inlined_call_operand.vmem [shape: bf16[16,64], index: 1, kind: input, shape index: {}]   ;;  %s14847_s18 = inlined_call_operand.vmem [shape: bf16[1,2,2], index: 18, kind: input, shape index: {}]   ;;  %s14848_s0 = inlined_call_operand.vmem [shape: bf16[128,16], index: 0, kind: input, shape index: {}]   ;;  %s14849_s3 = inlined_call_operand.vmem [shape: bf16[16,32,128], index: 3, kind: input, shape index: {}]   ;;  %s14850_s2 = inlined_call_operand.vmem [shape: f32[1,64], index: 2, kind: input, shape index: {}]   ;;  %s14851_s4 = inlined_call_operand.vmem [shape: bf16[16,64,128], index: 4, kind: input, shape index: {}]   ;;  %s14852_s9 = inlined_call_operand.vmem [shape: bf16[16,128,256], index: 9, kind: input, shape index: {}]   ;;  %s14853_s5 = inlined_call_operand.vmem [shape: f32[1,128], index: 5, kind: input, shape index: {}]   ;;  %s14854_s6 = inlined_call_operand.vmem [shape: f32[1,128], index: 6, kind: input, shape index: {}]   ;;  %s14855_s7 = inlined_call_operand.vmem [shape: f32[1,128], index: 7, kind: input, shape index: {}]   ;;  %s14856_s8 = inlined_call_operand.vmem [shape: bf16[16,8,32], index: 8, kind: input, shape index: {}]   ;;  %s14857_s14 = inlined_call_operand.vmem [shape: bf16[4,256,512], index: 14, kind: input, shape index: {}]   ;;  %s14858_s10 = inlined_call_operand.vmem [shape: f32[1,256], index: 10, kind: input, shape index: {}]   ;;  %s14859_s11 = inlined_call_operand.vmem [shape: f32[1,256], index: 11, kind: input, shape index: {}]   ;;  %s14860_s12 = inlined_call_operand.vmem [shape: f32[1,256], index: 12, kind: input, shape index: {}]   ;;  %s14861_s13 = inlined_call_operand.vmem [shape: bf16[4,2,8], index: 13, kind: input, shape index: {}]   ;;  %s14862_s19 = inlined_call_operand.vmem [shape: bf16[1,512,128], index: 19, kind: input, shape index: {}]   ;;  %s14863_s15 = inlined_call_operand.vmem [shape: f32[1,512], index: 15, kind: input, shape index: {}]   ;;  %s14864_s16 = inlined_call_operand.vmem [shape: f32[1,512], index: 16, kind: input, shape index: {}]   ;;  %s14865_s17 = inlined_call_operand.vmem [shape: f32[1,512], index: 17, kind: input, shape index: {}]   ;;  %s14866_s20 = inlined_call_operand.vmem [shape: f32[1,128], index: 20, kind: input, shape index: {}]   ;;  %s14867_s21 = inlined_call_operand.vmem [shape: f32[2,128], index: 21, kind: output, shape index: {}]  }
   0x1   :  { %14871 = sst [smem:[#allocation2_spill]] %s14846_s1 }
   0x2   :  { %14872 = sst [smem:[#allocation3_spill]] %s14848_s0  ;;  %s14876_s26 = sld [smem:[#allocation2_spill]] }
   0x3   :  { %14873 = sst [smem:[#allocation4_spill]] %s14849_s3  ;;  %s14877_s28 = sld [smem:[#allocation3_spill]] }
   0x4   :  { %14874 = sst [smem:[#allocation5_spill]] %s14850_s2  ;;  %s14878_s2 = sld [smem:[#allocation4_spill]] }
   0x5   :  { %14875 = sst [smem:[#allocation6_spill]] %s14851_s4  ;;  %s14879_s18 = sld [smem:[#allocation5_spill]] }
   0x6   :  { %s14880_s0 = sld [smem:[#allocation6_spill]] }
   0x8   :  { %v11082_v0 = vld [vmem:[%s14876_s26] sm:$0xff]  }
   0x9   :  { %v11083_v1 = vld [vmem:[%s14877_s28] sm:$0xff]   ;;  %10360 = vmatprep.subr.bf16.mxu0 %v11082_v0  ;;  %v11084_v2 = vld [vmem:[%s14877_s28 + $0x8] sm:$0xff]   ;;  %v11085_v3 = vld [vmem:[%s14877_s28 + $0x10] sm:$0xff]  }
   0xa   :  { %10361 = vmatpush3.bf16.msra.mxu0 %v11082_v0  ;;  %10362 = vmatprep.mubr.msk.bf16.mxu0 %vm140_vm0, %v11083_v1  ;;  %v11086_v4 = vld [vmem:[%s14877_s28 + $0x18] sm:$0xff]   ;;  %v11087_v5 = vld [vmem:[%s14877_s28 + $0x20] sm:$0xff]   ;;  %v11088_v6 = vld [vmem:[%s14877_s28 + $0x28] sm:$0xff]  }
   0xb   :  { %v11089_v7 = vld [vmem:[%s14877_s28 + $0x30] sm:$0xff]   ;;  %v11090_v8 = vld [vmem:[%s14877_s28 + $0x38] sm:$0xff]   ;;  %v11093_v10 = vld [vmem:[%s14878_s2] sm:$0xff]  }
   0xc   :  { %v11091_v9 = vld [vmem:[%s14878_s2 + $0x10] sm:$0xff]   ;;  %10394 = vmatprep.mubr.bf16.mxu1 %v11093_v10  ;;  %v12163_v11 = vld [vmem:[%s14879_s18] ss:$0 sm:$0xff] }
   0xd   :  { %10363 = vmatmul.mubr.msk.bf16.vlgmr.msra.gmra.mrb[0].mxu0 %vm140_vm0, %v11084_v2 }
   0xe   :  { %10366 = vmatprep.mubr.msk.bf16.mxu0 %vm140_vm0, %v11085_v3 }
  0x15   :  { %10367 = vmatmul.mubr.msk.bf16.gmra.mrb[4].mxu0 %vm140_vm0, %v11086_v4 }
  0x16   :  { %10370 = vmatprep.mubr.msk.bf16.mxu0 %vm140_vm0, %v11087_v5 }
  0x1d   :  { %10371 = vmatmul.mubr.msk.bf16.gmra.mrb[8].mxu0 %vm140_vm0, %v11088_v6 }
  0x1e   :  { %10374 = vmatprep.mubr.msk.bf16.mxu0 %vm140_vm0, %v11089_v7 }
  0x25   :  { %10375 = vmatmul.mubr.msk.bf16.gmra.mrb[12].mxu0 %vm140_vm0, %v11090_v8 }
  0x26   :  { %10414 = vmatprep.mubr.bf16.mxu0 %v11091_v9 }
  0xe0   :  { %v10364_v12 = vpop.f32.mrb[0].mxu0 }
  0xe1   :  { %v208_v13 = vadd.f32 %v10364_v12, %v12163_v11  ;;  %v199_v14 = vpop.f32.mrb[1].mxu0 }
  0xe2   :  { %v200_v15 = vadd.f32 %v12163_v11, %v199_v14  ;;  %v10365_v16 = vpop.f32.mrb[2].mxu0 }
  0xe3   :  { %v280_v17 = vmul.f32 0.2, %v208_v13  ;;  %v211_v18 = vadd.f32 %v10365_v16, %v12163_v11  ;;  %v202_v19 = vpop.f32.mrb[3].mxu0  ;;  %vm264_vm1 = vcmp.ge.f32.partialorder %v208_v13, 0.0 }
  0xe4   :  { %v278_v20 = vmul.f32 0.2, %v200_v15  ;;  %v203_v21 = vadd.f32 %v12163_v11, %v202_v19  ;;  %vm262_vm2 = vcmp.ge.f32.partialorder %v200_v15, 0.0 }
  0xe5   :  { %vm265_vm3 = vcmp.ge.f32.partialorder %v211_v18, 0.0  ;;  %v281_v22 = vmul.f32 0.2, %v211_v18  ;;  %v296_v24 = vsel %vm264_vm1, %v208_v13, %v280_v17  ;;  %vm494_vm1 = vcmask 523264  }
  0xe6   :  { %vm263_vm4 = vcmp.ge.f32.partialorder %v203_v21, 0.0  ;;  %v279_v23 = vmul.f32 0.2, %v203_v21  ;;  %v294_v26 = vsel %vm262_vm2, %v200_v15, %v278_v20  ;;  %v11092_v20 = vld [vmem:[%s14878_s2 + $0x18] sm:$0xff]   ;;  %vm12006_vm2 = vmmov 0  }
  0xe7   :  { %v297_v25 = vsel %vm265_vm3, %v211_v18, %v281_v22  ;;  %v11095_v22 = vld [vmem:[%s14878_s2 + $0x20] sm:$0xff]  }
  0xe8   :  { %v12169_v27 = vpack.c.bf16 %v297_v25, %v296_v24  ;;  %v295_v28 = vsel %vm263_vm4, %v203_v21, %v279_v23  ;;  %v10368_v29 = vpop.f32.mrb[4].mxu0  ;;  %v11094_v21 = vld [vmem:[%s14878_s2 + $0x8] sm:$0xff]   ;;  %v11097_v24 = vld [vmem:[%s14878_s2 + $0x30] sm:$0xff]   ;;  %v11098_v25 = vld [vmem:[%s14878_s2 + $0x38] sm:$0xff]  }
  0xe9   :  { %v12171_v30 = vpack.c.bf16 %v295_v28, %v294_v26  ;;  %v224_v31 = vadd.f32 %v10368_v29, %v12163_v11  ;;  %v215_v32 = vpop.f32.mrb[5].mxu0  ;;  %v11096_v23 = vld [vmem:[%s14878_s2 + $0x28] sm:$0xff]   ;;  %v11099_v26 = vld [vmem:[%s14878_s2 + $0x50] sm:$0xff]   ;;  %v11107_v28 = vld [vmem:[%s14880_s0 + $0x20] sm:$0xff]  }
  0xea   :  { %v216_v33 = vadd.f32 %v12163_v11, %v215_v32  ;;  %v10369_v34 = vpop.f32.mrb[6].mxu0  ;;  %v11108_v29 = vld [vmem:[%s14880_s0 + $0x28] sm:$0xff]   ;;  %v11110_v32 = vld [vmem:[%s14880_s0 + $0x38] sm:$0xff]  }
  0xeb   :  { %v284_v35 = vmul.f32 0.2, %v224_v31  ;;  %v227_v36 = vadd.f32 %v10369_v34, %v12163_v11  ;;  %v218_v37 = vpop.f32.mrb[7].mxu0  ;;  %10378 = vmatprep.subr.bf16.mxu1 %v12171_v30  ;;  %10398 = vmatprep.subr.bf16.mxu0 %v12171_v30  ;;  %vm268_vm5 = vcmp.ge.f32.partialorder %v224_v31, 0.0  ;;  %v11100_v34 = vld [vmem:[%s14878_s2 + $0x58] sm:$0xff]  }
  0xec   :  { %v282_v38 = vmul.f32 0.2, %v216_v33  ;;  %v219_v39 = vadd.f32 %v12163_v11, %v218_v37  ;;  %10379 = vmatpush3.bf16.msra.mxu1 %v12171_v30  ;;  %10399 = vmatpush3.bf16.msra.mxu0 %v12171_v30  ;;  %vm266_vm6 = vcmp.ge.f32.partialorder %v216_v33, 0.0  ;;  %v11103_v37 = vld [vmem:[%s14878_s2 + $0x70] sm:$0xff]  }
  0xed   :  { %vm269_vm7 = vcmp.ge.f32.partialorder %v227_v36, 0.0  ;;  %v285_v40 = vmul.f32 0.2, %v227_v36  ;;  %10380 = vmatprep.subr.bf16.mxu1 %v12169_v27  ;;  %10400 = vmatprep.subr.bf16.mxu0 %v12169_v27  ;;  %v300_v42 = vsel %vm268_vm5, %v224_v31, %v284_v35  ;;  %v11109_v31 = vld [vmem:[%s14880_s0 + $0x30] sm:$0xff]   ;;  %v11101_v35 = vld [vmem:[%s14878_s2 + $0x60] sm:$0xff]  }
  0xee   :  { %vm267_vm8 = vcmp.ge.f32.partialorder %v219_v39, 0.0  ;;  %v283_v41 = vmul.f32 0.2, %v219_v39  ;;  %v298_v44 = vsel %vm266_vm6, %v216_v33, %v282_v38  ;;  %v12310_v33 = vld [vmem:[%s14880_s0] sm:$0xff]   ;;  %v11104_v38 = vld [vmem:[%s14878_s2 + $0x78] sm:$0xff]  }
  0xef   :  { %v301_v43 = vsel %vm269_vm7, %v227_v36, %v285_v40  ;;  %v11102_v36 = vld [vmem:[%s14878_s2 + $0x68] sm:$0xff]   ;;  %v11106_v40 = vld [vmem:[%s14878_s2 + $0x98] sm:$0xff]   ;;  %vm2948_vm7 = vcmask 261120  }
  0xf0   :  { %v12183_v45 = vpack.c.bf16 %v301_v43, %v300_v42  ;;  %v299_v46 = vsel %vm267_vm8, %v219_v39, %v283_v41  ;;  %v10372_v47 = vpop.f32.mrb[8].mxu0  ;;  %10381 = vmatpush3.bf16.msra.mxu1 %v12169_v27  ;;  %10401 = vmatpush3.bf16.msra.mxu0 %v12169_v27  ;;  %v11105_v39 = vld [vmem:[%s14878_s2 + $0x90] sm:$0xff]   ;;  %v11113_v41 = vld [vmem:[%s14878_s2 + $0xa0] sm:$0xff]  }
  0xf1   :  { %v12187_v48 = vpack.c.bf16 %v299_v46, %v298_v44  ;;  %v240_v49 = vadd.f32 %v10372_v47, %v12163_v11  ;;  %v231_v50 = vpop.f32.mrb[9].mxu0 }
  0xf2   :  { %v232_v51 = vadd.f32 %v12163_v11, %v231_v50  ;;  %v10373_v52 = vpop.f32.mrb[10].mxu0 }
  0xf3   :  { %v288_v53 = vmul.f32 0.2, %v240_v49  ;;  %v243_v54 = vadd.f32 %v10373_v52, %v12163_v11  ;;  %v234_v55 = vpop.f32.mrb[11].mxu0  ;;  %10382 = vmatprep.subr.bf16.mxu1 %v12187_v48  ;;  %10402 = vmatprep.subr.bf16.mxu0 %v12187_v48  ;;  %vm272_vm9 = vcmp.ge.f32.partialorder %v240_v49, 0.0 }
  0xf4   :  { %v286_v56 = vmul.f32 0.2, %v232_v51  ;;  %v235_v57 = vadd.f32 %v12163_v11, %v234_v55  ;;  %10383 = vmatpush3.bf16.msra.mxu1 %v12187_v48  ;;  %10403 = vmatpush3.bf16.msra.mxu0 %v12187_v48  ;;  %vm270_vm10 = vcmp.ge.f32.partialorder %v232_v51, 0.0 }
  0xf5   :  { %vm273_vm11 = vcmp.ge.f32.partialorder %v243_v54, 0.0  ;;  %v289_v58 = vmul.f32 0.2, %v243_v54  ;;  %10384 = vmatprep.subr.bf16.mxu1 %v12183_v45  ;;  %10404 = vmatprep.subr.bf16.mxu0 %v12183_v45  ;;  %v304_v60 = vsel %vm272_vm9, %v240_v49, %v288_v53 }
  0xf6   :  { %vm271_vm12 = vcmp.ge.f32.partialorder %v235_v57, 0.0  ;;  %v287_v59 = vmul.f32 0.2, %v235_v57  ;;  %v302_v62 = vsel %vm270_vm10, %v232_v51, %v286_v56  ;;  %v11112_v56 = vld [vmem:[%s14880_s0 + $0x8] sm:$0xff]   ;;  %vm6028_vm10 = vcmask 1043456  }
  0xf7   :  { %v305_v61 = vsel %vm273_vm11, %v243_v54, %v289_v58  ;;  %v11115_v58 = vld [vmem:[%s14878_s2 + $0xa8] sm:$0xff]   ;;  %vm6024_vm11 = vcmask 64512  }
  0xf8   :  { %v12199_v63 = vpack.c.bf16 %v305_v61, %v304_v60  ;;  %v303_v0 = vsel %vm271_vm12, %v235_v57, %v287_v59  ;;  %v10376_v1 = vpop.f32.mrb[12].mxu0  ;;  %10385 = vmatpush3.bf16.msra.mxu1 %v12183_v45  ;;  %10405 = vmatpush3.bf16.msra.mxu0 %v12183_v45  ;;  %v11114_v57 = vld [vmem:[%s14880_s0 + $0x10] sm:$0xff]   ;;  %v11116_v60 = vld [vmem:[%s14880_s0 + $0x18] sm:$0xff]   ;;  %v11117_v61 = vld [vmem:[%s14880_s0 + $0x40] sm:$0xff]   ;;  %vm8123_vm12 = vcmask 1041408  }
  0xf9   :  { %v12203_v2 = vpack.c.bf16 %v303_v0, %v302_v62  ;;  %v256_v3 = vadd.f32 %v10376_v1, %v12163_v11  ;;  %v247_v4 = vpop.f32.mrb[13].mxu0  ;;  %v11123_v59 = vld [vmem:[%s14878_s2 + $0xb0] sm:$0xff]   ;;  %v11118_v62 = vld [vmem:[%s14880_s0 + $0x48] sm:$0xff]   ;;  %v11120_v1 = vld [vmem:[%s14880_s0 + $0x58] sm:$0xff]  }
  0xfa   :  { %v248_v5 = vadd.f32 %v12163_v11, %v247_v4  ;;  %v10377_v6 = vpop.f32.mrb[14].mxu0  ;;  %v11119_v0 = vld [vmem:[%s14880_s0 + $0x50] sm:$0xff]  }
  0xfb   :  { %v292_v7 = vmul.f32 0.2, %v256_v3  ;;  %v259_v8 = vadd.f32 %v10377_v6, %v12163_v11  ;;  %v250_v9 = vpop.f32.mrb[15].mxu0  ;;  %10386 = vmatprep.subr.bf16.mxu1 %v12203_v2  ;;  %10406 = vmatprep.subr.bf16.mxu0 %v12203_v2  ;;  %vm276_vm13 = vcmp.ge.f32.partialorder %v256_v3, 0.0 }
  0xfc   :  { %v290_v10 = vmul.f32 0.2, %v248_v5  ;;  %v251_v12 = vadd.f32 %v12163_v11, %v250_v9  ;;  %10387 = vmatpush3.bf16.msra.mxu1 %v12203_v2  ;;  %10407 = vmatpush3.bf16.msra.mxu0 %v12203_v2  ;;  %vm274_vm14 = vcmp.ge.f32.partialorder %v248_v5, 0.0 }
  0xfd   :  { %vm277_vm15 = vcmp.ge.f32.partialorder %v259_v8, 0.0  ;;  %v293_v13 = vmul.f32 0.2, %v259_v8  ;;  %10388 = vmatprep.subr.bf16.mxu1 %v12199_v63  ;;  %10408 = vmatprep.subr.bf16.mxu0 %v12199_v63  ;;  %v308_v15 = vsel %vm276_vm13, %v256_v3, %v292_v7 }
  0xfe   :  { %vm275_vm0 = vcmp.ge.f32.partialorder %v251_v12, 0.0  ;;  %v291_v14 = vmul.f32 0.2, %v251_v12  ;;  %v306_v17 = vsel %vm274_vm14, %v248_v5, %v290_v10  ;;  %v11121_v5 = vld [vmem:[%s14880_s0 + $0x60] sm:$0xff]   ;;  %v11122_v10 = vld [vmem:[%s14880_s0 + $0x68] sm:$0xff]  }
  0xff   :  { %v309_v16 = vsel %vm277_vm15, %v259_v8, %v293_v13  ;;  %v11125_v13 = vld [vmem:[%s14878_s2 + $0xb8] sm:$0xff]  }
 0x100   :  { %v12215_v18 = vpack.c.bf16 %v309_v16, %v308_v15  ;;  %v307_v19 = vsel %vm275_vm0, %v251_v12, %v291_v14  ;;  %10389 = vmatpush3.bf16.msra.mxu1 %v12199_v63  ;;  %10409 = vmatpush3.bf16.msra.mxu0 %v12199_v63  ;;  %v11124_v12 = vld [vmem:[%s14880_s0 + $0x70] sm:$0xff]   ;;  %v11126_v15 = vld [vmem:[%s14880_s0 + $0x78] sm:$0xff]  }
 0x101   :  { %v12219_v11 = vpack.c.bf16 %v307_v19, %v306_v17  ;;  %v11127_v14 = vld [vmem:[%s14878_s2 + $0xd0] sm:$0xff]  }
 0x103   :  { %10390 = vmatprep.subr.bf16.mxu1 %v12219_v11  ;;  %10410 = vmatprep.subr.bf16.mxu0 %v12219_v11 }
 0x104   :  { %10391 = vmatpush3.bf16.msra.mxu1 %v12219_v11  ;;  %10411 = vmatpush3.bf16.msra.mxu0 %v12219_v11 }
 0x105   :  { %10392 = vmatprep.subr.bf16.mxu1 %v12215_v18  ;;  %10412 = vmatprep.subr.bf16.mxu0 %v12215_v18 }
 0x108   :  { %10393 = vmatpush3.bf16.msra.mxu1 %v12215_v18  ;;  %10413 = vmatpush3.bf16.msra.mxu0 %v12215_v18 }
 0x109   :  { %10442 = vmatprep.subr.bf16.mxu0 %v12171_v30  ;;  %10418 = vmatprep.subr.bf16.mxu1 %v11107_v28 }
 0x10b   :  { %10415 = vmatmul.mubr.bf16.vlgmr.msra.gmra.mrb[16].mxu0 %v11092_v20  ;;  %10395 = vmatmul.mubr.bf16.vlgmr.msra.gmra.mrb[0].mxu1 %v11094_v21 }
 0x10c   :  { %10443 = vmatpush3.bf16.msra.mxu0 %v12171_v30  ;;  %10458 = vmatprep.mubr.bf16.mxu0 %v11095_v22 }
 0x10d   :  { %10444 = vmatprep.subr.bf16.mxu0 %v12169_v27  ;;  %10419 = vmatpush3.bf16.msra.mxu1 %v11107_v28 }
 0x10e   :  { %10420 = vmatprep.subr.bf16.mxu1 %v11108_v29 }
 0x110   :  { %10445 = vmatpush3.bf16.msra.mxu0 %v12169_v27 }
 0x111   :  { %10446 = vmatprep.subr.bf16.mxu0 %v12187_v48  ;;  %10421 = vmatpush3.bf16.msra.mxu1 %v11108_v29  ;;  %v11133_v29 = vld [vmem:[%s14880_s0 + $0x80] sm:$0xff]  }
 0x112   :  { %10422 = vmatprep.subr.bf16.mxu1 %v11109_v31 }
 0x114   :  { %10447 = vmatpush3.bf16.msra.mxu0 %v12187_v48 }
 0x115   :  { %10448 = vmatprep.subr.bf16.mxu0 %v12183_v45  ;;  %10423 = vmatpush3.bf16.msra.mxu1 %v11109_v31 }
 0x116   :  { %10424 = vmatprep.subr.bf16.mxu1 %v11110_v32 }
 0x118   :  { %10449 = vmatpush3.bf16.msra.mxu0 %v12183_v45 }
 0x119   :  { %10450 = vmatprep.subr.bf16.mxu0 %v12203_v2  ;;  %10425 = vmatpush3.bf16.msra.mxu1 %v11110_v32  ;;  %v11130_v32 = vld [vmem:[%s14878_s2 + $0x48] sm:$0xff]  }
 0x11a   :  { %10430 = vmatprep.subr.bf16.mxu1 %v12310_v33 }
 0x11c   :  { %10451 = vmatpush3.bf16.msra.mxu0 %v12203_v2 }
 0x11d   :  { %10452 = vmatprep.subr.bf16.mxu0 %v12199_v63 }
 0x120   :  { %10453 = vmatpush3.bf16.msra.mxu0 %v12199_v63 }
 0x121   :  { %10454 = vmatprep.subr.bf16.mxu0 %v12219_v11 }
 0x124   :  { %10455 = vmatpush3.bf16.msra.mxu0 %v12219_v11 }
 0x125   :  { %10456 = vmatprep.subr.bf16.mxu0 %v12215_v18 }
 0x128   :  { %10457 = vmatpush3.bf16.msra.mxu0 %v12215_v18 }
 0x129   :  { %10474 = vmatprep.subr.bf16.mxu0 %v12171_v30 }
 0x12b   :  { %10459 = vmatmul.mubr.bf16.vlgmr.msra.gmra.mrb[20].mxu0 %v11096_v23  ;;  %v11129_v23 = vld [vmem:[%s14878_s2 + $0x40] sm:$0xff]  }
 0x12c   :  { %10475 = vmatpush3.bf16.msra.mxu0 %v12171_v30  ;;  %10490 = vmatprep.mubr.bf16.mxu0 %v11097_v24  ;;  %v11128_v24 = vld [vmem:[%s14878_s2 + $0xd8] sm:$0xff]  }
 0x12d   :  { %10476 = vmatprep.subr.bf16.mxu0 %v12169_v27 }
 0x130   :  { %10477 = vmatpush3.bf16.msra.mxu0 %v12169_v27 }
 0x131   :  { %10478 = vmatprep.subr.bf16.mxu0 %v12187_v48 }
 0x134   :  { %10479 = vmatpush3.bf16.msra.mxu0 %v12187_v48 }
 0x135   :  { %10480 = vmatprep.subr.bf16.mxu0 %v12183_v45 }
 0x138   :  { %10481 = vmatpush3.bf16.msra.mxu0 %v12183_v45 }
 0x139   :  { %10482 = vmatprep.subr.bf16.mxu0 %v12203_v2 }
 0x13c   :  { %10483 = vmatpush3.bf16.msra.mxu0 %v12203_v2 }
 0x13d   :  { %10484 = vmatprep.subr.bf16.mxu0 %v12199_v63 }
 0x140   :  { %10485 = vmatpush3.bf16.msra.mxu0 %v12199_v63 }
 0x141   :  { %10486 = vmatprep.subr.bf16.mxu0 %v12219_v11 }
 0x144   :  { %10487 = vmatpush3.bf16.msra.mxu0 %v12219_v11 }
 0x145   :  { %10488 = vmatprep.subr.bf16.mxu0 %v12215_v18 }
 0x148   :  { %10489 = vmatpush3.bf16.msra.mxu0 %v12215_v18 }
 0x149   :  { %10538 = vmatprep.subr.bf16.mxu0 %v12171_v30 }
 0x14b   :  { %10491 = vmatmul.mubr.bf16.vlgmr.msra.gmra.mrb[24].mxu0 %v11098_v25  ;;  %v11131_v25 = vld [vmem:[%s14878_s2 + $0xe0] sm:$0xff]  }
 0x14c   :  { %10539 = vmatpush3.bf16.msra.mxu0 %v12171_v30  ;;  %10554 = vmatprep.mubr.bf16.mxu0 %v11099_v26 }
 0x14d   :  { %10540 = vmatprep.subr.bf16.mxu0 %v12169_v27 }
 0x150   :  { %10541 = vmatpush3.bf16.msra.mxu0 %v12169_v27 }
 0x151   :  { %10542 = vmatprep.subr.bf16.mxu0 %v12187_v48 }
 0x154   :  { %10543 = vmatpush3.bf16.msra.mxu0 %v12187_v48 }
 0x155   :  { %10544 = vmatprep.subr.bf16.mxu0 %v12183_v45 }
 0x158   :  { %10545 = vmatpush3.bf16.msra.mxu0 %v12183_v45 }
 0x159   :  { %10546 = vmatprep.subr.bf16.mxu0 %v12203_v2 }
 0x15c   :  { %10547 = vmatpush3.bf16.msra.mxu0 %v12203_v2 }
 0x15d   :  { %10548 = vmatprep.subr.bf16.mxu0 %v12199_v63 }
 0x160   :  { %10549 = vmatpush3.bf16.msra.mxu0 %v12199_v63 }
 0x161   :  { %10550 = vmatprep.subr.bf16.mxu0 %v12219_v11 }
 0x164   :  { %10551 = vmatpush3.bf16.msra.mxu0 %v12219_v11 }
 0x165   :  { %10552 = vmatprep.subr.bf16.mxu0 %v12215_v18 }
 0x168   :  { %10553 = vmatpush3.bf16.msra.mxu0 %v12215_v18 }
 0x169   :  { %10570 = vmatprep.subr.bf16.mxu0 %v12171_v30 }
 0x16b   :  { %10555 = vmatmul.mubr.bf16.vlgmr.msra.gmra.mrb[28].mxu0 %v11100_v34 }
 0x16c   :  { %10571 = vmatpush3.bf16.msra.mxu0 %v12171_v30  ;;  %10586 = vmatprep.mubr.bf16.mxu0 %v11101_v35 }
 0x16d   :  { %10572 = vmatprep.subr.bf16.mxu0 %v12169_v27 }
 0x170   :  { %10573 = vmatpush3.bf16.msra.mxu0 %v12169_v27 }
 0x171   :  { %10574 = vmatprep.subr.bf16.mxu0 %v12187_v48 }
 0x174   :  { %10575 = vmatpush3.bf16.msra.mxu0 %v12187_v48 }
 0x175   :  { %10576 = vmatprep.subr.bf16.mxu0 %v12183_v45 }
 0x178   :  { %10577 = vmatpush3.bf16.msra.mxu0 %v12183_v45 }
 0x179   :  { %10578 = vmatprep.subr.bf16.mxu0 %v12203_v2 }
 0x17c   :  { %10579 = vmatpush3.bf16.msra.mxu0 %v12203_v2 }
 0x17d   :  { %10580 = vmatprep.subr.bf16.mxu0 %v12199_v63 }
 0x180   :  { %10581 = vmatpush3.bf16.msra.mxu0 %v12199_v63 }
 0x181   :  { %10582 = vmatprep.subr.bf16.mxu0 %v12219_v11 }
 0x184   :  { %10583 = vmatpush3.bf16.msra.mxu0 %v12219_v11 }
 0x185   :  { %10584 = vmatprep.subr.bf16.mxu0 %v12215_v18 }
 0x188   :  { %10585 = vmatpush3.bf16.msra.mxu0 %v12215_v18 }
 0x189   :  { %10602 = vmatprep.subr.bf16.mxu0 %v12171_v30 }
 0x18b   :  { %10587 = vmatmul.mubr.bf16.vlgmr.msra.gmra.mrb[32].mxu0 %v11102_v36  ;;  %v11134_v36 = vld [vmem:[%s14880_s0 + $0x88] sm:$0xff]  }
 0x18c   :  { %10603 = vmatpush3.bf16.msra.mxu0 %v12171_v30  ;;  %10618 = vmatprep.mubr.bf16.mxu0 %v11103_v37  ;;  %v11132_v37 = vld [vmem:[%s14878_s2 + $0xe8] sm:$0xff]  }
 0x18d   :  { %10604 = vmatprep.subr.bf16.mxu0 %v12169_v27 }
 0x190   :  { %10605 = vmatpush3.bf16.msra.mxu0 %v12169_v27 }
 0x191   :  { %10606 = vmatprep.subr.bf16.mxu0 %v12187_v48 }
 0x194   :  { %10607 = vmatpush3.bf16.msra.mxu0 %v12187_v48 }
 0x195   :  { %10608 = vmatprep.subr.bf16.mxu0 %v12183_v45 }
 0x198   :  { %10609 = vmatpush3.bf16.msra.mxu0 %v12183_v45 }
 0x199   :  { %10610 = vmatprep.subr.bf16.mxu0 %v12203_v2 }
 0x19c   :  { %10611 = vmatpush3.bf16.msra.mxu0 %v12203_v2 }
 0x19d   :  { %10612 = vmatprep.subr.bf16.mxu0 %v12199_v63 }
 0x1a0   :  { %10613 = vmatpush3.bf16.msra.mxu0 %v12199_v63 }
 0x1a1   :  { %10614 = vmatprep.subr.bf16.mxu0 %v12219_v11 }
 0x1a4   :  { %10615 = vmatpush3.bf16.msra.mxu0 %v12219_v11 }
 0x1a5   :  { %10616 = vmatprep.subr.bf16.mxu0 %v12215_v18 }
 0x1a8   :  { %10617 = vmatpush3.bf16.msra.mxu0 %v12215_v18 }
 0x1a9   :  { %10666 = vmatprep.subr.bf16.mxu0 %v12171_v30 }
 0x1ab   :  { %10619 = vmatmul.mubr.bf16.vlgmr.msra.gmra.mrb[36].mxu0 %v11104_v38  ;;  %v11135_v38 = vld [vmem:[%s14880_s0 + $0x90] sm:$0xff]  }
 0x1ac   :  { %10667 = vmatpush3.bf16.msra.mxu0 %v12171_v30  ;;  %10682 = vmatprep.mubr.bf16.mxu0 %v11105_v39  ;;  %v11136_v39 = vld [vmem:[%s14880_s0 + $0x98] sm:$0xff]  }
 0x1ad   :  { %10668 = vmatprep.subr.bf16.mxu0 %v12169_v27 }
 0x1b0   :  { %10669 = vmatpush3.bf16.msra.mxu0 %v12169_v27 }
 0x1b1   :  { %10670 = vmatprep.subr.bf16.mxu0 %v12187_v48 }
 0x1b4   :  { %10671 = vmatpush3.bf16.msra.mxu0 %v12187_v48 }
 0x1b5   :  { %10672 = vmatprep.subr.bf16.mxu0 %v12183_v45 }
 0x1b8   :  { %10673 = vmatpush3.bf16.msra.mxu0 %v12183_v45 }
 0x1b9   :  { %10674 = vmatprep.subr.bf16.mxu0 %v12203_v2 }
 0x1bc   :  { %10675 = vmatpush3.bf16.msra.mxu0 %v12203_v2 }
 0x1bd   :  { %10676 = vmatprep.subr.bf16.mxu0 %v12199_v63 }
 0x1c0   :  { %10677 = vmatpush3.bf16.msra.mxu0 %v12199_v63 }
 0x1c1   :  { %10678 = vmatprep.subr.bf16.mxu0 %v12219_v11 }
 0x1c4   :  { %10679 = vmatpush3.bf16.msra.mxu0 %v12219_v11 }
 0x1c5   :  { %10680 = vmatprep.subr.bf16.mxu0 %v12215_v18 }
 0x1c8   :  { %10681 = vmatpush3.bf16.msra.mxu0 %v12215_v18 }
 0x1c9   :  { %10698 = vmatprep.subr.bf16.mxu0 %v12171_v30 }
 0x1cb   :  { %10683 = vmatmul.mubr.bf16.vlgmr.msra.gmra.mrb[40].mxu0 %v11106_v40  ;;  %v11137_v40 = vld [vmem:[%s14880_s0 + $0xa0] sm:$0xff]  }
 0x1cc   :  { %10699 = vmatpush3.bf16.msra.mxu0 %v12171_v30  ;;  %10714 = vmatprep.mubr.bf16.mxu0 %v11113_v41 }
 0x1cd   :  { %10700 = vmatprep.subr.bf16.mxu0 %v12169_v27 }
 0x1d0   :  { %10701 = vmatpush3.bf16.msra.mxu0 %v12169_v27 }
 0x1d1   :  { %10702 = vmatprep.subr.bf16.mxu0 %v12187_v48 }
 0x1d4   :  { %10703 = vmatpush3.bf16.msra.mxu0 %v12187_v48 }
 0x1d5   :  { %10704 = vmatprep.subr.bf16.mxu0 %v12183_v45 }
 0x1d8   :  { %10705 = vmatpush3.bf16.msra.mxu0 %v12183_v45 }
 0x1d9   :  { %10706 = vmatprep.subr.bf16.mxu0 %v12203_v2 }
 0x1dc   :  { %10707 = vmatpush3.bf16.msra.mxu0 %v12203_v2 }
 0x1dd   :  { %10708 = vmatprep.subr.bf16.mxu0 %v12199_v63 }
 0x1de   :  { %v10416_v42 = vpop.f32.mrb[16].mxu0  ;;  %v10396_v43 = vpop.f32.mrb[0].mxu1 }
 0x1df   :  { %v444_v44 = vpop.f32.mrb[17].mxu0  ;;  %v368_v46 = vpop.f32.mrb[1].mxu1 }
 0x1e0   :  { %v10417_v47 = vpop.f32.mrb[18].mxu0  ;;  %10709 = vmatpush3.bf16.msra.mxu0 %v12199_v63  ;;  %v10397_v49 = vpop.f32.mrb[2].mxu1 }
 0x1e1   :  { %v460_v50 = vpack.c.bf16 %v10417_v47, %v10416_v42  ;;  %v447_v51 = vpop.f32.mrb[19].mxu0  ;;  %10710 = vmatprep.subr.bf16.mxu0 %v12219_v11  ;;  %v384_v52 = vpack.c.bf16 %v10397_v49, %v10396_v43  ;;  %v371_v53 = vpop.f32.mrb[3].mxu1 }
 0x1e2   :  { %v459_v54 = vpack.c.bf16 %v447_v51, %v444_v44  ;;  %v383_v55 = vpack.c.bf16 %v371_v53, %v368_v46 }
 0x1e4   :  { %10426 = vmatprep.mubr.msk.bf16.mxu1 %vm494_vm1, %v459_v54  ;;  %10711 = vmatpush3.bf16.msra.mxu0 %v12219_v11 }
 0x1e5   :  { %10427 = vmatmul.mubr.msk.bf16.vlgmr.msra.gmra.mrb[4].mxu1 %vm494_vm1, %v460_v50  ;;  %10712 = vmatprep.subr.bf16.mxu0 %v12215_v18 }
 0x1e6   :  { %10431 = vmatpush3.bf16.msra.mxu1 %v12310_v33  ;;  %10438 = vmatprep.mubr.msk.bf16.mxu1 %vm494_vm1, %v383_v55 }
 0x1e7   :  { %10432 = vmatprep.subr.bf16.mxu1 %v11112_v56 }
 0x1e8   :  { %10713 = vmatpush3.bf16.msra.mxu0 %v12215_v18 }
 0x1e9   :  { %10730 = vmatprep.subr.bf16.mxu0 %v12171_v30 }
 0x1ea   :  { %10433 = vmatpush3.bf16.msra.mxu1 %v11112_v56 }
 0x1eb   :  { %10434 = vmatprep.subr.bf16.mxu1 %v11114_v57  ;;  %10715 = vmatmul.mubr.bf16.vlgmr.msra.gmra.mrb[44].mxu0 %v11115_v58 }
 0x1ec   :  { %10731 = vmatpush3.bf16.msra.mxu0 %v12171_v30  ;;  %10746 = vmatprep.mubr.bf16.mxu0 %v11123_v59 }
 0x1ed   :  { %10732 = vmatprep.subr.bf16.mxu0 %v12169_v27 }
 0x1ee   :  { %10435 = vmatpush3.bf16.msra.mxu1 %v11114_v57 }
 0x1ef   :  { %10436 = vmatprep.subr.bf16.mxu1 %v11116_v60 }
 0x1f0   :  { %10733 = vmatpush3.bf16.msra.mxu0 %v12169_v27 }
 0x1f1   :  { %10734 = vmatprep.subr.bf16.mxu0 %v12187_v48 }
 0x1f2   :  { %10437 = vmatpush3.bf16.msra.mxu1 %v11116_v60 }
 0x1f3   :  { %10462 = vmatprep.subr.bf16.mxu1 %v11117_v61 }
 0x1f4   :  { %10735 = vmatpush3.bf16.msra.mxu0 %v12187_v48 }
 0x1f5   :  { %10439 = vmatmul.mubr.msk.bf16.vlgmr.msra.gmra.mrb[4].mxu1 %vm494_vm1, %v384_v52  ;;  %10736 = vmatprep.subr.bf16.mxu0 %v12183_v45 }
 0x1f6   :  { %10463 = vmatpush3.bf16.msra.mxu1 %v11117_v61 }
 0x1f7   :  { %10464 = vmatprep.subr.bf16.mxu1 %v11118_v62 }
 0x1f8   :  { %10737 = vmatpush3.bf16.msra.mxu0 %v12183_v45 }
 0x1f9   :  { %10738 = vmatprep.subr.bf16.mxu0 %v12203_v2 }
 0x1fa   :  { %10465 = vmatpush3.bf16.msra.mxu1 %v11118_v62 }
 0x1fb   :  { %10466 = vmatprep.subr.bf16.mxu1 %v11119_v0 }
 0x1fc   :  { %10739 = vmatpush3.bf16.msra.mxu0 %v12203_v2 }
 0x1fd   :  { %10740 = vmatprep.subr.bf16.mxu0 %v12199_v63 }
 0x1fe   :  { %10467 = vmatpush3.bf16.msra.mxu1 %v11119_v0  ;;  %v10460_v3 = vpop.f32.mrb[20].mxu0 }
 0x1ff   :  { %v680_v4 = vpop.f32.mrb[21].mxu0  ;;  %10468 = vmatprep.subr.bf16.mxu1 %v11120_v1 }
 0x200   :  { %v10461_v6 = vpop.f32.mrb[22].mxu0  ;;  %10741 = vmatpush3.bf16.msra.mxu0 %v12199_v63 }
 0x201   :  { %v696_v7 = vpack.c.bf16 %v10461_v6, %v10460_v3  ;;  %v683_v8 = vpop.f32.mrb[23].mxu0  ;;  %10742 = vmatprep.subr.bf16.mxu0 %v12219_v11  ;;  %v11139_v6 = vld [vmem:[%s14880_s0 + $0xb0] sm:$0xff]  }
 0x202   :  { %v695_v9 = vpack.c.bf16 %v683_v8, %v680_v4  ;;  %10469 = vmatpush3.bf16.msra.mxu1 %v11120_v1  ;;  %v11141_v8 = vld [vmem:[%s14880_s0 + $0xc0] sm:$0xff]  }
 0x203   :  { %10494 = vmatprep.subr.bf16.mxu1 %v11121_v5 }
 0x204   :  { %10470 = vmatprep.mubr.msk.bf16.mxu1 %vm494_vm1, %v695_v9  ;;  %10743 = vmatpush3.bf16.msra.mxu0 %v12219_v11  ;;  %v11142_v9 = vld [vmem:[%s14880_s0 + $0xc8] sm:$0xff]  }
 0x205   :  { %10471 = vmatmul.mubr.msk.bf16.vlgmr.msra.gmra.mrb[4].mxu1 %vm494_vm1, %v696_v7  ;;  %10744 = vmatprep.subr.bf16.mxu0 %v12215_v18  ;;  %v11140_v7 = vld [vmem:[%s14880_s0 + $0xb8] sm:$0xff]  }
 0x206   :  { %10495 = vmatpush3.bf16.msra.mxu1 %v11121_v5  ;;  %v11138_v5 = vld [vmem:[%s14880_s0 + $0xa8] sm:$0xff]  }
 0x207   :  { %10496 = vmatprep.subr.bf16.mxu1 %v11122_v10 }
 0x208   :  { %10745 = vmatpush3.bf16.msra.mxu0 %v12215_v18 }
 0x209   :  { %10794 = vmatprep.subr.bf16.mxu0 %v12171_v30 }
 0x20a   :  { %10497 = vmatpush3.bf16.msra.mxu1 %v11122_v10  ;;  %v11143_v10 = vld [vmem:[%s14880_s0 + $0xd0] sm:$0xff]  }
 0x20b   :  { %10498 = vmatprep.subr.bf16.mxu1 %v11124_v12  ;;  %10747 = vmatmul.mubr.bf16.vlgmr.msra.gmra.mrb[48].mxu0 %v11125_v13  ;;  %v11145_v13 = vld [vmem:[%s14880_s0 + $0xe0] sm:$0xff]  }
 0x20c   :  { %10795 = vmatpush3.bf16.msra.mxu0 %v12171_v30  ;;  %10810 = vmatprep.mubr.bf16.mxu0 %v11127_v14  ;;  %v11146_v14 = vld [vmem:[%s14880_s0 + $0xe8] sm:$0xff]  }
 0x20d   :  { %10796 = vmatprep.subr.bf16.mxu0 %v12169_v27 }
 0x20e   :  { %10499 = vmatpush3.bf16.msra.mxu1 %v11124_v12  ;;  %v11144_v12 = vld [vmem:[%s14880_s0 + $0xd8] sm:$0xff]  }
 0x20f   :  { %10500 = vmatprep.subr.bf16.mxu1 %v11126_v15 }
 0x210   :  { %10797 = vmatpush3.bf16.msra.mxu0 %v12169_v27 }
 0x211   :  { %10798 = vmatprep.subr.bf16.mxu0 %v12187_v48 }
 0x212   :  { %10501 = vmatpush3.bf16.msra.mxu1 %v11126_v15  ;;  %v11147_v15 = vld [vmem:[%s14880_s0 + $0xf0] sm:$0xff]  }
 0x213   :  { %10506 = vmatprep.subr.bf16.mxu1 %v12171_v30 }
 0x214   :  { %10799 = vmatpush3.bf16.msra.mxu0 %v12187_v48 }
 0x215   :  { %10800 = vmatprep.subr.bf16.mxu0 %v12183_v45 }
 0x218   :  { %10801 = vmatpush3.bf16.msra.mxu0 %v12183_v45 }
 0x219   :  { %10802 = vmatprep.subr.bf16.mxu0 %v12203_v2 }
 0x21c   :  { %10803 = vmatpush3.bf16.msra.mxu0 %v12203_v2 }
 0x21d   :  { %10804 = vmatprep.subr.bf16.mxu0 %v12199_v63 }
 0x21e   :  { %v10492_v16 = vpop.f32.mrb[24].mxu0 }
 0x21f   :  { %v840_v17 = vpop.f32.mrb[25].mxu0 }
 0x220   :  { %v10493_v19 = vpop.f32.mrb[26].mxu0  ;;  %10805 = vmatpush3.bf16.msra.mxu0 %v12199_v63 }
 0x221   :  { %v856_v20 = vpack.c.bf16 %v10493_v19, %v10492_v16  ;;  %v843_v21 = vpop.f32.mrb[27].mxu0  ;;  %10806 = vmatprep.subr.bf16.mxu0 %v12219_v11  ;;  %v11148_v16 = vld [vmem:[%s14880_s0 + $0xf8] sm:$0xff]   ;;  %v11151_v19 = vld [vmem:[%s14880_s0 + $0x100] sm:$0xff]  }
 0x222   :  { %v855_v22 = vpack.c.bf16 %v843_v21, %v840_v17  ;;  %v11149_v17 = vld [vmem:[%s14878_s2 + $0x80] sm:$0xff]   ;;  %v11152_v21 = vld [vmem:[%s14880_s0 + $0x108] sm:$0xff]  }
 0x224   :  { %10502 = vmatprep.mubr.msk.bf16.mxu1 %vm494_vm1, %v855_v22  ;;  %10807 = vmatpush3.bf16.msra.mxu0 %v12219_v11  ;;  %v11153_v22 = vld [vmem:[%s14880_s0 + $0x110] sm:$0xff]  }
 0x225   :  { %10503 = vmatmul.mubr.msk.bf16.vlgmr.msra.gmra.mrb[4].mxu1 %vm494_vm1, %v856_v20  ;;  %10808 = vmatprep.subr.bf16.mxu0 %v12215_v18  ;;  %v11150_v20 = vld [vmem:[%s14878_s2 + $0x88] sm:$0xff]  }
 0x226   :  { %10507 = vmatpush3.bf16.msra.mxu1 %v12171_v30  ;;  %10522 = vmatprep.mubr.bf16.mxu1 %v11129_v23  ;;  %v11154_v23 = vld [vmem:[%s14880_s0 + $0x118] sm:$0xff]  }
 0x227   :  { %10508 = vmatprep.subr.bf16.mxu1 %v12169_v27 }
 0x228   :  { %10809 = vmatpush3.bf16.msra.mxu0 %v12215_v18 }
 0x229   :  { %10826 = vmatprep.subr.bf16.mxu0 %v12171_v30 }
 0x22a   :  { %10509 = vmatpush3.bf16.msra.mxu1 %v12169_v27 }
 0x22b   :  { %10510 = vmatprep.subr.bf16.mxu1 %v12187_v48  ;;  %10811 = vmatmul.mubr.bf16.vlgmr.msra.gmra.mrb[52].mxu0 %v11128_v24  ;;  %v11155_v24 = vld [vmem:[%s14880_s0 + $0x120] sm:$0xff]  }
 0x22c   :  { %10827 = vmatpush3.bf16.msra.mxu0 %v12171_v30  ;;  %10842 = vmatprep.mubr.bf16.mxu0 %v11131_v25 }
 0x22d   :  { %10828 = vmatprep.subr.bf16.mxu0 %v12169_v27 }
 0x22e   :  { %10511 = vmatpush3.bf16.msra.mxu1 %v12187_v48 }
 0x22f   :  { %10512 = vmatprep.subr.bf16.mxu1 %v12183_v45 }
 0x230   :  { %10829 = vmatpush3.bf16.msra.mxu0 %v12169_v27 }
 0x231   :  { %10830 = vmatprep.subr.bf16.mxu0 %v12187_v48 }
 0x232   :  { %10513 = vmatpush3.bf16.msra.mxu1 %v12183_v45 }
 0x233   :  { %10514 = vmatprep.subr.bf16.mxu1 %v12203_v2 }
 0x234   :  { %10831 = vmatpush3.bf16.msra.mxu0 %v12187_v48 }
 0x235   :  { %10832 = vmatprep.subr.bf16.mxu0 %v12183_v45 }
 0x236   :  { %10515 = vmatpush3.bf16.msra.mxu1 %v12203_v2 }
 0x237   :  { %10516 = vmatprep.subr.bf16.mxu1 %v12199_v63 }
 0x238   :  { %10833 = vmatpush3.bf16.msra.mxu0 %v12183_v45 }
 0x239   :  { %10834 = vmatprep.subr.bf16.mxu0 %v12203_v2 }
 0x23a   :  { %10517 = vmatpush3.bf16.msra.mxu1 %v12199_v63 }
 0x23b   :  { %10518 = vmatprep.subr.bf16.mxu1 %v12219_v11 }
 0x23c   :  { %10835 = vmatpush3.bf16.msra.mxu0 %v12203_v2 }
 0x23d   :  { %10836 = vmatprep.subr.bf16.mxu0 %v12199_v63 }
 0x23e   :  { %10519 = vmatpush3.bf16.msra.mxu1 %v12219_v11  ;;  %v12524_v26 = vpop.f32.mrb[28].mxu0 }
 0x23f   :  { %10520 = vmatprep.subr.bf16.mxu1 %v12215_v18  ;;  %v12527_v28 = vpop.f32.mrb[29].mxu0 }
 0x240   :  { %10837 = vmatpush3.bf16.msra.mxu0 %v12199_v63  ;;  %v12533_v31 = vpop.f32.mrb[30].mxu0 }
 0x241   :  { %10838 = vmatprep.subr.bf16.mxu0 %v12219_v11  ;;  %v1176_v33 = vpack.c.bf16 %v12533_v31, %v12524_v26  ;;  %v12541_v34 = vpop.f32.mrb[31].mxu0 }
 0x242   :  { %10521 = vmatpush3.bf16.msra.mxu1 %v12215_v18  ;;  %v1175_v35 = vpack.c.bf16 %v12541_v34, %v12527_v28 }
 0x243   :  { %10526 = vmatprep.subr.bf16.mxu1 %v11133_v29 }
 0x244   :  { %10839 = vmatpush3.bf16.msra.mxu0 %v12219_v11 }
 0x245   :  { %10523 = vmatmul.mubr.bf16.vlgmr.msra.gmra.mrb[8].mxu1 %v11130_v32  ;;  %10840 = vmatprep.subr.bf16.mxu0 %v12215_v18 }
 0x246   :  { %10527 = vmatpush3.bf16.msra.mxu1 %v11133_v29 }
 0x247   :  { %10528 = vmatprep.subr.bf16.mxu1 %v11134_v36 }
 0x248   :  { %10841 = vmatpush3.bf16.msra.mxu0 %v12215_v18 }
 0x249   :  { %10858 = vmatprep.subr.bf16.mxu0 %v12171_v30 }
 0x24a   :  { %10529 = vmatpush3.bf16.msra.mxu1 %v11134_v36 }
 0x24b   :  { %10843 = vmatmul.mubr.bf16.vlgmr.msra.gmra.mrb[56].mxu0 %v11132_v37  ;;  %10530 = vmatprep.subr.bf16.mxu1 %v11135_v38 }
 0x24c   :  { %10859 = vmatpush3.bf16.msra.mxu0 %v12171_v30 }
 0x24d   :  { %10860 = vmatprep.subr.bf16.mxu0 %v12169_v27 }
 0x24e   :  { %10531 = vmatpush3.bf16.msra.mxu1 %v11135_v38 }
 0x24f   :  { %10532 = vmatprep.subr.bf16.mxu1 %v11136_v39 }
 0x250   :  { %10861 = vmatpush3.bf16.msra.mxu0 %v12169_v27 }
 0x251   :  { %10862 = vmatprep.subr.bf16.mxu0 %v12187_v48 }
 0x252   :  { %10533 = vmatpush3.bf16.msra.mxu1 %v11136_v39  ;;  %v11169_v39 = vld [vmem:[%s14878_s2 + $0xf0] sm:$0xff]  }
 0x253   :  { %10558 = vmatprep.subr.bf16.mxu1 %v11137_v40  ;;  %10874 = vmatprep.mubr.bf16.mxu0 %v11169_v39 }
 0x254   :  { %10863 = vmatpush3.bf16.msra.mxu0 %v12187_v48 }
 0x255   :  { %10864 = vmatprep.subr.bf16.mxu0 %v12183_v45 }
 0x258   :  { %10865 = vmatpush3.bf16.msra.mxu0 %v12183_v45 }
 0x259   :  { %10866 = vmatprep.subr.bf16.mxu0 %v12203_v2 }
 0x25c   :  { %10867 = vmatpush3.bf16.msra.mxu0 %v12203_v2 }
 0x25d   :  { %10868 = vmatprep.subr.bf16.mxu0 %v12199_v63 }
 0x25e   :  { %v10588_v41 = vpop.f32.mrb[32].mxu0 }
 0x25f   :  { %v1320_v42 = vpop.f32.mrb[33].mxu0 }
 0x260   :  { %10869 = vmatpush3.bf16.msra.mxu0 %v12199_v63  ;;  %v10589_v43 = vpop.f32.mrb[34].mxu0 }
 0x261   :  { %10870 = vmatprep.subr.bf16.mxu0 %v12219_v11  ;;  %v1336_v44 = vpack.c.bf16 %v10589_v43, %v10588_v41  ;;  %v1323_v46 = vpop.f32.mrb[35].mxu0 }
 0x262   :  { %v1335_v47 = vpack.c.bf16 %v1323_v46, %v1320_v42 }
 0x264   :  { %10871 = vmatpush3.bf16.msra.mxu0 %v12219_v11 }
 0x265   :  { %10872 = vmatprep.subr.bf16.mxu0 %v12215_v18 }
 0x268   :  { %10873 = vmatpush3.bf16.msra.mxu0 %v12215_v18 }
 0x27e   :  { %v10620_v49 = vpop.f32.mrb[36].mxu0 }
 0x27f   :  { %v1480_v50 = vpop.f32.mrb[37].mxu0 }
 0x280   :  { %v10621_v51 = vpop.f32.mrb[38].mxu0 }
 0x281   :  { %v1496_v52 = vpack.c.bf16 %v10621_v51, %v10620_v49  ;;  %v1483_v53 = vpop.f32.mrb[39].mxu0 }
 0x282   :  { %v1495_v54 = vpack.c.bf16 %v1483_v53, %v1480_v50 }
 0x29e   :  { %v12580_v55 = vpop.f32.mrb[40].mxu0 }
 0x29f   :  { %v12582_v56 = vpop.f32.mrb[41].mxu0 }
 0x2a0   :  { %v12584_v57 = vpop.f32.mrb[42].mxu0 }
 0x2a1   :  { %v1816_v58 = vpack.c.bf16 %v12584_v57, %v12580_v55  ;;  %v12588_v59 = vpop.f32.mrb[43].mxu0  ;;  %v11163_v55 = vld [vmem:[%s14880_s0 + $0x160] sm:$0xff]   ;;  %v11164_v57 = vld [vmem:[%s14880_s0 + $0x168] sm:$0xff]  }
 0x2a2   :  { %v1815_v60 = vpack.c.bf16 %v12588_v59, %v12582_v56  ;;  %v11160_v56 = vld [vmem:[%s14880_s0 + $0x148] sm:$0xff]   ;;  %v11161_v59 = vld [vmem:[%s14880_s0 + $0x150] sm:$0xff]  }
 0x2be   :  { %v10716_v25 = vpop.f32.mrb[44].mxu0 }
 0x2bf   :  { %v1960_v26 = vpop.f32.mrb[45].mxu0 }
 0x2c0   :  { %v10717_v28 = vpop.f32.mrb[46].mxu0 }
 0x2c1   :  { %v1976_v29 = vpack.c.bf16 %v10717_v28, %v10716_v25  ;;  %v1963_v31 = vpop.f32.mrb[47].mxu0  ;;  %v11178_v25 = vld [vmem:[%s14880_s0 + $0x1b8] sm:$0xff]   ;;  %v11180_v28 = vld [vmem:[%s14880_s0 + $0x1c8] sm:$0xff]  }
 0x2c2   :  { %v1975_v32 = vpack.c.bf16 %v1963_v31, %v1960_v26  ;;  %v11179_v26 = vld [vmem:[%s14880_s0 + $0x1c0] sm:$0xff]   ;;  %v11182_v31 = vld [vmem:[%s14880_s0 + $0x1d8] sm:$0xff]  }
 0x318   :  { %v10524_v61 = vpop.f32.mrb[8].mxu1 }
 0x319   :  { %v1000_v62 = vpop.f32.mrb[9].mxu1 }
 0x31a   :  { %v10525_v0 = vpop.f32.mrb[10].mxu1 }
 0x31b   :  { %v1016_v1 = vpack.c.bf16 %v10525_v0, %v10524_v61  ;;  %v1003_v3 = vpop.f32.mrb[11].mxu1  ;;  %v11156_v61 = vld [vmem:[%s14880_s0 + $0x128] sm:$0xff]   ;;  %v11158_v0 = vld [vmem:[%s14880_s0 + $0x138] sm:$0xff]  }
 0x31c   :  { %v1015_v4 = vpack.c.bf16 %v1003_v3, %v1000_v62  ;;  %v11157_v62 = vld [vmem:[%s14880_s0 + $0x130] sm:$0xff]   ;;  %v11166_v3 = vld [vmem:[%s14880_s0 + $0x178] sm:$0xff]  }
 0x31e   :  { %10534 = vmatprep.mubr.msk.bf16.mxu1 %vm494_vm1, %v1015_v4  ;;  %v11167_v4 = vld [vmem:[%s14878_s2 + $0xc0] sm:$0xff]  }
 0x31f   :  { %10535 = vmatmul.mubr.msk.bf16.vlgmr.msra.gmra.mrb[4].mxu1 %vm494_vm1, %v1016_v1  ;;  %v11159_v1 = vld [vmem:[%s14880_s0 + $0x140] sm:$0xff]  }
 0x320   :  { %10559 = vmatpush3.bf16.msra.mxu1 %v11137_v40  ;;  %10566 = vmatprep.mubr.msk.bf16.mxu1 %vm494_vm1, %v1175_v35  ;;  %v11170_v40 = vld [vmem:[%s14878_s2 + $0xf8] sm:$0xff]  }
 0x321   :  { %10560 = vmatprep.subr.bf16.mxu1 %v11138_v5  ;;  %10875 = vmatmul.mubr.bf16.vlgmr.msra.gmra.mrb[60].mxu0 %v11170_v40 }
 0x324   :  { %10561 = vmatpush3.bf16.msra.mxu1 %v11138_v5 }
 0x325   :  { %10562 = vmatprep.subr.bf16.mxu1 %v11139_v6 }
 0x328   :  { %10563 = vmatpush3.bf16.msra.mxu1 %v11139_v6 }
 0x329   :  { %10564 = vmatprep.subr.bf16.mxu1 %v11140_v7 }
 0x32c   :  { %10565 = vmatpush3.bf16.msra.mxu1 %v11140_v7 }
 0x32d   :  { %10590 = vmatprep.subr.bf16.mxu1 %v11141_v8 }
 0x32f   :  { %10567 = vmatmul.mubr.msk.bf16.vlgmr.msra.gmra.mrb[4].mxu1 %vm494_vm1, %v1176_v33  ;;  %v12676_v33 = vpop.f32.mrb[48].mxu0 }
 0x330   :  { %10591 = vmatpush3.bf16.msra.mxu1 %v11141_v8  ;;  %10598 = vmatprep.mubr.msk.bf16.mxu1 %vm494_vm1, %v1335_v47  ;;  %v2120_v34 = vpop.f32.mrb[49].mxu0 }
 0x331   :  { %10592 = vmatprep.subr.bf16.mxu1 %v11142_v9  ;;  %v12678_v35 = vpop.f32.mrb[50].mxu0 }
 0x332   :  { %v2136_v36 = vpack.c.bf16 %v12678_v35, %v12676_v33  ;;  %v2123_v37 = vpop.f32.mrb[51].mxu0  ;;  %v11184_v33 = vld [vmem:[%s14880_s0 + $0x1e8] sm:$0xff]   ;;  %v11186_v35 = vld [vmem:[%s14880_s0 + $0x1f8] sm:$0xff]  }
 0x333   :  { %v2135_v38 = vpack.c.bf16 %v2123_v37, %v2120_v34  ;;  %v12688_v41 = vpop.f32.mrb[52].mxu0  ;;  %v11185_v34 = vld [vmem:[%s14880_s0 + $0x1f0] sm:$0xff]   ;;  %v8982_v37 = vld [vmem:[%s14853_s5] ss:$0 sm:$0xff] }
 0x334   :  { %10593 = vmatpush3.bf16.msra.mxu1 %v11142_v9  ;;  %v12690_v42 = vpop.f32.mrb[53].mxu0 }
 0x335   :  { %10594 = vmatprep.subr.bf16.mxu1 %v11143_v10  ;;  %v12692_v43 = vpop.f32.mrb[54].mxu0 }
 0x336   :  { %v12696_v46 = vpop.f32.mrb[55].mxu0 }
 0x337   :  { %v2455_v47 = vpack.c.bf16 %v12696_v46, %v12690_v42 }
 0x338   :  { %10595 = vmatpush3.bf16.msra.mxu1 %v11143_v10 }
 0x339   :  { %10596 = vmatprep.subr.bf16.mxu1 %v11144_v12 }
 0x33c   :  { %10597 = vmatpush3.bf16.msra.mxu1 %v11144_v12 }
 0x33d   :  { %10622 = vmatprep.subr.bf16.mxu1 %v11145_v13 }
 0x33f   :  { %10599 = vmatmul.mubr.msk.bf16.vlgmr.msra.gmra.mrb[4].mxu1 %vm494_vm1, %v1336_v44  ;;  %v2456_v44 = vpack.c.bf16 %v12692_v43, %v12688_v41 }
 0x340   :  { %10623 = vmatpush3.bf16.msra.mxu1 %v11145_v13  ;;  %10630 = vmatprep.mubr.msk.bf16.mxu1 %vm494_vm1, %v1495_v54 }
 0x341   :  { %10624 = vmatprep.subr.bf16.mxu1 %v11146_v14 }
 0x344   :  { %10625 = vmatpush3.bf16.msra.mxu1 %v11146_v14 }
 0x345   :  { %10626 = vmatprep.subr.bf16.mxu1 %v11147_v15 }
 0x348   :  { %10627 = vmatpush3.bf16.msra.mxu1 %v11147_v15 }
 0x349   :  { %10628 = vmatprep.subr.bf16.mxu1 %v11148_v16 }
 0x34c   :  { %10629 = vmatpush3.bf16.msra.mxu1 %v11148_v16 }
 0x34d   :  { %10634 = vmatprep.subr.bf16.mxu1 %v12171_v30 }
 0x34f   :  { %10631 = vmatmul.mubr.msk.bf16.vlgmr.msra.gmra.mrb[4].mxu1 %vm494_vm1, %v1496_v52 }
 0x350   :  { %10635 = vmatpush3.bf16.msra.mxu1 %v12171_v30  ;;  %10650 = vmatprep.mubr.bf16.mxu1 %v11149_v17 }
 0x351   :  { %10636 = vmatprep.subr.bf16.mxu1 %v12169_v27 }
 0x354   :  { %10637 = vmatpush3.bf16.msra.mxu1 %v12169_v27 }
 0x355   :  { %10638 = vmatprep.subr.bf16.mxu1 %v12187_v48 }
 0x358   :  { %10639 = vmatpush3.bf16.msra.mxu1 %v12187_v48 }
 0x359   :  { %10640 = vmatprep.subr.bf16.mxu1 %v12183_v45 }
 0x35c   :  { %10641 = vmatpush3.bf16.msra.mxu1 %v12183_v45 }
 0x35d   :  { %10642 = vmatprep.subr.bf16.mxu1 %v12203_v2 }
 0x360   :  { %10643 = vmatpush3.bf16.msra.mxu1 %v12203_v2 }
 0x361   :  { %10644 = vmatprep.subr.bf16.mxu1 %v12199_v63 }
 0x364   :  { %10645 = vmatpush3.bf16.msra.mxu1 %v12199_v63 }
 0x365   :  { %10646 = vmatprep.subr.bf16.mxu1 %v12219_v11 }
 0x368   :  { %10647 = vmatpush3.bf16.msra.mxu1 %v12219_v11 }
 0x369   :  { %10648 = vmatprep.subr.bf16.mxu1 %v12215_v18 }
 0x36c   :  { %10649 = vmatpush3.bf16.msra.mxu1 %v12215_v18 }
 0x36d   :  { %10654 = vmatprep.subr.bf16.mxu1 %v11151_v19 }
 0x36f   :  { %10651 = vmatmul.mubr.bf16.vlgmr.msra.gmra.mrb[12].mxu1 %v11150_v20 }
 0x370   :  { %10655 = vmatpush3.bf16.msra.mxu1 %v11151_v19 }
 0x371   :  { %10656 = vmatprep.subr.bf16.mxu1 %v11152_v21 }
 0x374   :  { %10657 = vmatpush3.bf16.msra.mxu1 %v11152_v21 }
 0x375   :  { %10658 = vmatprep.subr.bf16.mxu1 %v11153_v22 }
 0x378   :  { %10659 = vmatpush3.bf16.msra.mxu1 %v11153_v22 }
 0x379   :  { %10660 = vmatprep.subr.bf16.mxu1 %v11154_v23 }
 0x37c   :  { %10661 = vmatpush3.bf16.msra.mxu1 %v11154_v23  ;;  %v11176_v23 = vld [vmem:[%s14880_s0 + $0x1a8] sm:$0xff]  }
 0x37d   :  { %10686 = vmatprep.subr.bf16.mxu1 %v11155_v24 }
 0x442   :  { %v10652_v49 = vpop.f32.mrb[12].mxu1 }
 0x443   :  { %v1640_v50 = vpop.f32.mrb[13].mxu1 }
 0x444   :  { %v10653_v51 = vpop.f32.mrb[14].mxu1 }
 0x445   :  { %v1656_v52 = vpack.c.bf16 %v10653_v51, %v10652_v49  ;;  %v1643_v53 = vpop.f32.mrb[15].mxu1 }
 0x446   :  { %v1655_v54 = vpack.c.bf16 %v1643_v53, %v1640_v50 }
 0x448   :  { %10662 = vmatprep.mubr.msk.bf16.mxu1 %vm494_vm1, %v1655_v54 }
 0x449   :  { %10663 = vmatmul.mubr.msk.bf16.vlgmr.msra.gmra.mrb[4].mxu1 %vm494_vm1, %v1656_v52 }
 0x44a   :  { %10687 = vmatpush3.bf16.msra.mxu1 %v11155_v24  ;;  %10694 = vmatprep.mubr.msk.bf16.mxu1 %vm494_vm1, %v1815_v60  ;;  %v11162_v60 = vld [vmem:[%s14880_s0 + $0x158] sm:$0xff]   ;;  %v11177_v24 = vld [vmem:[%s14880_s0 + $0x1b0] sm:$0xff]  }
 0x44b   :  { %10688 = vmatprep.subr.bf16.mxu1 %v11156_v61 }
 0x44e   :  { %10689 = vmatpush3.bf16.msra.mxu1 %v11156_v61 }
 0x44f   :  { %10690 = vmatprep.subr.bf16.mxu1 %v11157_v62 }
 0x452   :  { %10691 = vmatpush3.bf16.msra.mxu1 %v11157_v62 }
 0x453   :  { %10692 = vmatprep.subr.bf16.mxu1 %v11158_v0 }
 0x456   :  { %10693 = vmatpush3.bf16.msra.mxu1 %v11158_v0 }
 0x457   :  { %10718 = vmatprep.subr.bf16.mxu1 %v11159_v1 }
 0x459   :  { %10695 = vmatmul.mubr.msk.bf16.vlgmr.msra.gmra.mrb[4].mxu1 %vm494_vm1, %v1816_v58  ;;  %v11165_v58 = vld [vmem:[%s14880_s0 + $0x170] sm:$0xff]  }
 0x45a   :  { %10719 = vmatpush3.bf16.msra.mxu1 %v11159_v1  ;;  %10726 = vmatprep.mubr.msk.bf16.mxu1 %vm494_vm1, %v1975_v32  ;;  %v11183_v32 = vld [vmem:[%s14880_s0 + $0x1e0] sm:$0xff]  }
 0x45b   :  { %10720 = vmatprep.subr.bf16.mxu1 %v11160_v56 }
 0x45e   :  { %10721 = vmatpush3.bf16.msra.mxu1 %v11160_v56 }
 0x45f   :  { %10722 = vmatprep.subr.bf16.mxu1 %v11161_v59 }
 0x462   :  { %10723 = vmatpush3.bf16.msra.mxu1 %v11161_v59 }
 0x463   :  { %10724 = vmatprep.subr.bf16.mxu1 %v11162_v60 }
 0x466   :  { %10725 = vmatpush3.bf16.msra.mxu1 %v11162_v60 }
 0x467   :  { %10750 = vmatprep.subr.bf16.mxu1 %v11163_v55 }
 0x469   :  { %10727 = vmatmul.mubr.msk.bf16.vlgmr.msra.gmra.mrb[4].mxu1 %vm494_vm1, %v1976_v29  ;;  %v11181_v29 = vld [vmem:[%s14880_s0 + $0x1d0] sm:$0xff]  }
 0x46a   :  { %10751 = vmatpush3.bf16.msra.mxu1 %v11163_v55  ;;  %10758 = vmatprep.mubr.msk.bf16.mxu1 %vm494_vm1, %v2135_v38 }
 0x46b   :  { %10752 = vmatprep.subr.bf16.mxu1 %v11164_v57 }
 0x46e   :  { %10753 = vmatpush3.bf16.msra.mxu1 %v11164_v57 }
 0x46f   :  { %10754 = vmatprep.subr.bf16.mxu1 %v11165_v58 }
 0x472   :  { %10755 = vmatpush3.bf16.msra.mxu1 %v11165_v58 }
 0x473   :  { %10756 = vmatprep.subr.bf16.mxu1 %v11166_v3 }
 0x476   :  { %10757 = vmatpush3.bf16.msra.mxu1 %v11166_v3 }
 0x477   :  { %10762 = vmatprep.subr.bf16.mxu1 %v12171_v30 }
 0x479   :  { %10759 = vmatmul.mubr.msk.bf16.vlgmr.msra.gmra.mrb[4].mxu1 %vm494_vm1, %v2136_v36  ;;  %v12005_v36 = vmov 0.0  }
 0x47a   :  { %10763 = vmatpush3.bf16.msra.mxu1 %v12171_v30  ;;  %10778 = vmatprep.mubr.bf16.mxu1 %v11167_v4  ;;  %v11168_v30 = vld [vmem:[%s14878_s2 + $0xc8] sm:$0xff]  }
 0x47b   :  { %10764 = vmatprep.subr.bf16.mxu1 %v12169_v27  ;;  %10898 = vmatprep.subr.bf16.mxu0 %v12005_v36 }
 0x47c   :  { %10902 = vmatprep.mubr.msk.bf16.mxu0 %vm12006_vm2, %v12005_v36 }
 0x47e   :  { %10765 = vmatpush3.bf16.msra.mxu1 %v12169_v27  ;;  %v11171_v27 = vld [vmem:[%s14880_s0 + $0x180] sm:$0xff]  }
 0x47f   :  { %10766 = vmatprep.subr.bf16.mxu1 %v12187_v48 }
 0x482   :  { %10767 = vmatpush3.bf16.msra.mxu1 %v12187_v48  ;;  %v11173_v48 = vld [vmem:[%s14880_s0 + $0x190] sm:$0xff]  }
 0x483   :  { %10768 = vmatprep.subr.bf16.mxu1 %v12183_v45 }
 0x486   :  { %10769 = vmatpush3.bf16.msra.mxu1 %v12183_v45  ;;  %v11172_v45 = vld [vmem:[%s14880_s0 + $0x188] sm:$0xff]  }
 0x487   :  { %10770 = vmatprep.subr.bf16.mxu1 %v12203_v2 }
 0x48a   :  { %10771 = vmatpush3.bf16.msra.mxu1 %v12203_v2  ;;  %v11175_v2 = vld [vmem:[%s14880_s0 + $0x1a0] sm:$0xff]  }
 0x48b   :  { %10772 = vmatprep.subr.bf16.mxu1 %v12199_v63 }
 0x48e   :  { %10773 = vmatpush3.bf16.msra.mxu1 %v12199_v63  ;;  %v11174_v63 = vld [vmem:[%s14880_s0 + $0x198] sm:$0xff]  }
 0x48f   :  { %10774 = vmatprep.subr.bf16.mxu1 %v12219_v11 }
 0x492   :  { %10775 = vmatpush3.bf16.msra.mxu1 %v12219_v11 }
 0x493   :  { %10776 = vmatprep.subr.bf16.mxu1 %v12215_v18 }
 0x496   :  { %10777 = vmatpush3.bf16.msra.mxu1 %v12215_v18  ;;  %v10844_v18 = vpop.f32.mrb[56].mxu0 }
 0x497   :  { %10782 = vmatprep.subr.bf16.mxu1 %v11171_v27  ;;  %v2600_v11 = vpop.f32.mrb[57].mxu0 }
 0x498   :  { %v10845_v5 = vpop.f32.mrb[58].mxu0 }
 0x499   :  { %10779 = vmatmul.mubr.bf16.vlgmr.msra.gmra.mrb[16].mxu1 %v11168_v30  ;;  %v2616_v6 = vpack.c.bf16 %v10845_v5, %v10844_v18  ;;  %v2603_v7 = vpop.f32.mrb[59].mxu0 }
 0x49a   :  { %10783 = vmatpush3.bf16.msra.mxu1 %v11171_v27  ;;  %v2615_v8 = vpack.c.bf16 %v2603_v7, %v2600_v11  ;;  %v10876_v9 = vpop.f32.mrb[60].mxu0  ;;  %v2913_v7 = vlaneseq }
 0x49b   :  { %10784 = vmatprep.subr.bf16.mxu1 %v11172_v45  ;;  %v2760_v10 = vpop.f32.mrb[61].mxu0 }
 0x49c   :  { %v10877_v12 = vpop.f32.mrb[62].mxu0 }
 0x49d   :  { %v2776_v13 = vpack.c.bf16 %v10877_v12, %v10876_v9  ;;  %v2763_v14 = vpop.f32.mrb[63].mxu0  ;;  %v2908_v9 = vld [vmem:[%s14854_s6] sm:$0x1] }
 0x49e   :  { %10785 = vmatpush3.bf16.msra.mxu1 %v11172_v45  ;;  %v2775_v15 = vpack.c.bf16 %v2763_v14, %v2760_v10 }
 0x49f   :  { %10786 = vmatprep.subr.bf16.mxu1 %v11173_v48 }
 0x4a2   :  { %10787 = vmatpush3.bf16.msra.mxu1 %v11173_v48 }
 0x4a3   :  { %10788 = vmatprep.subr.bf16.mxu1 %v11174_v63 }
 0x4a6   :  { %10789 = vmatpush3.bf16.msra.mxu1 %v11174_v63 }
 0x4a7   :  { %10814 = vmatprep.subr.bf16.mxu1 %v11175_v2 }
 0x56c   :  { %v10780_v16 = vpop.f32.mrb[16].mxu1 }
 0x56d   :  { %v2280_v17 = vpop.f32.mrb[17].mxu1 }
 0x56e   :  { %v10781_v19 = vpop.f32.mrb[18].mxu1 }
 0x56f   :  { %v2296_v20 = vpack.c.bf16 %v10781_v19, %v10780_v16  ;;  %v2283_v21 = vpop.f32.mrb[19].mxu1 }
 0x570   :  { %v2295_v22 = vpack.c.bf16 %v2283_v21, %v2280_v17 }
 0x572   :  { %10790 = vmatprep.mubr.msk.bf16.mxu1 %vm494_vm1, %v2295_v22 }
 0x573   :  { %10791 = vmatmul.mubr.msk.bf16.vlgmr.msra.gmra.mrb[4].mxu1 %vm494_vm1, %v2296_v20 }
 0x574   :  { %10815 = vmatpush3.bf16.msra.mxu1 %v11175_v2  ;;  %10822 = vmatprep.mubr.msk.bf16.mxu1 %vm494_vm1, %v2455_v47 }
 0x575   :  { %10816 = vmatprep.subr.bf16.mxu1 %v11176_v23 }
 0x578   :  { %10817 = vmatpush3.bf16.msra.mxu1 %v11176_v23 }
 0x579   :  { %10818 = vmatprep.subr.bf16.mxu1 %v11177_v24 }
 0x57c   :  { %10819 = vmatpush3.bf16.msra.mxu1 %v11177_v24 }
 0x57d   :  { %10820 = vmatprep.subr.bf16.mxu1 %v11178_v25 }
 0x580   :  { %10821 = vmatpush3.bf16.msra.mxu1 %v11178_v25 }
 0x581   :  { %10846 = vmatprep.subr.bf16.mxu1 %v11179_v26 }
 0x583   :  { %10823 = vmatmul.mubr.msk.bf16.vlgmr.msra.gmra.mrb[4].mxu1 %vm494_vm1, %v2456_v44 }
 0x584   :  { %10847 = vmatpush3.bf16.msra.mxu1 %v11179_v26  ;;  %10854 = vmatprep.mubr.msk.bf16.mxu1 %vm494_vm1, %v2615_v8  ;;  %v12840_v8 = vshrl.u32 %v2913_v7, 7 }
 0x585   :  { %10848 = vmatprep.subr.bf16.mxu1 %v11180_v28 }
 0x586   :  { %v12846_v10 = vsub.s32 0, %v12840_v8 }
 0x588   :  { %10849 = vmatpush3.bf16.msra.mxu1 %v11180_v28 }
 0x589   :  { %10850 = vmatprep.subr.bf16.mxu1 %v11181_v29 }
 0x58c   :  { %10851 = vmatpush3.bf16.msra.mxu1 %v11181_v29 }
 0x58d   :  { %10852 = vmatprep.subr.bf16.mxu1 %v11182_v31 }
 0x590   :  { %10853 = vmatpush3.bf16.msra.mxu1 %v11182_v31 }
 0x591   :  { %10878 = vmatprep.subr.bf16.mxu1 %v11183_v32 }
 0x593   :  { %10855 = vmatmul.mubr.msk.bf16.vlgmr.msra.gmra.mrb[4].mxu1 %vm494_vm1, %v2616_v6 }
 0x594   :  { %10879 = vmatpush3.bf16.msra.mxu1 %v11183_v32  ;;  %10886 = vmatprep.mubr.msk.bf16.mxu1 %vm494_vm1, %v2775_v15  ;;  %v8983_v15 = vld [vmem:[%s14855_s7] ss:$0 sm:$0xff] }
 0x595   :  { %10880 = vmatprep.subr.bf16.mxu1 %v11184_v33 }
 0x598   :  { %10881 = vmatpush3.bf16.msra.mxu1 %v11184_v33 }
 0x599   :  { %10882 = vmatprep.subr.bf16.mxu1 %v11185_v34 }
 0x59c   :  { %10883 = vmatpush3.bf16.msra.mxu1 %v11185_v34 }
 0x59d   :  { %10884 = vmatprep.subr.bf16.mxu1 %v11186_v35 }
 0x5a0   :  { %10885 = vmatpush3.bf16.msra.mxu1 %v11186_v35 }
 0x5a1   :  { %10890 = vmatprep.subr.bf16.mxu1 %v12005_v36 }
 0x5a3   :  { %10887 = vmatmul.mubr.msk.bf16.vlgmr.msra.gmra.mrb[4].mxu1 %vm494_vm1, %v2776_v13 }
 0x5a4   :  { %10894 = vmatprep.mubr.msk.bf16.mxu1 %vm12006_vm2, %v12005_v36 }
 0x676   :  { %v10888_v38 = vpop.f32.mrb[4].mxu1 }
 0x677   :  { %v2850_v39 = vpop.f32.mrb[5].mxu1  ;;  %v2878_v44 = vadd.f32 %v10888_v38, %v8982_v37  ;;  %v11189_v38 = vld [vmem:[%s14852_s9 + $0x84] ss:$8 sps:$4 sm:$0xff]  }
 0x678   :  { %v10889_v40 = vpop.f32.mrb[6].mxu1  ;;  %v2876_v42 = vadd.f32 %v8982_v37, %v2850_v39  ;;  %v11192_v39 = vld [vmem:[%s14852_s9 + $0x4] ss:$8 sps:$4 sm:$0xff]  }
 0x679   :  { %v2853_v41 = vpop.f32.mrb[7].mxu1  ;;  %v2879_v47 = vadd.f32 %v10889_v40, %v8982_v37  ;;  %v2947_v40 = vld [vmem:[%s14856_s8] sm:$0xf] }
 0x67a   :  { %v2877_v43 = vadd.f32 %v8982_v37, %v2853_v41  ;;  %v8985_v41 = vld [vmem:[%s14856_s8 + $0x4] sm:$0xf] }
 0x67c   :  { %v2880_v46 = vadd.f32 %v2877_v43, %v2876_v42 }
 0x67e   :  { %v2881_v49 = vadd.f32 %v2880_v46, %v2878_v44  ;;  %v11198_v46 = vld [vmem:[%s14852_s9 + $0x14] ss:$8 sps:$4 sm:$0xff]  }
 0x680   :  { %v2882_v50 = vadd.f32 %v2881_v49, %v2879_v47  ;;  %v11196_v49 = vld [vmem:[%s14852_s9 + $0x10] ss:$8 sps:$4 sm:$0xff]  }
 0x682   :  { %v2883_v51 = vrot.slane %v2882_v50, 4 }
 0x684   :  { %v2884_v52 = vadd.f32 %v2883_v51, %v2882_v50  ;;  %v11201_v50 = vld [vmem:[%s14852_s9 + $0xa4] ss:$8 sps:$4 sm:$0xff]  }
 0x685   :  { %v11204_v51 = vld [vmem:[%s14852_s9 + $0x24] ss:$8 sps:$4 sm:$0xff]  }
 0x686   :  { %v2885_v53 = vrot.slane %v2884_v52, 2 }
 0x688   :  { %v2886_v54 = vadd.f32 %v2885_v53, %v2884_v52  ;;  %v11199_v52 = vld [vmem:[%s14852_s9 + $0xa0] ss:$8 sps:$4 sm:$0xff]  }
 0x689   :  { %v11202_v53 = vld [vmem:[%s14852_s9 + $0x20] ss:$8 sps:$4 sm:$0xff]  }
 0x68a   :  { %v2887_v61 = vrot.slane %v2886_v54, 1 }
 0x68c   :  { %v2888_v62 = vadd.f32 %v2887_v61, %v2886_v54  ;;  %v11207_v54 = vld [vmem:[%s14852_s9 + $0xb4] ss:$8 sps:$4 sm:$0xff]  }
 0x68d   :  { %v11210_v61 = vld [vmem:[%s14852_s9 + $0x34] ss:$8 sps:$4 sm:$0xff]  }
 0x68e   :  { %v2889_v0 = vmul.f32 0.03125, %v2888_v62  ;;  %v11205_v62 = vld [vmem:[%s14852_s9 + $0xb0] ss:$8 sps:$4 sm:$0xff]  }
 0x690   :  { %v2890_v1 = vsub.f32 %v2876_v42, %v2889_v0  ;;  %v2891_v56 = vsub.f32 %v2877_v43, %v2889_v0  ;;  %v2892_v59 = vsub.f32 %v2878_v44, %v2889_v0  ;;  %v2893_v60 = vsub.f32 %v2879_v47, %v2889_v0  ;;  %v11187_v42 = vld [vmem:[%s14852_s9 + $0x80] ss:$8 sps:$4 sm:$0xff]   ;;  %v11195_v44 = vld [vmem:[%s14852_s9 + $0x94] ss:$8 sps:$4 sm:$0xff]   ;;  %v11193_v47 = vld [vmem:[%s14852_s9 + $0x90] ss:$8 sps:$4 sm:$0xff]  }
 0x691   :  { %v11190_v43 = vld [vmem:[%s14852_s9] ss:$8 sps:$4 sm:$0xff]   ;;  %v11208_v0 = vld [vmem:[%s14852_s9 + $0x30] ss:$8 sps:$4 sm:$0xff]  }
 0x692   :  { %v2894_v55 = vmul.f32 %v2890_v1, %v2890_v1  ;;  %v2895_v57 = vmul.f32 %v2891_v56, %v2891_v56  ;;  %v2896_v58 = vmul.f32 %v2892_v59, %v2892_v59  ;;  %v2897_v4 = vmul.f32 %v2893_v60, %v2893_v60 }
 0x694   :  { %v2898_v3 = vadd.f32 %v2895_v57, %v2894_v55  ;;  %v11219_v55 = vld [vmem:[%s14852_s9 + $0xd4] ss:$8 sps:$4 sm:$0xff]  }
 0x695   :  { %v11222_v57 = vld [vmem:[%s14852_s9 + $0x54] ss:$8 sps:$4 sm:$0xff]  }
 0x696   :  { %v2899_v27 = vadd.f32 %v2898_v3, %v2896_v58  ;;  %v11217_v58 = vld [vmem:[%s14852_s9 + $0xd0] ss:$8 sps:$4 sm:$0xff]  }
 0x697   :  { %v11220_v3 = vld [vmem:[%s14852_s9 + $0x50] ss:$8 sps:$4 sm:$0xff]  }
 0x698   :  { %v2900_v30 = vadd.f32 %v2899_v27, %v2897_v4  ;;  %v11225_v4 = vld [vmem:[%s14852_s9 + $0xe4] ss:$8 sps:$4 sm:$0xff]  }
 0x699   :  { %v11228_v27 = vld [vmem:[%s14852_s9 + $0x64] ss:$8 sps:$4 sm:$0xff]  }
 0x69a   :  { %v2901_v45 = vrot.slane %v2900_v30, 4 }
 0x69c   :  { %v2902_v48 = vadd.f32 %v2901_v45, %v2900_v30  ;;  %v11223_v30 = vld [vmem:[%s14852_s9 + $0xe0] ss:$8 sps:$4 sm:$0xff]  }
 0x69d   :  { %v11226_v45 = vld [vmem:[%s14852_s9 + $0x60] ss:$8 sps:$4 sm:$0xff]  }
 0x69e   :  { %v2903_v63 = vrot.slane %v2902_v48, 2 }
 0x6a0   :  { %v2904_v2 = vadd.f32 %v2903_v63, %v2902_v48  ;;  %v11231_v48 = vld [vmem:[%s14852_s9 + $0xf4] ss:$8 sps:$4 sm:$0xff]  }
 0x6a1   :  { %v11234_v63 = vld [vmem:[%s14852_s9 + $0x74] ss:$8 sps:$4 sm:$0xff]  }
 0x6a2   :  { %v2905_v18 = vrot.slane %v2904_v2, 1 }
 0x6a4   :  { %v2906_v11 = vadd.f32 %v2905_v18, %v2904_v2  ;;  %v11229_v2 = vld [vmem:[%s14852_s9 + $0xf0] ss:$8 sps:$4 sm:$0xff]  }
 0x6a5   :  { %v11232_v18 = vld [vmem:[%s14852_s9 + $0x70] ss:$8 sps:$4 sm:$0xff]  }
 0x6a6   :  { %v2907_v5 = vmul.f32 0.03125, %v2906_v11  ;;  %v12007_v11 = vmov 0  }
 0x6a8   :  { %v2909_v6 = vadd.f32 1e-05, %v2907_v5  ;;  %v11237_v5 = vld [vmem:[%s14852_s9 + $0x104] ss:$8 sps:$4 sm:$0xff]  }
 0x6aa   :  { %11987 = vrsqrt.f32 %v2909_v6 }
 0x6b4   :  { %v11988_v12 = vpop.eup %11987 }
 0x6b5   :  { %v2911_v13 = vmul.f32 %v11988_v12, %v2908_v9 }
 0x6b7   :  { %v2916_v14 = vrot.slane %v2911_v13, %v12846_v10 }
 0x6b9   :  { %v2918_v16 = vmul.f32 %v2916_v14, %v2890_v1  ;;  %v2919_v17 = vmul.f32 %v2916_v14, %v2891_v56  ;;  %v2920_v19 = vmul.f32 %v2916_v14, %v2892_v59  ;;  %v2921_v20 = vmul.f32 %v2916_v14, %v2893_v60  ;;  %v11213_v1 = vld [vmem:[%s14852_s9 + $0xc4] ss:$8 sps:$4 sm:$0xff]   ;;  %v11211_v59 = vld [vmem:[%s14852_s9 + $0xc0] ss:$8 sps:$4 sm:$0xff]  }
 0x6ba   :  { %v11216_v56 = vld [vmem:[%s14852_s9 + $0x44] ss:$8 sps:$4 sm:$0xff]   ;;  %v11214_v60 = vld [vmem:[%s14852_s9 + $0x40] ss:$8 sps:$4 sm:$0xff]  }
 0x6bb   :  { %v2929_v21 = vadd.f32 %v8983_v15, %v2918_v16  ;;  %v2930_v22 = vadd.f32 %v8983_v15, %v2919_v17  ;;  %v2931_v23 = vadd.f32 %v8983_v15, %v2920_v19  ;;  %v2932_v24 = vadd.f32 %v8983_v15, %v2921_v20  ;;  %v11235_v15 = vld [vmem:[%s14852_s9 + $0x100] ss:$8 sps:$4 sm:$0xff]   ;;  %v11240_v19 = vld [vmem:[%s14852_s9 + $0x114] ss:$8 sps:$4 sm:$0xff]  }
 0x6bd   :  { %vm2933_vm3 = vcmp.ge.f32.partialorder %v2929_v21, 0.0  ;;  %vm2934_vm4 = vcmp.ge.f32.partialorder %v2930_v22, 0.0  ;;  %vm2935_vm5 = vcmp.ge.f32.partialorder %v2931_v23, 0.0  ;;  %vm2936_vm6 = vcmp.ge.f32.partialorder %v2932_v24, 0.0 }
 0x6be   :  { %v2937_v25 = vmul.f32 0.2, %v2929_v21  ;;  %v2938_v26 = vmul.f32 0.2, %v2930_v22  ;;  %v2939_v28 = vmul.f32 0.2, %v2931_v23 }
 0x6bf   :  { %v2940_v29 = vmul.f32 0.2, %v2932_v24 }
 0x6c0   :  { %v2941_v31 = vsel %vm2933_vm3, %v2929_v21, %v2937_v25  ;;  %v2942_v32 = vsel %vm2934_vm4, %v2930_v22, %v2938_v26  ;;  %v2943_v33 = vsel %vm2935_vm5, %v2931_v23, %v2939_v28  ;;  %v11238_v22 = vld [vmem:[%s14852_s9 + $0x110] ss:$8 sps:$4 sm:$0xff]   ;;  %v11243_v23 = vld [vmem:[%s14852_s9 + $0x124] ss:$8 sps:$4 sm:$0xff]   ;;  %v11241_v25 = vld [vmem:[%s14852_s9 + $0x120] ss:$8 sps:$4 sm:$0xff]  }
 0x6c1   :  { %v2944_v34 = vsel %vm2936_vm6, %v2932_v24, %v2940_v29  ;;  %v12852_v35 = vpack.c.bf16 %v2942_v32, %v2941_v31  ;;  %v9035_v24 = vld [vmem:[%s14856_s8 + $0x8] sm:$0xf]  ;;  %v11249_v26 = vld [vmem:[%s14852_s9 + $0x134] ss:$8 sps:$4 sm:$0xff]   ;;  %v11246_v28 = vld [vmem:[%s14852_s9 + $0x184] ss:$8 sps:$4 sm:$0xff]  }
 0x6c2   :  { %v12854_v37 = vpack.c.bf16 %v2944_v34, %v2943_v33  ;;  %v11247_v29 = vld [vmem:[%s14852_s9 + $0x130] ss:$8 sps:$4 sm:$0xff]   ;;  %v11255_v31 = vld [vmem:[%s14852_s9 + $0x144] ss:$8 sps:$4 sm:$0xff]   ;;  %v11244_v33 = vld [vmem:[%s14852_s9 + $0x180] ss:$8 sps:$4 sm:$0xff]  }
 0x6c3   :  { %10891 = vmatpush3.bf16.msra.mxu1 %v12852_v35  ;;  %10899 = vmatpush3.bf16.msra.mxu0 %v12852_v35  ;;  %v9069_v32 = vld [vmem:[%s14856_s8 + $0xc] sm:$0xf]  ;;  %v11252_v34 = vld [vmem:[%s14852_s9 + $0x194] ss:$8 sps:$4 sm:$0xff]  }
 0x6c4   :  { %10892 = vmatprep.subr.bf16.mxu1 %v12005_v36  ;;  %10900 = vmatprep.subr.bf16.mxu0 %v12005_v36 }
 0x6c7   :  { %10893 = vmatpush3.bf16.msra.mxu1 %v12854_v37  ;;  %10901 = vmatpush3.bf16.msra.mxu0 %v12854_v37 }
 0x6c8   :  { %3152 = vmatprep.subr.bf16.mxu1 %v11189_v38  ;;  %3273 = vmatprep.subr.bf16.mxu0 %v11192_v39  ;;  %v11253_v38 = vld [vmem:[%s14852_s9 + $0x140] ss:$8 sps:$4 sm:$0xff]   ;;  %v11261_v39 = vld [vmem:[%s14852_s9 + $0x154] ss:$8 sps:$4 sm:$0xff]  }
 0x6ca   :  { %10895 = vmatmul.mubr.msk.bf16.vlgmr.msra.gmra.mrb[20].mxu1 %vm2948_vm7, %v2947_v40  ;;  %10903 = vmatmul.mubr.msk.bf16.vlgmr.msra.gmra.mrb[64].mxu0 %vm2948_vm7, %v8985_v41  ;;  %v11250_v40 = vld [vmem:[%s14852_s9 + $0x190] ss:$8 sps:$4 sm:$0xff]   ;;  %v11258_v41 = vld [vmem:[%s14852_s9 + $0x1a4] ss:$8 sps:$4 sm:$0xff]  }
 0x6cb   :  { %3153 = vmatpush1.bf16.msra.mxu1 %v11187_v42  ;;  %3274 = vmatpush1.bf16.msra.mxu0 %v11190_v43  ;;  %v11259_v42 = vld [vmem:[%s14852_s9 + $0x150] ss:$8 sps:$4 sm:$0xff]   ;;  %v11256_v43 = vld [vmem:[%s14852_s9 + $0x1a0] ss:$8 sps:$4 sm:$0xff]  }
 0x6cc   :  { %3154 = vmatprep.subr.bf16.mxu1 %v11195_v44  ;;  %3275 = vmatprep.subr.bf16.mxu0 %v11198_v46  ;;  %v11264_v44 = vld [vmem:[%s14852_s9 + $0x1b4] ss:$8 sps:$4 sm:$0xff]   ;;  %v11262_v46 = vld [vmem:[%s14852_s9 + $0x1b0] ss:$8 sps:$4 sm:$0xff]  }
 0x6cd   :  { %3184 = vmatprep.mubr.bf16.mxu1 %v12007_v11  ;;  %3305 = vmatprep.mubr.bf16.mxu0 %v12007_v11 }
 0x6cf   :  { %3155 = vmatpush1.bf16.msra.mxu1 %v11193_v47  ;;  %3276 = vmatpush1.bf16.msra.mxu0 %v11196_v49  ;;  %v11267_v47 = vld [vmem:[%s14852_s9 + $0x164] ss:$8 sps:$4 sm:$0xff]  }
 0x6d0   :  { %3156 = vmatprep.subr.bf16.mxu1 %v11201_v50  ;;  %3277 = vmatprep.subr.bf16.mxu0 %v11204_v51  ;;  %v11270_v49 = vld [vmem:[%s14852_s9 + $0x1c4] ss:$8 sps:$4 sm:$0xff]   ;;  %v11265_v50 = vld [vmem:[%s14852_s9 + $0x160] ss:$8 sps:$4 sm:$0xff]  }
 0x6d1   :  { %v11268_v51 = vld [vmem:[%s14852_s9 + $0x1c0] ss:$8 sps:$4 sm:$0xff]  }
 0x6d3   :  { %3157 = vmatpush1.bf16.msra.mxu1 %v11199_v52  ;;  %3278 = vmatpush1.bf16.msra.mxu0 %v11202_v53  ;;  %v11273_v52 = vld [vmem:[%s14852_s9 + $0x174] ss:$8 sps:$4 sm:$0xff]   ;;  %v11271_v53 = vld [vmem:[%s14852_s9 + $0x170] ss:$8 sps:$4 sm:$0xff]  }
 0x6d4   :  { %3158 = vmatprep.subr.bf16.mxu1 %v11207_v54  ;;  %3279 = vmatprep.subr.bf16.mxu0 %v11210_v61  ;;  %v11274_v54 = vld [vmem:[%s14852_s9 + $0x1d0] ss:$8 sps:$4 sm:$0xff]   ;;  %v11276_v61 = vld [vmem:[%s14852_s9 + $0x1d4] ss:$8 sps:$4 sm:$0xff]  }
 0x6d7   :  { %3159 = vmatpush1.bf16.msra.mxu1 %v11205_v62  ;;  %3280 = vmatpush1.bf16.msra.mxu0 %v11208_v0  ;;  %v11279_v62 = vld [vmem:[%s14852_s9 + $0x1e4] ss:$8 sps:$4 sm:$0xff]   ;;  %v11277_v0 = vld [vmem:[%s14852_s9 + $0x1e0] ss:$8 sps:$4 sm:$0xff]  }
 0x6d8   :  { %3160 = vmatprep.subr.bf16.mxu1 %v11213_v1  ;;  %3281 = vmatprep.subr.bf16.mxu0 %v11216_v56  ;;  %v11280_v1 = vld [vmem:[%s14852_s9 + $0x1f0] ss:$8 sps:$4 sm:$0xff]   ;;  %v11282_v56 = vld [vmem:[%s14852_s9 + $0x1f4] ss:$8 sps:$4 sm:$0xff]  }
 0x6db   :  { %3161 = vmatpush1.bf16.msra.mxu1 %v11211_v59  ;;  %3282 = vmatpush1.bf16.msra.mxu0 %v11214_v60 }
 0x6dc   :  { %3162 = vmatprep.subr.bf16.mxu1 %v11219_v55  ;;  %3283 = vmatprep.subr.bf16.mxu0 %v11222_v57 }
 0x6df   :  { %3163 = vmatpush1.bf16.msra.mxu1 %v11217_v58  ;;  %3284 = vmatpush1.bf16.msra.mxu0 %v11220_v3 }
 0x6e0   :  { %3164 = vmatprep.subr.bf16.mxu1 %v11225_v4  ;;  %3285 = vmatprep.subr.bf16.mxu0 %v11228_v27 }
 0x6e3   :  { %3165 = vmatpush1.bf16.msra.mxu1 %v11223_v30  ;;  %3286 = vmatpush1.bf16.msra.mxu0 %v11226_v45 }
 0x6e4   :  { %3166 = vmatprep.subr.bf16.mxu1 %v11231_v48  ;;  %3287 = vmatprep.subr.bf16.mxu0 %v11234_v63 }
 0x6e7   :  { %3167 = vmatpush1.bf16.msra.mxu1 %v11229_v2  ;;  %3288 = vmatpush1.bf16.msra.mxu0 %v11232_v18 }
 0x6e8   :  { %10906 = vmatprep.subr.bf16.mxu1 %v12005_v36  ;;  %3457 = vmatprep.subr.bf16.mxu0 %v11237_v5 }
 0x79d   :  { %v2986_v6 = vpop.f32.mrb[20].mxu1  ;;  %v3048_v7 = vpop.f32.mrb[64].mxu0 }
 0x79e   :  { %v2992_v9 = vpack.c.bf16 %v2986_v6, %v2986_v6  ;;  %v3054_v12 = vpack.c.bf16 %v3048_v7, %v3048_v7  ;;  %v10904_v13 = vpop.f32.mrb[65].mxu0  ;;  %v10896_v14 = vpop.f32.mrb[21].mxu1  ;;  %v11285_v6 = vld [vmem:[%s14852_s9 + $0x204] ss:$8 sps:$4 sm:$0xff]  }
 0x79f   :  { %v3051_v16 = vpop.f32.mrb[66].mxu0  ;;  %v2989_v17 = vpop.f32.mrb[22].mxu1  ;;  %v11283_v14 = vld [vmem:[%s14852_s9 + $0x200] ss:$8 sps:$4 sm:$0xff]  }
 0x7a0   :  { %v10905_v20 = vpop.f32.mrb[67].mxu0  ;;  %3185 = vmatmul.mubr.bf16.vlgmr.msra.gmra.mrb[24].mxu1 %v3054_v12  ;;  %3306 = vmatmul.mubr.bf16.vlgmr.msra.gmra.mrb[68].mxu0 %v2992_v9  ;;  %v10897_v21 = vpop.f32.mrb[23].mxu1  ;;  %v9103_v9 = vld [vmem:[%s14856_s8 + $0x10] sm:$0xf]  ;;  %v11288_v16 = vld [vmem:[%s14852_s9 + $0x214] ss:$8 sps:$4 sm:$0xff]  }
 0x7a1   :  { %10907 = vmatpush3.bf16.msra.mxu1 %v12852_v35  ;;  %10910 = vmatprep.mubr.msk.bf16.mxu1 %vm12006_vm2, %v12005_v36  ;;  %v11294_v20 = vld [vmem:[%s14852_s9 + $0x284] ss:$8 sps:$4 sm:$0xff]  }
 0x7a2   :  { %10908 = vmatprep.subr.bf16.mxu1 %v12005_v36  ;;  %3458 = vmatpush1.bf16.msra.mxu0 %v11235_v15  ;;  %v11291_v21 = vld [vmem:[%s14852_s9 + $0x224] ss:$8 sps:$4 sm:$0xff]  }
 0x7a3   :  { %3459 = vmatprep.subr.bf16.mxu0 %v11240_v19  ;;  %3489 = vmatprep.mubr.bf16.mxu0 %v12007_v11  ;;  %v11286_v19 = vld [vmem:[%s14852_s9 + $0x210] ss:$8 sps:$4 sm:$0xff]  }
 0x7a5   :  { %10909 = vmatpush3.bf16.msra.mxu1 %v12854_v37 }
 0x7a6   :  { %10914 = vmatprep.subr.bf16.mxu1 %v12005_v36  ;;  %3460 = vmatpush1.bf16.msra.mxu0 %v11238_v22  ;;  %v9137_v22 = vld [vmem:[%s14856_s8 + $0x14] sm:$0xf] }
 0x7a7   :  { %3461 = vmatprep.subr.bf16.mxu0 %v11243_v23  ;;  %v11292_v23 = vld [vmem:[%s14852_s9 + $0x280] ss:$8 sps:$4 sm:$0xff]  }
 0x7a8   :  { %10911 = vmatmul.mubr.msk.bf16.vlgmr.msra.gmra.mrb[28].mxu1 %vm2948_vm7, %v9035_v24  ;;  %v11289_v24 = vld [vmem:[%s14852_s9 + $0x220] ss:$8 sps:$4 sm:$0xff]  }
 0x7a9   :  { %10915 = vmatpush3.bf16.msra.mxu1 %v12852_v35  ;;  %10918 = vmatprep.mubr.msk.bf16.mxu1 %vm12006_vm2, %v12005_v36 }
 0x7aa   :  { %10916 = vmatprep.subr.bf16.mxu1 %v12005_v36  ;;  %3462 = vmatpush1.bf16.msra.mxu0 %v11241_v25  ;;  %v11300_v25 = vld [vmem:[%s14852_s9 + $0x294] ss:$8 sps:$4 sm:$0xff]  }
 0x7ab   :  { %3463 = vmatprep.subr.bf16.mxu0 %v11249_v26  ;;  %v11297_v26 = vld [vmem:[%s14852_s9 + $0x234] ss:$8 sps:$4 sm:$0xff]  }
 0x7ad   :  { %10917 = vmatpush3.bf16.msra.mxu1 %v12854_v37 }
 0x7ae   :  { %3643 = vmatprep.subr.bf16.mxu1 %v11246_v28  ;;  %3464 = vmatpush1.bf16.msra.mxu0 %v11247_v29  ;;  %v11298_v28 = vld [vmem:[%s14852_s9 + $0x290] ss:$8 sps:$4 sm:$0xff]  }
 0x7af   :  { %3465 = vmatprep.subr.bf16.mxu0 %v11255_v31  ;;  %v11295_v29 = vld [vmem:[%s14852_s9 + $0x230] ss:$8 sps:$4 sm:$0xff]   ;;  %v11306_v31 = vld [vmem:[%s14852_s9 + $0x2a4] ss:$8 sps:$4 sm:$0xff]  }
 0x7b0   :  { %10919 = vmatmul.mubr.msk.bf16.vlgmr.msra.gmra.mrb[32].mxu1 %vm2948_vm7, %v9069_v32  ;;  %v11303_v32 = vld [vmem:[%s14852_s9 + $0x244] ss:$8 sps:$4 sm:$0xff]  }
 0x7b1   :  { %3644 = vmatpush1.bf16.msra.mxu1 %v11244_v33  ;;  %3675 = vmatprep.mubr.bf16.mxu1 %v12007_v11  ;;  %v11304_v33 = vld [vmem:[%s14852_s9 + $0x2a0] ss:$8 sps:$4 sm:$0xff]  }
 0x7b2   :  { %3645 = vmatprep.subr.bf16.mxu1 %v11252_v34  ;;  %3466 = vmatpush1.bf16.msra.mxu0 %v11253_v38  ;;  %v11301_v34 = vld [vmem:[%s14852_s9 + $0x240] ss:$8 sps:$4 sm:$0xff]   ;;  %v11312_v38 = vld [vmem:[%s14852_s9 + $0x2b4] ss:$8 sps:$4 sm:$0xff]  }
 0x7b3   :  { %3467 = vmatprep.subr.bf16.mxu0 %v11261_v39  ;;  %v11309_v39 = vld [vmem:[%s14852_s9 + $0x254] ss:$8 sps:$4 sm:$0xff]  }
 0x7b5   :  { %3646 = vmatpush1.bf16.msra.mxu1 %v11250_v40  ;;  %v11310_v40 = vld [vmem:[%s14852_s9 + $0x2b0] ss:$8 sps:$4 sm:$0xff]  }
 0x7b6   :  { %3647 = vmatprep.subr.bf16.mxu1 %v11258_v41  ;;  %3468 = vmatpush1.bf16.msra.mxu0 %v11259_v42  ;;  %v11307_v41 = vld [vmem:[%s14852_s9 + $0x250] ss:$8 sps:$4 sm:$0xff]   ;;  %v11315_v42 = vld [vmem:[%s14852_s9 + $0x264] ss:$8 sps:$4 sm:$0xff]  }
 0x7b7   :  { %3469 = vmatprep.subr.bf16.mxu0 %v11267_v47  ;;  %v11321_v47 = vld [vmem:[%s14852_s9 + $0x274] ss:$8 sps:$4 sm:$0xff]  }
 0x7b9   :  { %3648 = vmatpush1.bf16.msra.mxu1 %v11256_v43  ;;  %v11318_v43 = vld [vmem:[%s14852_s9 + $0x2c4] ss:$8 sps:$4 sm:$0xff]  }
 0x7ba   :  { %3649 = vmatprep.subr.bf16.mxu1 %v11264_v44  ;;  %3470 = vmatpush1.bf16.msra.mxu0 %v11265_v50  ;;  %v11313_v44 = vld [vmem:[%s14852_s9 + $0x260] ss:$8 sps:$4 sm:$0xff]   ;;  %v11322_v50 = vld [vmem:[%s14852_s9 + $0x2d0] ss:$8 sps:$4 sm:$0xff]  }
 0x7bb   :  { %3471 = vmatprep.subr.bf16.mxu0 %v11273_v52  ;;  %v11327_v52 = vld [vmem:[%s14852_s9 + $0x2e4] ss:$8 sps:$4 sm:$0xff]  }
 0x7bd   :  { %3650 = vmatpush1.bf16.msra.mxu1 %v11262_v46  ;;  %v11316_v46 = vld [vmem:[%s14852_s9 + $0x2c0] ss:$8 sps:$4 sm:$0xff]  }
 0x7be   :  { %3651 = vmatprep.subr.bf16.mxu1 %v11270_v49  ;;  %3472 = vmatpush1.bf16.msra.mxu0 %v11271_v53  ;;  %v11319_v49 = vld [vmem:[%s14852_s9 + $0x270] ss:$8 sps:$4 sm:$0xff]   ;;  %v11325_v53 = vld [vmem:[%s14852_s9 + $0x2e0] ss:$8 sps:$4 sm:$0xff]  }
 0x7bf   :  { %10922 = vmatprep.subr.bf16.mxu0 %v12005_v36 }
 0x7c1   :  { %3652 = vmatpush1.bf16.msra.mxu1 %v11268_v51  ;;  %v11324_v51 = vld [vmem:[%s14852_s9 + $0x2d4] ss:$8 sps:$4 sm:$0xff]  }
 0x7c2   :  { %3653 = vmatprep.subr.bf16.mxu1 %v11276_v61  ;;  %v11330_v61 = vld [vmem:[%s14852_s9 + $0x2f4] ss:$8 sps:$4 sm:$0xff]  }
 0x7c5   :  { %3654 = vmatpush1.bf16.msra.mxu1 %v11274_v54  ;;  %v11328_v54 = vld [vmem:[%s14852_s9 + $0x2f0] ss:$8 sps:$4 sm:$0xff]  }
 0x7c6   :  { %3655 = vmatprep.subr.bf16.mxu1 %v11279_v62 }
 0x7c9   :  { %3656 = vmatpush1.bf16.msra.mxu1 %v11277_v0 }
 0x7ca   :  { %3657 = vmatprep.subr.bf16.mxu1 %v11282_v56 }
 0x7cd   :  { %3658 = vmatpush1.bf16.msra.mxu1 %v11280_v1 }
 0x7ce   :  { %10930 = vmatprep.subr.bf16.mxu1 %v12005_v36 }
 0x873   :  { %v3186_v59 = vpop.f32.mrb[24].mxu1  ;;  %v3307_v60 = vpop.f32.mrb[68].mxu0 }
 0x874   :  { %v13088_v55 = vadd.f32 %v3307_v60, %v3186_v59  ;;  %v3188_v57 = vpop.f32.mrb[25].mxu1  ;;  %v3309_v58 = vpop.f32.mrb[69].mxu0 }
 0x875   :  { %v13090_v3 = vadd.f32 %v3309_v58, %v3188_v57  ;;  %v3190_v4 = vpop.f32.mrb[26].mxu1  ;;  %v3311_v27 = vpop.f32.mrb[70].mxu0 }
 0x876   :  { %v3191_v30 = vpop.f32.mrb[27].mxu1  ;;  %v3312_v45 = vpop.f32.mrb[71].mxu0 }
 0x87b   :  { %v3353_v48 = vpop.f32.mrb[28].mxu1 }
 0x87c   :  { %v3359_v63 = vpack.c.bf16 %v3353_v48, %v3353_v48  ;;  %v10912_v2 = vpop.f32.mrb[29].mxu1 }
 0x87d   :  { %v3356_v18 = vpop.f32.mrb[30].mxu1 }
 0x87e   :  { %v10913_v5 = vpop.f32.mrb[31].mxu1  ;;  %3490 = vmatmul.mubr.bf16.vlgmr.msra.gmra.mrb[72].mxu0 %v3359_v63 }
 0x87f   :  { %10923 = vmatpush3.bf16.msra.mxu0 %v12852_v35  ;;  %10926 = vmatprep.mubr.msk.bf16.mxu0 %vm12006_vm2, %v12005_v36 }
 0x880   :  { %10924 = vmatprep.subr.bf16.mxu0 %v12005_v36 }
 0x883   :  { %10925 = vmatpush3.bf16.msra.mxu0 %v12854_v37  ;;  %v3539_v7 = vpop.f32.mrb[32].mxu1 }
 0x884   :  { %v3545_v12 = vpack.c.bf16 %v3539_v7, %v3539_v7  ;;  %v10920_v13 = vpop.f32.mrb[33].mxu1  ;;  %3829 = vmatprep.subr.bf16.mxu0 %v11285_v6  ;;  %v9171_v6 = vld [vmem:[%s14856_s8 + $0x18] sm:$0xf] }
 0x885   :  { %v3542_v15 = vpop.f32.mrb[34].mxu1 }
 0x886   :  { %v10921_v17 = vpop.f32.mrb[35].mxu1  ;;  %3676 = vmatmul.mubr.bf16.vlgmr.msra.gmra.mrb[36].mxu1 %v3545_v12  ;;  %10927 = vmatmul.mubr.msk.bf16.vlgmr.msra.gmra.mrb[76].mxu0 %vm2948_vm7, %v9103_v9  ;;  %v11331_v12 = vld [vmem:[%s14852_s9 + $0x300] ss:$8 sps:$4 sm:$0xff]  }
 0x887   :  { %10931 = vmatpush3.bf16.msra.mxu1 %v12852_v35  ;;  %10934 = vmatprep.mubr.msk.bf16.mxu1 %vm12006_vm2, %v12005_v36  ;;  %v11342_v17 = vld [vmem:[%s14852_s9 + $0x384] ss:$8 sps:$4 sm:$0xff]  }
 0x888   :  { %10932 = vmatprep.subr.bf16.mxu1 %v12005_v36  ;;  %3830 = vmatpush1.bf16.msra.mxu0 %v11283_v14  ;;  %v11336_v14 = vld [vmem:[%s14852_s9 + $0x314] ss:$8 sps:$4 sm:$0xff]  }
 0x889   :  { %3831 = vmatprep.subr.bf16.mxu0 %v11288_v16  ;;  %3861 = vmatprep.mubr.bf16.mxu0 %v12007_v11  ;;  %v11334_v16 = vld [vmem:[%s14852_s9 + $0x310] ss:$8 sps:$4 sm:$0xff]  }
 0x88b   :  { %10933 = vmatpush3.bf16.msra.mxu1 %v12854_v37 }
 0x88c   :  { %3832 = vmatpush1.bf16.msra.mxu0 %v11286_v19  ;;  %4015 = vmatprep.subr.bf16.mxu1 %v11294_v20  ;;  %v11339_v19 = vld [vmem:[%s14852_s9 + $0x324] ss:$8 sps:$4 sm:$0xff]   ;;  %v9205_v20 = vld [vmem:[%s14856_s8 + $0x1c] sm:$0xf] }
 0x88d   :  { %3833 = vmatprep.subr.bf16.mxu0 %v11291_v21  ;;  %v11340_v21 = vld [vmem:[%s14852_s9 + $0x380] ss:$8 sps:$4 sm:$0xff]  }
 0x88e   :  { %10935 = vmatmul.mubr.msk.bf16.vlgmr.msra.gmra.mrb[40].mxu1 %vm2948_vm7, %v9137_v22  ;;  %v11337_v22 = vld [vmem:[%s14852_s9 + $0x320] ss:$8 sps:$4 sm:$0xff]  }
 0x88f   :  { %4016 = vmatpush1.bf16.msra.mxu1 %v11292_v23  ;;  %4047 = vmatprep.mubr.bf16.mxu1 %v12007_v11  ;;  %v11348_v23 = vld [vmem:[%s14852_s9 + $0x394] ss:$8 sps:$4 sm:$0xff]  }
 0x890   :  { %3834 = vmatpush1.bf16.msra.mxu0 %v11289_v24  ;;  %4017 = vmatprep.subr.bf16.mxu1 %v11300_v25  ;;  %v11345_v24 = vld [vmem:[%s14852_s9 + $0x334] ss:$8 sps:$4 sm:$0xff]   ;;  %v11346_v25 = vld [vmem:[%s14852_s9 + $0x390] ss:$8 sps:$4 sm:$0xff]  }
 0x891   :  { %3835 = vmatprep.subr.bf16.mxu0 %v11297_v26  ;;  %v11343_v26 = vld [vmem:[%s14852_s9 + $0x330] ss:$8 sps:$4 sm:$0xff]  }
 0x893   :  { %4018 = vmatpush1.bf16.msra.mxu1 %v11298_v28  ;;  %v11354_v28 = vld [vmem:[%s14852_s9 + $0x3a4] ss:$8 sps:$4 sm:$0xff]  }
 0x894   :  { %3836 = vmatpush1.bf16.msra.mxu0 %v11295_v29  ;;  %4019 = vmatprep.subr.bf16.mxu1 %v11306_v31  ;;  %v11351_v29 = vld [vmem:[%s14852_s9 + $0x344] ss:$8 sps:$4 sm:$0xff]   ;;  %v11352_v31 = vld [vmem:[%s14852_s9 + $0x3a0] ss:$8 sps:$4 sm:$0xff]  }
 0x895   :  { %3837 = vmatprep.subr.bf16.mxu0 %v11303_v32  ;;  %v11349_v32 = vld [vmem:[%s14852_s9 + $0x340] ss:$8 sps:$4 sm:$0xff]  }
 0x897   :  { %4020 = vmatpush1.bf16.msra.mxu1 %v11304_v33  ;;  %v11360_v33 = vld [vmem:[%s14852_s9 + $0x3b4] ss:$8 sps:$4 sm:$0xff]  }
 0x898   :  { %3838 = vmatpush1.bf16.msra.mxu0 %v11301_v34  ;;  %4021 = vmatprep.subr.bf16.mxu1 %v11312_v38  ;;  %v11357_v34 = vld [vmem:[%s14852_s9 + $0x354] ss:$8 sps:$4 sm:$0xff]   ;;  %v11358_v38 = vld [vmem:[%s14852_s9 + $0x3b0] ss:$8 sps:$4 sm:$0xff]  }
 0x899   :  { %3839 = vmatprep.subr.bf16.mxu0 %v11309_v39  ;;  %v11355_v39 = vld [vmem:[%s14852_s9 + $0x350] ss:$8 sps:$4 sm:$0xff]  }
 0x89b   :  { %4022 = vmatpush1.bf16.msra.mxu1 %v11310_v40  ;;  %v11363_v40 = vld [vmem:[%s14852_s9 + $0x364] ss:$8 sps:$4 sm:$0xff]  }
 0x89c   :  { %3840 = vmatpush1.bf16.msra.mxu0 %v11307_v41  ;;  %4023 = vmatprep.subr.bf16.mxu1 %v11318_v43  ;;  %v11366_v41 = vld [vmem:[%s14852_s9 + $0x3c4] ss:$8 sps:$4 sm:$0xff]   ;;  %v11364_v43 = vld [vmem:[%s14852_s9 + $0x3c0] ss:$8 sps:$4 sm:$0xff]  }
 0x89d   :  { %3841 = vmatprep.subr.bf16.mxu0 %v11315_v42  ;;  %v11361_v42 = vld [vmem:[%s14852_s9 + $0x360] ss:$8 sps:$4 sm:$0xff]  }
 0x89f   :  { %4024 = vmatpush1.bf16.msra.mxu1 %v11316_v46  ;;  %v11367_v46 = vld [vmem:[%s14852_s9 + $0x370] ss:$8 sps:$4 sm:$0xff]  }
 0x8a0   :  { %3842 = vmatpush1.bf16.msra.mxu0 %v11313_v44  ;;  %4025 = vmatprep.subr.bf16.mxu1 %v11324_v51  ;;  %v11369_v44 = vld [vmem:[%s14852_s9 + $0x374] ss:$8 sps:$4 sm:$0xff]   ;;  %v11373_v51 = vld [vmem:[%s14852_s9 + $0x3e0] ss:$8 sps:$4 sm:$0xff]  }
 0x8a1   :  { %3843 = vmatprep.subr.bf16.mxu0 %v11321_v47  ;;  %v11370_v47 = vld [vmem:[%s14852_s9 + $0x3d0] ss:$8 sps:$4 sm:$0xff]  }
 0x8a3   :  { %4026 = vmatpush1.bf16.msra.mxu1 %v11322_v50  ;;  %v11375_v50 = vld [vmem:[%s14852_s9 + $0x3e4] ss:$8 sps:$4 sm:$0xff]  }
 0x8a4   :  { %3844 = vmatpush1.bf16.msra.mxu0 %v11319_v49  ;;  %4027 = vmatprep.subr.bf16.mxu1 %v11327_v52  ;;  %v11372_v49 = vld [vmem:[%s14852_s9 + $0x3d4] ss:$8 sps:$4 sm:$0xff]   ;;  %v11376_v52 = vld [vmem:[%s14852_s9 + $0x3f0] ss:$8 sps:$4 sm:$0xff]  }
 0x8a5   :  { %10938 = vmatprep.subr.bf16.mxu0 %v12005_v36 }
 0x8a7   :  { %4028 = vmatpush1.bf16.msra.mxu1 %v11325_v53  ;;  %v11378_v53 = vld [vmem:[%s14852_s9 + $0x3f4] ss:$8 sps:$4 sm:$0xff]  }
 0x8a8   :  { %4029 = vmatprep.subr.bf16.mxu1 %v11330_v61 }
 0x8ab   :  { %4030 = vmatpush1.bf16.msra.mxu1 %v11328_v54 }
 0x8ac   :  { %10946 = vmatprep.subr.bf16.mxu1 %v12005_v36 }
 0x951   :  { %v3491_v62 = vpop.f32.mrb[72].mxu0 }
 0x952   :  { %v3498_v0 = vadd.f32 %v3491_v62, %v13088_v55  ;;  %v3493_v1 = vpop.f32.mrb[73].mxu0  ;;  %v11333_v55 = vld [vmem:[%s14852_s9 + $0x304] ss:$8 sps:$4 sm:$0xff]  }
 0x953   :  { %v3499_v56 = vadd.f32 %v3493_v1, %v13090_v3  ;;  %v3495_v59 = vpop.f32.mrb[74].mxu0 }
 0x954   :  { %v3496_v60 = vpop.f32.mrb[75].mxu0 }
 0x959   :  { %v3677_v57 = vpop.f32.mrb[36].mxu1  ;;  %v3725_v58 = vpop.f32.mrb[76].mxu0 }
 0x95a   :  { %v13212_v4 = vadd.f32 %v3677_v57, %v3498_v0  ;;  %v3731_v27 = vpack.c.bf16 %v3725_v58, %v3725_v58  ;;  %v3679_v30 = vpop.f32.mrb[37].mxu1  ;;  %v10928_v45 = vpop.f32.mrb[77].mxu0 }
 0x95b   :  { %v13214_v48 = vadd.f32 %v3679_v30, %v3499_v56  ;;  %v3681_v63 = vpop.f32.mrb[38].mxu1  ;;  %v3728_v2 = vpop.f32.mrb[78].mxu0 }
 0x95c   :  { %v3682_v18 = vpop.f32.mrb[39].mxu1  ;;  %3862 = vmatmul.mubr.bf16.vlgmr.msra.gmra.mrb[80].mxu0 %v3731_v27  ;;  %v10929_v5 = vpop.f32.mrb[79].mxu0 }
 0x95d   :  { %10939 = vmatpush3.bf16.msra.mxu0 %v12852_v35  ;;  %10942 = vmatprep.mubr.msk.bf16.mxu0 %vm12006_vm2, %v12005_v36 }
 0x95e   :  { %10940 = vmatprep.subr.bf16.mxu0 %v12005_v36 }
 0x961   :  { %10941 = vmatpush3.bf16.msra.mxu0 %v12854_v37  ;;  %v3911_v3 = vpop.f32.mrb[40].mxu1 }
 0x962   :  { %v3917_v7 = vpack.c.bf16 %v3911_v3, %v3911_v3  ;;  %v10936_v9 = vpop.f32.mrb[41].mxu1  ;;  %4201 = vmatprep.subr.bf16.mxu0 %v11333_v55  ;;  %v9239_v55 = vld [vmem:[%s14856_s8 + $0x20] sm:$0xf] }
 0x963   :  { %v3914_v13 = vpop.f32.mrb[42].mxu1 }
 0x964   :  { %v10937_v15 = vpop.f32.mrb[43].mxu1  ;;  %4048 = vmatmul.mubr.bf16.vlgmr.msra.gmra.mrb[44].mxu1 %v3917_v7  ;;  %10943 = vmatmul.mubr.msk.bf16.vlgmr.msra.gmra.mrb[84].mxu0 %vm2948_vm7, %v9171_v6  ;;  %v11379_v7 = vld [vmem:[%s14852_s9 + $0x400] ss:$8 sps:$4 sm:$0xff]  }
 0x965   :  { %10947 = vmatpush3.bf16.msra.mxu1 %v12852_v35  ;;  %10950 = vmatprep.mubr.msk.bf16.mxu1 %vm12006_vm2, %v12005_v36  ;;  %v11390_v15 = vld [vmem:[%s14852_s9 + $0x484] ss:$8 sps:$4 sm:$0xff]  }
 0x966   :  { %10948 = vmatprep.subr.bf16.mxu1 %v12005_v36  ;;  %4202 = vmatpush1.bf16.msra.mxu0 %v11331_v12  ;;  %v11384_v12 = vld [vmem:[%s14852_s9 + $0x414] ss:$8 sps:$4 sm:$0xff]  }
 0x967   :  { %4203 = vmatprep.subr.bf16.mxu0 %v11336_v14  ;;  %4233 = vmatprep.mubr.bf16.mxu0 %v12007_v11  ;;  %v11382_v14 = vld [vmem:[%s14852_s9 + $0x410] ss:$8 sps:$4 sm:$0xff]  }
 0x969   :  { %10949 = vmatpush3.bf16.msra.mxu1 %v12854_v37 }
 0x96a   :  { %4204 = vmatpush1.bf16.msra.mxu0 %v11334_v16  ;;  %4387 = vmatprep.subr.bf16.mxu1 %v11342_v17  ;;  %v11387_v16 = vld [vmem:[%s14852_s9 + $0x424] ss:$8 sps:$4 sm:$0xff]  }
 0x96b   :  { %4205 = vmatprep.subr.bf16.mxu0 %v11339_v19  ;;  %v9273_v17 = vld [vmem:[%s14856_s8 + $0x24] sm:$0xf]  ;;  %v11388_v19 = vld [vmem:[%s14852_s9 + $0x480] ss:$8 sps:$4 sm:$0xff]  }
 0x96c   :  { %10951 = vmatmul.mubr.msk.bf16.vlgmr.msra.gmra.mrb[48].mxu1 %vm2948_vm7, %v9205_v20  ;;  %v11385_v20 = vld [vmem:[%s14852_s9 + $0x420] ss:$8 sps:$4 sm:$0xff]  }
 0x96d   :  { %4388 = vmatpush1.bf16.msra.mxu1 %v11340_v21  ;;  %4419 = vmatprep.mubr.bf16.mxu1 %v12007_v11  ;;  %v11396_v21 = vld [vmem:[%s14852_s9 + $0x494] ss:$8 sps:$4 sm:$0xff]  }
 0x96e   :  { %4206 = vmatpush1.bf16.msra.mxu0 %v11337_v22  ;;  %4389 = vmatprep.subr.bf16.mxu1 %v11348_v23  ;;  %v11393_v22 = vld [vmem:[%s14852_s9 + $0x434] ss:$8 sps:$4 sm:$0xff]   ;;  %v11394_v23 = vld [vmem:[%s14852_s9 + $0x490] ss:$8 sps:$4 sm:$0xff]  }
 0x96f   :  { %4207 = vmatprep.subr.bf16.mxu0 %v11345_v24  ;;  %v11391_v24 = vld [vmem:[%s14852_s9 + $0x430] ss:$8 sps:$4 sm:$0xff]  }
 0x971   :  { %4390 = vmatpush1.bf16.msra.mxu1 %v11346_v25  ;;  %v11402_v25 = vld [vmem:[%s14852_s9 + $0x4a4] ss:$8 sps:$4 sm:$0xff]  }
 0x972   :  { %4208 = vmatpush1.bf16.msra.mxu0 %v11343_v26  ;;  %4391 = vmatprep.subr.bf16.mxu1 %v11354_v28  ;;  %v11399_v26 = vld [vmem:[%s14852_s9 + $0x444] ss:$8 sps:$4 sm:$0xff]   ;;  %v11400_v28 = vld [vmem:[%s14852_s9 + $0x4a0] ss:$8 sps:$4 sm:$0xff]  }
 0x973   :  { %4209 = vmatprep.subr.bf16.mxu0 %v11351_v29  ;;  %v11397_v29 = vld [vmem:[%s14852_s9 + $0x440] ss:$8 sps:$4 sm:$0xff]  }
 0x975   :  { %4392 = vmatpush1.bf16.msra.mxu1 %v11352_v31  ;;  %v11408_v31 = vld [vmem:[%s14852_s9 + $0x4b4] ss:$8 sps:$4 sm:$0xff]  }
 0x976   :  { %4210 = vmatpush1.bf16.msra.mxu0 %v11349_v32  ;;  %4393 = vmatprep.subr.bf16.mxu1 %v11360_v33  ;;  %v11405_v32 = vld [vmem:[%s14852_s9 + $0x454] ss:$8 sps:$4 sm:$0xff]   ;;  %v11406_v33 = vld [vmem:[%s14852_s9 + $0x4b0] ss:$8 sps:$4 sm:$0xff]  }
 0x977   :  { %4211 = vmatprep.subr.bf16.mxu0 %v11357_v34  ;;  %v11403_v34 = vld [vmem:[%s14852_s9 + $0x450] ss:$8 sps:$4 sm:$0xff]  }
 0x979   :  { %4394 = vmatpush1.bf16.msra.mxu1 %v11358_v38  ;;  %v11411_v38 = vld [vmem:[%s14852_s9 + $0x464] ss:$8 sps:$4 sm:$0xff]  }
 0x97a   :  { %4212 = vmatpush1.bf16.msra.mxu0 %v11355_v39  ;;  %4395 = vmatprep.subr.bf16.mxu1 %v11366_v41  ;;  %v11414_v39 = vld [vmem:[%s14852_s9 + $0x4c4] ss:$8 sps:$4 sm:$0xff]   ;;  %v11412_v41 = vld [vmem:[%s14852_s9 + $0x4c0] ss:$8 sps:$4 sm:$0xff]  }
 0x97b   :  { %4213 = vmatprep.subr.bf16.mxu0 %v11363_v40  ;;  %v11409_v40 = vld [vmem:[%s14852_s9 + $0x460] ss:$8 sps:$4 sm:$0xff]  }
 0x97d   :  { %4396 = vmatpush1.bf16.msra.mxu1 %v11364_v43  ;;  %v11415_v43 = vld [vmem:[%s14852_s9 + $0x470] ss:$8 sps:$4 sm:$0xff]  }
 0x97e   :  { %4214 = vmatpush1.bf16.msra.mxu0 %v11361_v42  ;;  %4397 = vmatprep.subr.bf16.mxu1 %v11372_v49  ;;  %v11417_v42 = vld [vmem:[%s14852_s9 + $0x474] ss:$8 sps:$4 sm:$0xff]   ;;  %v11421_v49 = vld [vmem:[%s14852_s9 + $0x4e0] ss:$8 sps:$4 sm:$0xff]  }
 0x97f   :  { %4215 = vmatprep.subr.bf16.mxu0 %v11369_v44  ;;  %v11418_v44 = vld [vmem:[%s14852_s9 + $0x4d0] ss:$8 sps:$4 sm:$0xff]  }
 0x981   :  { %4398 = vmatpush1.bf16.msra.mxu1 %v11370_v47  ;;  %v11423_v47 = vld [vmem:[%s14852_s9 + $0x4e4] ss:$8 sps:$4 sm:$0xff]  }
 0x982   :  { %4216 = vmatpush1.bf16.msra.mxu0 %v11367_v46  ;;  %4399 = vmatprep.subr.bf16.mxu1 %v11375_v50  ;;  %v11420_v46 = vld [vmem:[%s14852_s9 + $0x4d4] ss:$8 sps:$4 sm:$0xff]   ;;  %v11424_v50 = vld [vmem:[%s14852_s9 + $0x4f0] ss:$8 sps:$4 sm:$0xff]  }
 0x983   :  { %10954 = vmatprep.subr.bf16.mxu0 %v12005_v36 }
 0x985   :  { %4400 = vmatpush1.bf16.msra.mxu1 %v11373_v51  ;;  %v11426_v51 = vld [vmem:[%s14852_s9 + $0x4f4] ss:$8 sps:$4 sm:$0xff]  }
 0x986   :  { %4401 = vmatprep.subr.bf16.mxu1 %v11378_v53 }
 0x989   :  { %4402 = vmatpush1.bf16.msra.mxu1 %v11376_v52 }
 0x98a   :  { %10962 = vmatprep.subr.bf16.mxu1 %v12005_v36 }
 0xa2f   :  { %v3863_v54 = vpop.f32.mrb[80].mxu0 }
 0xa30   :  { %v3870_v61 = vadd.f32 %v3863_v54, %v13212_v4  ;;  %v3865_v62 = vpop.f32.mrb[81].mxu0  ;;  %v11381_v4 = vld [vmem:[%s14852_s9 + $0x404] ss:$8 sps:$4 sm:$0xff]  }
 0xa31   :  { %v3871_v0 = vadd.f32 %v3865_v62, %v13214_v48  ;;  %v3867_v1 = vpop.f32.mrb[82].mxu0 }
 0xa32   :  { %v3868_v56 = vpop.f32.mrb[83].mxu0 }
 0xa37   :  { %v4049_v59 = vpop.f32.mrb[44].mxu1  ;;  %v4097_v60 = vpop.f32.mrb[84].mxu0 }
 0xa38   :  { %v13336_v57 = vadd.f32 %v4049_v59, %v3870_v61  ;;  %v4103_v58 = vpack.c.bf16 %v4097_v60, %v4097_v60  ;;  %v4051_v27 = vpop.f32.mrb[45].mxu1  ;;  %v10944_v30 = vpop.f32.mrb[85].mxu0 }
 0xa39   :  { %v13338_v45 = vadd.f32 %v4051_v27, %v3871_v0  ;;  %v4053_v63 = vpop.f32.mrb[46].mxu1  ;;  %v4100_v2 = vpop.f32.mrb[86].mxu0 }
 0xa3a   :  { %v4054_v18 = vpop.f32.mrb[47].mxu1  ;;  %4234 = vmatmul.mubr.bf16.vlgmr.msra.gmra.mrb[88].mxu0 %v4103_v58  ;;  %v10945_v5 = vpop.f32.mrb[87].mxu0 }
 0xa3b   :  { %10955 = vmatpush3.bf16.msra.mxu0 %v12852_v35  ;;  %10958 = vmatprep.mubr.msk.bf16.mxu0 %vm12006_vm2, %v12005_v36 }
 0xa3c   :  { %10956 = vmatprep.subr.bf16.mxu0 %v12005_v36 }
 0xa3f   :  { %10957 = vmatpush3.bf16.msra.mxu0 %v12854_v37  ;;  %v4283_v48 = vpop.f32.mrb[48].mxu1 }
 0xa40   :  { %v4289_v3 = vpack.c.bf16 %v4283_v48, %v4283_v48  ;;  %v10952_v6 = vpop.f32.mrb[49].mxu1  ;;  %4573 = vmatprep.subr.bf16.mxu0 %v11381_v4  ;;  %v9307_v4 = vld [vmem:[%s14856_s8 + $0x28] sm:$0xf] }
 0xa41   :  { %v4286_v9 = vpop.f32.mrb[50].mxu1 }
 0xa42   :  { %v10953_v13 = vpop.f32.mrb[51].mxu1  ;;  %4420 = vmatmul.mubr.bf16.vlgmr.msra.gmra.mrb[52].mxu1 %v4289_v3  ;;  %10959 = vmatmul.mubr.msk.bf16.vlgmr.msra.gmra.mrb[92].mxu0 %vm2948_vm7, %v9239_v55  ;;  %v11427_v3 = vld [vmem:[%s14852_s9 + $0x500] ss:$8 sps:$4 sm:$0xff]  }
 0xa43   :  { %10963 = vmatpush3.bf16.msra.mxu1 %v12852_v35  ;;  %10966 = vmatprep.mubr.msk.bf16.mxu1 %vm12006_vm2, %v12005_v36  ;;  %v11438_v13 = vld [vmem:[%s14852_s9 + $0x584] ss:$8 sps:$4 sm:$0xff]  }
 0xa44   :  { %10964 = vmatprep.subr.bf16.mxu1 %v12005_v36  ;;  %4574 = vmatpush1.bf16.msra.mxu0 %v11379_v7  ;;  %v11432_v7 = vld [vmem:[%s14852_s9 + $0x514] ss:$8 sps:$4 sm:$0xff]  }
 0xa45   :  { %4575 = vmatprep.subr.bf16.mxu0 %v11384_v12  ;;  %4605 = vmatprep.mubr.bf16.mxu0 %v12007_v11  ;;  %v11430_v12 = vld [vmem:[%s14852_s9 + $0x510] ss:$8 sps:$4 sm:$0xff]  }
 0xa47   :  { %10965 = vmatpush3.bf16.msra.mxu1 %v12854_v37 }
 0xa48   :  { %4576 = vmatpush1.bf16.msra.mxu0 %v11382_v14  ;;  %4759 = vmatprep.subr.bf16.mxu1 %v11390_v15  ;;  %v11435_v14 = vld [vmem:[%s14852_s9 + $0x524] ss:$8 sps:$4 sm:$0xff]  }
 0xa49   :  { %4577 = vmatprep.subr.bf16.mxu0 %v11387_v16  ;;  %v9341_v15 = vld [vmem:[%s14856_s8 + $0x2c] sm:$0xf]  ;;  %v11436_v16 = vld [vmem:[%s14852_s9 + $0x580] ss:$8 sps:$4 sm:$0xff]  }
 0xa4a   :  { %10967 = vmatmul.mubr.msk.bf16.vlgmr.msra.gmra.mrb[56].mxu1 %vm2948_vm7, %v9273_v17  ;;  %v11433_v17 = vld [vmem:[%s14852_s9 + $0x520] ss:$8 sps:$4 sm:$0xff]  }
 0xa4b   :  { %4760 = vmatpush1.bf16.msra.mxu1 %v11388_v19  ;;  %4791 = vmatprep.mubr.bf16.mxu1 %v12007_v11  ;;  %v11444_v19 = vld [vmem:[%s14852_s9 + $0x594] ss:$8 sps:$4 sm:$0xff]  }
 0xa4c   :  { %4578 = vmatpush1.bf16.msra.mxu0 %v11385_v20  ;;  %4761 = vmatprep.subr.bf16.mxu1 %v11396_v21  ;;  %v11441_v20 = vld [vmem:[%s14852_s9 + $0x534] ss:$8 sps:$4 sm:$0xff]   ;;  %v11442_v21 = vld [vmem:[%s14852_s9 + $0x590] ss:$8 sps:$4 sm:$0xff]  }
 0xa4d   :  { %4579 = vmatprep.subr.bf16.mxu0 %v11393_v22  ;;  %v11439_v22 = vld [vmem:[%s14852_s9 + $0x530] ss:$8 sps:$4 sm:$0xff]  }
 0xa4f   :  { %4762 = vmatpush1.bf16.msra.mxu1 %v11394_v23  ;;  %v11450_v23 = vld [vmem:[%s14852_s9 + $0x5a4] ss:$8 sps:$4 sm:$0xff]  }
 0xa50   :  { %4580 = vmatpush1.bf16.msra.mxu0 %v11391_v24  ;;  %4763 = vmatprep.subr.bf16.mxu1 %v11402_v25  ;;  %v11447_v24 = vld [vmem:[%s14852_s9 + $0x544] ss:$8 sps:$4 sm:$0xff]   ;;  %v11448_v25 = vld [vmem:[%s14852_s9 + $0x5a0] ss:$8 sps:$4 sm:$0xff]  }
 0xa51   :  { %4581 = vmatprep.subr.bf16.mxu0 %v11399_v26  ;;  %v11445_v26 = vld [vmem:[%s14852_s9 + $0x540] ss:$8 sps:$4 sm:$0xff]  }
 0xa53   :  { %4764 = vmatpush1.bf16.msra.mxu1 %v11400_v28  ;;  %v11456_v28 = vld [vmem:[%s14852_s9 + $0x5b4] ss:$8 sps:$4 sm:$0xff]  }
 0xa54   :  { %4582 = vmatpush1.bf16.msra.mxu0 %v11397_v29  ;;  %4765 = vmatprep.subr.bf16.mxu1 %v11408_v31  ;;  %v11453_v29 = vld [vmem:[%s14852_s9 + $0x554] ss:$8 sps:$4 sm:$0xff]   ;;  %v11454_v31 = vld [vmem:[%s14852_s9 + $0x5b0] ss:$8 sps:$4 sm:$0xff]  }
 0xa55   :  { %4583 = vmatprep.subr.bf16.mxu0 %v11405_v32  ;;  %v11451_v32 = vld [vmem:[%s14852_s9 + $0x550] ss:$8 sps:$4 sm:$0xff]  }
 0xa57   :  { %4766 = vmatpush1.bf16.msra.mxu1 %v11406_v33  ;;  %v11459_v33 = vld [vmem:[%s14852_s9 + $0x564] ss:$8 sps:$4 sm:$0xff]  }
 0xa58   :  { %4584 = vmatpush1.bf16.msra.mxu0 %v11403_v34  ;;  %4767 = vmatprep.subr.bf16.mxu1 %v11414_v39  ;;  %v11462_v34 = vld [vmem:[%s14852_s9 + $0x5c4] ss:$8 sps:$4 sm:$0xff]   ;;  %v11460_v39 = vld [vmem:[%s14852_s9 + $0x5c0] ss:$8 sps:$4 sm:$0xff]  }
 0xa59   :  { %4585 = vmatprep.subr.bf16.mxu0 %v11411_v38  ;;  %v11457_v38 = vld [vmem:[%s14852_s9 + $0x560] ss:$8 sps:$4 sm:$0xff]  }
 0xa5b   :  { %4768 = vmatpush1.bf16.msra.mxu1 %v11412_v41  ;;  %v11463_v41 = vld [vmem:[%s14852_s9 + $0x570] ss:$8 sps:$4 sm:$0xff]  }
 0xa5c   :  { %4586 = vmatpush1.bf16.msra.mxu0 %v11409_v40  ;;  %4769 = vmatprep.subr.bf16.mxu1 %v11420_v46  ;;  %v11465_v40 = vld [vmem:[%s14852_s9 + $0x574] ss:$8 sps:$4 sm:$0xff]   ;;  %v11469_v46 = vld [vmem:[%s14852_s9 + $0x5e0] ss:$8 sps:$4 sm:$0xff]  }
 0xa5d   :  { %4587 = vmatprep.subr.bf16.mxu0 %v11417_v42  ;;  %v11466_v42 = vld [vmem:[%s14852_s9 + $0x5d0] ss:$8 sps:$4 sm:$0xff]  }
 0xa5f   :  { %4770 = vmatpush1.bf16.msra.mxu1 %v11418_v44  ;;  %v11471_v44 = vld [vmem:[%s14852_s9 + $0x5e4] ss:$8 sps:$4 sm:$0xff]  }
 0xa60   :  { %4588 = vmatpush1.bf16.msra.mxu0 %v11415_v43  ;;  %4771 = vmatprep.subr.bf16.mxu1 %v11423_v47  ;;  %v11468_v43 = vld [vmem:[%s14852_s9 + $0x5d4] ss:$8 sps:$4 sm:$0xff]   ;;  %v11472_v47 = vld [vmem:[%s14852_s9 + $0x5f0] ss:$8 sps:$4 sm:$0xff]  }
 0xa61   :  { %10970 = vmatprep.subr.bf16.mxu0 %v12005_v36 }
 0xa63   :  { %4772 = vmatpush1.bf16.msra.mxu1 %v11421_v49  ;;  %v11474_v49 = vld [vmem:[%s14852_s9 + $0x5f4] ss:$8 sps:$4 sm:$0xff]  }
 0xa64   :  { %4773 = vmatprep.subr.bf16.mxu1 %v11426_v51 }
 0xa67   :  { %4774 = vmatpush1.bf16.msra.mxu1 %v11424_v50 }
 0xa68   :  { %10978 = vmatprep.subr.bf16.mxu1 %v12005_v36 }
 0xb0d   :  { %v4235_v52 = vpop.f32.mrb[88].mxu0 }
 0xb0e   :  { %v4242_v53 = vadd.f32 %v4235_v52, %v13336_v57  ;;  %v4237_v54 = vpop.f32.mrb[89].mxu0  ;;  %v11429_v57 = vld [vmem:[%s14852_s9 + $0x504] ss:$8 sps:$4 sm:$0xff]  }
 0xb0f   :  { %v4243_v61 = vadd.f32 %v4237_v54, %v13338_v45  ;;  %v4239_v62 = vpop.f32.mrb[90].mxu0 }
 0xb10   :  { %v4240_v0 = vpop.f32.mrb[91].mxu0 }
 0xb15   :  { %v4421_v1 = vpop.f32.mrb[52].mxu1  ;;  %v4469_v56 = vpop.f32.mrb[92].mxu0 }
 0xb16   :  { %v13460_v59 = vadd.f32 %v4421_v1, %v4242_v53  ;;  %v4475_v60 = vpack.c.bf16 %v4469_v56, %v4469_v56  ;;  %v4423_v58 = vpop.f32.mrb[53].mxu1  ;;  %v10960_v27 = vpop.f32.mrb[93].mxu0 }
 0xb17   :  { %v13462_v30 = vadd.f32 %v4423_v58, %v4243_v61  ;;  %v4425_v63 = vpop.f32.mrb[54].mxu1  ;;  %v4472_v2 = vpop.f32.mrb[94].mxu0 }
 0xb18   :  { %v4426_v18 = vpop.f32.mrb[55].mxu1  ;;  %4606 = vmatmul.mubr.bf16.vlgmr.msra.gmra.mrb[96].mxu0 %v4475_v60  ;;  %v10961_v5 = vpop.f32.mrb[95].mxu0 }
 0xb19   :  { %10971 = vmatpush3.bf16.msra.mxu0 %v12852_v35  ;;  %10974 = vmatprep.mubr.msk.bf16.mxu0 %vm12006_vm2, %v12005_v36 }
 0xb1a   :  { %10972 = vmatprep.subr.bf16.mxu0 %v12005_v36 }
 0xb1d   :  { %10973 = vmatpush3.bf16.msra.mxu0 %v12854_v37  ;;  %v4655_v45 = vpop.f32.mrb[56].mxu1 }
 0xb1e   :  { %v4661_v48 = vpack.c.bf16 %v4655_v45, %v4655_v45  ;;  %v10968_v55 = vpop.f32.mrb[57].mxu1  ;;  %4945 = vmatprep.subr.bf16.mxu0 %v11429_v57  ;;  %v9375_v57 = vld [vmem:[%s14856_s8 + $0x30] sm:$0xf] }
 0xb1f   :  { %v4658_v6 = vpop.f32.mrb[58].mxu1 }
 0xb20   :  { %v10969_v9 = vpop.f32.mrb[59].mxu1  ;;  %4792 = vmatmul.mubr.bf16.vlgmr.msra.gmra.mrb[60].mxu1 %v4661_v48  ;;  %10975 = vmatmul.mubr.msk.bf16.vlgmr.msra.gmra.mrb[100].mxu0 %vm2948_vm7, %v9307_v4  ;;  %v11475_v48 = vld [vmem:[%s14852_s9 + $0x600] ss:$8 sps:$4 sm:$0xff]  }
 0xb21   :  { %10979 = vmatpush3.bf16.msra.mxu1 %v12852_v35  ;;  %10982 = vmatprep.mubr.msk.bf16.mxu1 %vm12006_vm2, %v12005_v36  ;;  %v11486_v9 = vld [vmem:[%s14852_s9 + $0x684] ss:$8 sps:$4 sm:$0xff]  }
 0xb22   :  { %10980 = vmatprep.subr.bf16.mxu1 %v12005_v36  ;;  %4946 = vmatpush1.bf16.msra.mxu0 %v11427_v3  ;;  %v11480_v3 = vld [vmem:[%s14852_s9 + $0x614] ss:$8 sps:$4 sm:$0xff]  }
 0xb23   :  { %4947 = vmatprep.subr.bf16.mxu0 %v11432_v7  ;;  %4977 = vmatprep.mubr.bf16.mxu0 %v12007_v11  ;;  %v11478_v7 = vld [vmem:[%s14852_s9 + $0x610] ss:$8 sps:$4 sm:$0xff]  }
 0xb25   :  { %10981 = vmatpush3.bf16.msra.mxu1 %v12854_v37 }
 0xb26   :  { %4948 = vmatpush1.bf16.msra.mxu0 %v11430_v12  ;;  %5131 = vmatprep.subr.bf16.mxu1 %v11438_v13  ;;  %v11483_v12 = vld [vmem:[%s14852_s9 + $0x624] ss:$8 sps:$4 sm:$0xff]   ;;  %v9409_v13 = vld [vmem:[%s14856_s8 + $0x34] sm:$0xf] }
 0xb27   :  { %4949 = vmatprep.subr.bf16.mxu0 %v11435_v14  ;;  %v11484_v14 = vld [vmem:[%s14852_s9 + $0x680] ss:$8 sps:$4 sm:$0xff]  }
 0xb28   :  { %10983 = vmatmul.mubr.msk.bf16.vlgmr.msra.gmra.mrb[64].mxu1 %vm2948_vm7, %v9341_v15  ;;  %v11481_v15 = vld [vmem:[%s14852_s9 + $0x620] ss:$8 sps:$4 sm:$0xff]  }
 0xb29   :  { %5132 = vmatpush1.bf16.msra.mxu1 %v11436_v16  ;;  %5163 = vmatprep.mubr.bf16.mxu1 %v12007_v11  ;;  %v11492_v16 = vld [vmem:[%s14852_s9 + $0x694] ss:$8 sps:$4 sm:$0xff]  }
 0xb2a   :  { %4950 = vmatpush1.bf16.msra.mxu0 %v11433_v17  ;;  %5133 = vmatprep.subr.bf16.mxu1 %v11444_v19  ;;  %v11489_v17 = vld [vmem:[%s14852_s9 + $0x634] ss:$8 sps:$4 sm:$0xff]   ;;  %v11490_v19 = vld [vmem:[%s14852_s9 + $0x690] ss:$8 sps:$4 sm:$0xff]  }
 0xb2b   :  { %4951 = vmatprep.subr.bf16.mxu0 %v11441_v20  ;;  %v11487_v20 = vld [vmem:[%s14852_s9 + $0x630] ss:$8 sps:$4 sm:$0xff]  }
 0xb2d   :  { %5134 = vmatpush1.bf16.msra.mxu1 %v11442_v21  ;;  %v11498_v21 = vld [vmem:[%s14852_s9 + $0x6a4] ss:$8 sps:$4 sm:$0xff]  }
 0xb2e   :  { %4952 = vmatpush1.bf16.msra.mxu0 %v11439_v22  ;;  %5135 = vmatprep.subr.bf16.mxu1 %v11450_v23  ;;  %v11495_v22 = vld [vmem:[%s14852_s9 + $0x644] ss:$8 sps:$4 sm:$0xff]   ;;  %v11496_v23 = vld [vmem:[%s14852_s9 + $0x6a0] ss:$8 sps:$4 sm:$0xff]  }
 0xb2f   :  { %4953 = vmatprep.subr.bf16.mxu0 %v11447_v24  ;;  %v11493_v24 = vld [vmem:[%s14852_s9 + $0x640] ss:$8 sps:$4 sm:$0xff]  }
 0xb31   :  { %5136 = vmatpush1.bf16.msra.mxu1 %v11448_v25  ;;  %v11504_v25 = vld [vmem:[%s14852_s9 + $0x6b4] ss:$8 sps:$4 sm:$0xff]  }
 0xb32   :  { %4954 = vmatpush1.bf16.msra.mxu0 %v11445_v26  ;;  %5137 = vmatprep.subr.bf16.mxu1 %v11456_v28  ;;  %v11501_v26 = vld [vmem:[%s14852_s9 + $0x654] ss:$8 sps:$4 sm:$0xff]   ;;  %v11502_v28 = vld [vmem:[%s14852_s9 + $0x6b0] ss:$8 sps:$4 sm:$0xff]  }
 0xb33   :  { %4955 = vmatprep.subr.bf16.mxu0 %v11453_v29  ;;  %v11499_v29 = vld [vmem:[%s14852_s9 + $0x650] ss:$8 sps:$4 sm:$0xff]  }
 0xb35   :  { %5138 = vmatpush1.bf16.msra.mxu1 %v11454_v31  ;;  %v11507_v31 = vld [vmem:[%s14852_s9 + $0x664] ss:$8 sps:$4 sm:$0xff]  }
 0xb36   :  { %4956 = vmatpush1.bf16.msra.mxu0 %v11451_v32  ;;  %5139 = vmatprep.subr.bf16.mxu1 %v11462_v34  ;;  %v11510_v32 = vld [vmem:[%s14852_s9 + $0x6c4] ss:$8 sps:$4 sm:$0xff]   ;;  %v11508_v34 = vld [vmem:[%s14852_s9 + $0x6c0] ss:$8 sps:$4 sm:$0xff]  }
 0xb37   :  { %4957 = vmatprep.subr.bf16.mxu0 %v11459_v33  ;;  %v11505_v33 = vld [vmem:[%s14852_s9 + $0x660] ss:$8 sps:$4 sm:$0xff]  }
 0xb39   :  { %5140 = vmatpush1.bf16.msra.mxu1 %v11460_v39  ;;  %v11511_v39 = vld [vmem:[%s14852_s9 + $0x670] ss:$8 sps:$4 sm:$0xff]  }
 0xb3a   :  { %4958 = vmatpush1.bf16.msra.mxu0 %v11457_v38  ;;  %5141 = vmatprep.subr.bf16.mxu1 %v11468_v43  ;;  %v11513_v38 = vld [vmem:[%s14852_s9 + $0x674] ss:$8 sps:$4 sm:$0xff]   ;;  %v11517_v43 = vld [vmem:[%s14852_s9 + $0x6e0] ss:$8 sps:$4 sm:$0xff]  }
 0xb3b   :  { %4959 = vmatprep.subr.bf16.mxu0 %v11465_v40  ;;  %v11514_v40 = vld [vmem:[%s14852_s9 + $0x6d0] ss:$8 sps:$4 sm:$0xff]  }
 0xb3d   :  { %5142 = vmatpush1.bf16.msra.mxu1 %v11466_v42  ;;  %v11519_v42 = vld [vmem:[%s14852_s9 + $0x6e4] ss:$8 sps:$4 sm:$0xff]  }
 0xb3e   :  { %4960 = vmatpush1.bf16.msra.mxu0 %v11463_v41  ;;  %5143 = vmatprep.subr.bf16.mxu1 %v11471_v44  ;;  %v11516_v41 = vld [vmem:[%s14852_s9 + $0x6d4] ss:$8 sps:$4 sm:$0xff]   ;;  %v11520_v44 = vld [vmem:[%s14852_s9 + $0x6f0] ss:$8 sps:$4 sm:$0xff]  }
 0xb3f   :  { %10986 = vmatprep.subr.bf16.mxu0 %v12005_v36 }
 0xb41   :  { %5144 = vmatpush1.bf16.msra.mxu1 %v11469_v46  ;;  %v11522_v46 = vld [vmem:[%s14852_s9 + $0x6f4] ss:$8 sps:$4 sm:$0xff]  }
 0xb42   :  { %5145 = vmatprep.subr.bf16.mxu1 %v11474_v49 }
 0xb45   :  { %5146 = vmatpush1.bf16.msra.mxu1 %v11472_v47 }
 0xb46   :  { %10994 = vmatprep.subr.bf16.mxu1 %v12005_v36 }
 0xbeb   :  { %v4607_v50 = vpop.f32.mrb[96].mxu0 }
 0xbec   :  { %v4614_v51 = vadd.f32 %v4607_v50, %v13460_v59  ;;  %v4609_v52 = vpop.f32.mrb[97].mxu0  ;;  %v11477_v59 = vld [vmem:[%s14852_s9 + $0x604] ss:$8 sps:$4 sm:$0xff]  }
 0xbed   :  { %v4615_v53 = vadd.f32 %v4609_v52, %v13462_v30  ;;  %v4611_v54 = vpop.f32.mrb[98].mxu0 }
 0xbee   :  { %v4612_v61 = vpop.f32.mrb[99].mxu0 }
 0xbf3   :  { %v4793_v62 = vpop.f32.mrb[60].mxu1  ;;  %v4841_v0 = vpop.f32.mrb[100].mxu0 }
 0xbf4   :  { %v13584_v1 = vadd.f32 %v4793_v62, %v4614_v51  ;;  %v4847_v56 = vpack.c.bf16 %v4841_v0, %v4841_v0  ;;  %v4795_v60 = vpop.f32.mrb[61].mxu1  ;;  %v10976_v58 = vpop.f32.mrb[101].mxu0 }
 0xbf5   :  { %v13586_v27 = vadd.f32 %v4795_v60, %v4615_v53  ;;  %v4797_v63 = vpop.f32.mrb[62].mxu1  ;;  %v4844_v2 = vpop.f32.mrb[102].mxu0 }
 0xbf6   :  { %v4798_v18 = vpop.f32.mrb[63].mxu1  ;;  %4978 = vmatmul.mubr.bf16.vlgmr.msra.gmra.mrb[104].mxu0 %v4847_v56  ;;  %v10977_v5 = vpop.f32.mrb[103].mxu0 }
 0xbf7   :  { %10987 = vmatpush3.bf16.msra.mxu0 %v12852_v35  ;;  %10990 = vmatprep.mubr.msk.bf16.mxu0 %vm12006_vm2, %v12005_v36 }
 0xbf8   :  { %10988 = vmatprep.subr.bf16.mxu0 %v12005_v36 }
 0xbfb   :  { %10989 = vmatpush3.bf16.msra.mxu0 %v12854_v37  ;;  %v5027_v30 = vpop.f32.mrb[64].mxu1 }
 0xbfc   :  { %v5033_v45 = vpack.c.bf16 %v5027_v30, %v5027_v30  ;;  %v10984_v4 = vpop.f32.mrb[65].mxu1  ;;  %5317 = vmatprep.subr.bf16.mxu0 %v11477_v59  ;;  %v9443_v59 = vld [vmem:[%s14856_s8 + $0x38] sm:$0xf] }
 0xbfd   :  { %v5030_v55 = vpop.f32.mrb[66].mxu1 }
 0xbfe   :  { %v10985_v6 = vpop.f32.mrb[67].mxu1  ;;  %5164 = vmatmul.mubr.bf16.vlgmr.msra.gmra.mrb[68].mxu1 %v5033_v45  ;;  %10991 = vmatmul.mubr.msk.bf16.vlgmr.msra.gmra.mrb[108].mxu0 %vm2948_vm7, %v9375_v57  ;;  %v11523_v45 = vld [vmem:[%s14852_s9 + $0x700] ss:$8 sps:$4 sm:$0xff]  }
 0xbff   :  { %10995 = vmatpush3.bf16.msra.mxu1 %v12852_v35  ;;  %10998 = vmatprep.mubr.msk.bf16.mxu1 %vm12006_vm2, %v12005_v36  ;;  %v11534_v6 = vld [vmem:[%s14852_s9 + $0x784] ss:$8 sps:$4 sm:$0xff]  }
 0xc00   :  { %10996 = vmatprep.subr.bf16.mxu1 %v12005_v36  ;;  %5318 = vmatpush1.bf16.msra.mxu0 %v11475_v48  ;;  %v11528_v48 = vld [vmem:[%s14852_s9 + $0x714] ss:$8 sps:$4 sm:$0xff]  }
 0xc01   :  { %5319 = vmatprep.subr.bf16.mxu0 %v11480_v3  ;;  %5349 = vmatprep.mubr.bf16.mxu0 %v12007_v11  ;;  %v11526_v3 = vld [vmem:[%s14852_s9 + $0x710] ss:$8 sps:$4 sm:$0xff]  }
 0xc03   :  { %10997 = vmatpush3.bf16.msra.mxu1 %v12854_v37 }
 0xc04   :  { %5320 = vmatpush1.bf16.msra.mxu0 %v11478_v7  ;;  %5503 = vmatprep.subr.bf16.mxu1 %v11486_v9  ;;  %v11531_v7 = vld [vmem:[%s14852_s9 + $0x724] ss:$8 sps:$4 sm:$0xff]   ;;  %v11529_v9 = vld [vmem:[%s14852_s9 + $0x720] ss:$8 sps:$4 sm:$0xff]  }
 0xc05   :  { %5321 = vmatprep.subr.bf16.mxu0 %v11483_v12  ;;  %v11540_v12 = vld [vmem:[%s14852_s9 + $0x794] ss:$8 sps:$4 sm:$0xff]  }
 0xc06   :  { %10999 = vmatmul.mubr.msk.bf16.vlgmr.msra.gmra.mrb[72].mxu1 %vm2948_vm7, %v9409_v13  ;;  %v11538_v13 = vld [vmem:[%s14852_s9 + $0x790] ss:$8 sps:$4 sm:$0xff]  }
 0xc07   :  { %5504 = vmatpush1.bf16.msra.mxu1 %v11484_v14  ;;  %5535 = vmatprep.mubr.bf16.mxu1 %v12007_v11  ;;  %v11535_v14 = vld [vmem:[%s14852_s9 + $0x730] ss:$8 sps:$4 sm:$0xff]  }
 0xc08   :  { %5322 = vmatpush1.bf16.msra.mxu0 %v11481_v15  ;;  %5505 = vmatprep.subr.bf16.mxu1 %v11492_v16  ;;  %v11546_v15 = vld [vmem:[%s14852_s9 + $0x7a4] ss:$8 sps:$4 sm:$0xff]  }
 0xc09   :  { %5323 = vmatprep.subr.bf16.mxu0 %v11489_v17  ;;  %v11543_v16 = vld [vmem:[%s14852_s9 + $0x744] ss:$8 sps:$4 sm:$0xff]   ;;  %v11544_v17 = vld [vmem:[%s14852_s9 + $0x7a0] ss:$8 sps:$4 sm:$0xff]  }
 0xc0b   :  { %5506 = vmatpush1.bf16.msra.mxu1 %v11490_v19  ;;  %v11541_v19 = vld [vmem:[%s14852_s9 + $0x740] ss:$8 sps:$4 sm:$0xff]  }
 0xc0c   :  { %5324 = vmatpush1.bf16.msra.mxu0 %v11487_v20  ;;  %5507 = vmatprep.subr.bf16.mxu1 %v11498_v21  ;;  %v11552_v20 = vld [vmem:[%s14852_s9 + $0x7b4] ss:$8 sps:$4 sm:$0xff]  }
 0xc0d   :  { %5325 = vmatprep.subr.bf16.mxu0 %v11495_v22  ;;  %v11549_v21 = vld [vmem:[%s14852_s9 + $0x754] ss:$8 sps:$4 sm:$0xff]   ;;  %v11550_v22 = vld [vmem:[%s14852_s9 + $0x7b0] ss:$8 sps:$4 sm:$0xff]  }
 0xc0f   :  { %5508 = vmatpush1.bf16.msra.mxu1 %v11496_v23  ;;  %v11547_v23 = vld [vmem:[%s14852_s9 + $0x750] ss:$8 sps:$4 sm:$0xff]  }
 0xc10   :  { %5326 = vmatpush1.bf16.msra.mxu0 %v11493_v24  ;;  %5509 = vmatprep.subr.bf16.mxu1 %v11504_v25  ;;  %v11553_v24 = vld [vmem:[%s14852_s9 + $0x760] ss:$8 sps:$4 sm:$0xff]   ;;  %v11555_v25 = vld [vmem:[%s14852_s9 + $0x764] ss:$8 sps:$4 sm:$0xff]  }
 0xc11   :  { %5327 = vmatprep.subr.bf16.mxu0 %v11501_v26  ;;  %v11556_v26 = vld [vmem:[%s14852_s9 + $0x7c0] ss:$8 sps:$4 sm:$0xff]  }
 0xc13   :  { %5510 = vmatpush1.bf16.msra.mxu1 %v11502_v28  ;;  %v11558_v28 = vld [vmem:[%s14852_s9 + $0x7c4] ss:$8 sps:$4 sm:$0xff]  }
 0xc14   :  { %5328 = vmatpush1.bf16.msra.mxu0 %v11499_v29  ;;  %5511 = vmatprep.subr.bf16.mxu1 %v11510_v32  ;;  %v11561_v29 = vld [vmem:[%s14852_s9 + $0x774] ss:$8 sps:$4 sm:$0xff]   ;;  %v11559_v32 = vld [vmem:[%s14852_s9 + $0x770] ss:$8 sps:$4 sm:$0xff]  }
 0xc15   :  { %5329 = vmatprep.subr.bf16.mxu0 %v11507_v31  ;;  %v11564_v31 = vld [vmem:[%s14852_s9 + $0x7d4] ss:$8 sps:$4 sm:$0xff]  }
 0xc17   :  { %5512 = vmatpush1.bf16.msra.mxu1 %v11508_v34  ;;  %v11567_v34 = vld [vmem:[%s14852_s9 + $0x7e4] ss:$8 sps:$4 sm:$0xff]  }
 0xc18   :  { %5330 = vmatpush1.bf16.msra.mxu0 %v11505_v33  ;;  %5513 = vmatprep.subr.bf16.mxu1 %v11516_v41  ;;  %v11562_v33 = vld [vmem:[%s14852_s9 + $0x7d0] ss:$8 sps:$4 sm:$0xff]  }
 0xc19   :  { %5331 = vmatprep.subr.bf16.mxu0 %v11513_v38  ;;  %v11565_v38 = vld [vmem:[%s14852_s9 + $0x7e0] ss:$8 sps:$4 sm:$0xff]  }
 0xc1b   :  { %5514 = vmatpush1.bf16.msra.mxu1 %v11514_v40  ;;  %v11568_v40 = vld [vmem:[%s14852_s9 + $0x7f0] ss:$8 sps:$4 sm:$0xff]  }
 0xc1c   :  { %5332 = vmatpush1.bf16.msra.mxu0 %v11511_v39  ;;  %5515 = vmatprep.subr.bf16.mxu1 %v11519_v42  ;;  %v11570_v39 = vld [vmem:[%s14852_s9 + $0x7f4] ss:$8 sps:$4 sm:$0xff]  }
 0xc1d   :  { %11002 = vmatprep.subr.bf16.mxu0 %v12005_v36 }
 0xc1f   :  { %5516 = vmatpush1.bf16.msra.mxu1 %v11517_v43 }
 0xc20   :  { %5517 = vmatprep.subr.bf16.mxu1 %v11522_v46 }
 0xc23   :  { %5518 = vmatpush1.bf16.msra.mxu1 %v11520_v44 }
 0xc24   :  { %11010 = vmatprep.subr.bf16.mxu1 %v12005_v36 }
 0xcc9   :  { %v4979_v47 = vpop.f32.mrb[104].mxu0 }
 0xcca   :  { %v4986_v49 = vadd.f32 %v4979_v47, %v13584_v1  ;;  %v4981_v50 = vpop.f32.mrb[105].mxu0  ;;  %v11525_v1 = vld [vmem:[%s14852_s9 + $0x704] ss:$8 sps:$4 sm:$0xff]  }
 0xccb   :  { %v4987_v51 = vadd.f32 %v4981_v50, %v13586_v27  ;;  %v4983_v52 = vpop.f32.mrb[106].mxu0 }
 0xccc   :  { %v4984_v53 = vpop.f32.mrb[107].mxu0 }
 0xcd1   :  { %v5165_v54 = vpop.f32.mrb[68].mxu1  ;;  %v5213_v61 = vpop.f32.mrb[108].mxu0 }
 0xcd2   :  { %v13708_v62 = vadd.f32 %v5165_v54, %v4986_v49  ;;  %v5219_v0 = vpack.c.bf16 %v5213_v61, %v5213_v61  ;;  %v5167_v56 = vpop.f32.mrb[69].mxu1  ;;  %v10992_v60 = vpop.f32.mrb[109].mxu0 }
 0xcd3   :  { %v13710_v58 = vadd.f32 %v5167_v56, %v4987_v51  ;;  %v5169_v63 = vpop.f32.mrb[70].mxu1  ;;  %v5216_v2 = vpop.f32.mrb[110].mxu0 }
 0xcd4   :  { %v5170_v18 = vpop.f32.mrb[71].mxu1  ;;  %5350 = vmatmul.mubr.bf16.vlgmr.msra.gmra.mrb[112].mxu0 %v5219_v0  ;;  %v10993_v5 = vpop.f32.mrb[111].mxu0 }
 0xcd5   :  { %11003 = vmatpush3.bf16.msra.mxu0 %v12852_v35  ;;  %11006 = vmatprep.mubr.msk.bf16.mxu0 %vm12006_vm2, %v12005_v36 }
 0xcd6   :  { %11004 = vmatprep.subr.bf16.mxu0 %v12005_v36 }
 0xcd9   :  { %11005 = vmatpush3.bf16.msra.mxu0 %v12854_v37  ;;  %v5399_v27 = vpop.f32.mrb[72].mxu1 }
 0xcda   :  { %v5405_v30 = vpack.c.bf16 %v5399_v27, %v5399_v27  ;;  %v11000_v57 = vpop.f32.mrb[73].mxu1  ;;  %5689 = vmatprep.subr.bf16.mxu0 %v11525_v1  ;;  %v11571_v1 = vld [vmem:[%s14857_s14 + $0x200] ss:$16 sps:$4 sm:$0xff]   ;;  %v11573_v27 = vld [vmem:[%s14857_s14 + $0x204] ss:$16 sps:$4 sm:$0xff]  }
 0xcdb   :  { %v5402_v4 = vpop.f32.mrb[74].mxu1  ;;  %v11585_v57 = vld [vmem:[%s14857_s14 + $0x244] ss:$16 sps:$4 sm:$0xff]  }
 0xcdc   :  { %v11001_v55 = vpop.f32.mrb[75].mxu1  ;;  %5536 = vmatmul.mubr.bf16.vlgmr.msra.gmra.mrb[76].mxu1 %v5405_v30  ;;  %11007 = vmatmul.mubr.msk.bf16.vlgmr.msra.gmra.mrb[116].mxu0 %vm2948_vm7, %v9443_v59  ;;  %v11579_v59 = vld [vmem:[%s14857_s14 + $0x224] ss:$16 sps:$4 sm:$0xff]   ;;  %v11577_v30 = vld [vmem:[%s14857_s14 + $0x220] ss:$16 sps:$4 sm:$0xff]  }
 0xcdd   :  { %11011 = vmatpush3.bf16.msra.mxu1 %v12852_v35  ;;  %11014 = vmatprep.mubr.msk.bf16.mxu1 %vm12006_vm2, %v12005_v36  ;;  %v11532_v35 = vld [vmem:[%s14852_s9 + $0x780] ss:$8 sps:$4 sm:$0xff]   ;;  %v11591_v4 = vld [vmem:[%s14857_s14 + $0x264] ss:$16 sps:$4 sm:$0xff]  }
 0xcde   :  { %11012 = vmatprep.subr.bf16.mxu1 %v12005_v36  ;;  %5690 = vmatpush1.bf16.msra.mxu0 %v11523_v45  ;;  %v9477_v36 = vld [vmem:[%s14856_s8 + $0x3c] sm:$0xf]  ;;  %v11583_v45 = vld [vmem:[%s14857_s14 + $0x240] ss:$16 sps:$4 sm:$0xff]   ;;  %v11597_v55 = vld [vmem:[%s14857_s14 + $0x284] ss:$16 sps:$4 sm:$0xff]  }
 0xcdf   :  { %5691 = vmatprep.subr.bf16.mxu0 %v11528_v48  ;;  %5721 = vmatprep.mubr.bf16.mxu0 %v12007_v11  ;;  %v11589_v48 = vld [vmem:[%s14857_s14 + $0x260] ss:$16 sps:$4 sm:$0xff]  }
 0xce1   :  { %11013 = vmatpush3.bf16.msra.mxu1 %v12854_v37  ;;  %v11537_v37 = vld [vmem:[%s14852_s9 + $0x734] ss:$8 sps:$4 sm:$0xff]  }
 0xce2   :  { %5692 = vmatpush1.bf16.msra.mxu0 %v11526_v3  ;;  %5875 = vmatprep.subr.bf16.mxu1 %v11534_v6  ;;  %v11595_v3 = vld [vmem:[%s14857_s14 + $0x280] ss:$16 sps:$4 sm:$0xff]   ;;  %v11603_v6 = vld [vmem:[%s14857_s14 + $0x2a4] ss:$16 sps:$4 sm:$0xff]  }
 0xce3   :  { %5693 = vmatprep.subr.bf16.mxu0 %v11531_v7  ;;  %v11601_v7 = vld [vmem:[%s14857_s14 + $0x2a0] ss:$16 sps:$4 sm:$0xff]  }
 0xce4   :  { %11015 = vmatmul.mubr.msk.bf16.vlgmr.msra.gmra.mrb[80].mxu1 %vm2948_vm7, %v9477_v36  ;;  %v11609_v36 = vld [vmem:[%s14857_s14 + $0x2c4] ss:$16 sps:$4 sm:$0xff]  }
 0xce5   :  { %5876 = vmatpush1.bf16.msra.mxu1 %v11532_v35  ;;  %5907 = vmatprep.mubr.bf16.mxu1 %v12007_v11  ;;  %v11607_v35 = vld [vmem:[%s14857_s14 + $0x2c0] ss:$16 sps:$4 sm:$0xff]  }
 0xce6   :  { %5694 = vmatpush1.bf16.msra.mxu0 %v11529_v9  ;;  %5877 = vmatprep.subr.bf16.mxu1 %v11540_v12  ;;  %v11615_v9 = vld [vmem:[%s14857_s14 + $0x2e4] ss:$16 sps:$4 sm:$0xff]   ;;  %v11613_v12 = vld [vmem:[%s14857_s14 + $0x2e0] ss:$16 sps:$4 sm:$0xff]  }
 0xce7   :  { %5695 = vmatprep.subr.bf16.mxu0 %v11537_v37  ;;  %v11621_v37 = vld [vmem:[%s14857_s14 + $0x304] ss:$16 sps:$4 sm:$0xff]  }
 0xce9   :  { %5878 = vmatpush1.bf16.msra.mxu1 %v11538_v13  ;;  %v11619_v13 = vld [vmem:[%s14857_s14 + $0x300] ss:$16 sps:$4 sm:$0xff]  }
 0xcea   :  { %5696 = vmatpush1.bf16.msra.mxu0 %v11535_v14  ;;  %5879 = vmatprep.subr.bf16.mxu1 %v11546_v15  ;;  %v11627_v14 = vld [vmem:[%s14857_s14 + $0x324] ss:$16 sps:$4 sm:$0xff]   ;;  %v11625_v15 = vld [vmem:[%s14857_s14 + $0x320] ss:$16 sps:$4 sm:$0xff]  }
 0xceb   :  { %5697 = vmatprep.subr.bf16.mxu0 %v11543_v16 }
 0xced   :  { %5880 = vmatpush1.bf16.msra.mxu1 %v11544_v17  ;;  %v11633_v17 = vld [vmem:[%s14857_s14 + $0x344] ss:$16 sps:$4 sm:$0xff]  }
 0xcee   :  { %5698 = vmatpush1.bf16.msra.mxu0 %v11541_v19  ;;  %5881 = vmatprep.subr.bf16.mxu1 %v11552_v20 }
 0xcef   :  { %5699 = vmatprep.subr.bf16.mxu0 %v11549_v21 }
 0xcf1   :  { %5882 = vmatpush1.bf16.msra.mxu1 %v11550_v22 }
 0xcf2   :  { %5700 = vmatpush1.bf16.msra.mxu0 %v11547_v23  ;;  %5883 = vmatprep.subr.bf16.mxu1 %v11558_v28  ;;  %v11639_v28 = vld [vmem:[%s14857_s14 + $0x364] ss:$16 sps:$4 sm:$0xff]  }
 0xcf3   :  { %5701 = vmatprep.subr.bf16.mxu0 %v11555_v25  ;;  %v5918_v25 = vld [vmem:[%s14858_s10] sm:$0x3] }
 0xcf5   :  { %5884 = vmatpush1.bf16.msra.mxu1 %v11556_v26  ;;  %v13901_v26 = vsub.s32 1, %v12840_v8 }
 0xcf6   :  { %5702 = vmatpush1.bf16.msra.mxu0 %v11553_v24  ;;  %5885 = vmatprep.subr.bf16.mxu1 %v11564_v31  ;;  %v11631_v24 = vld [vmem:[%s14857_s14 + $0x340] ss:$16 sps:$4 sm:$0xff]  }
 0xcf7   :  { %5703 = vmatprep.subr.bf16.mxu0 %v11561_v29  ;;  %v5923_v29 = vrot.slane %v5918_v25, %v12846_v10  ;;  %v11637_v31 = vld [vmem:[%s14857_s14 + $0x360] ss:$16 sps:$4 sm:$0xff]  }
 0xcf9   :  { %5886 = vmatpush1.bf16.msra.mxu1 %v11562_v33  ;;  %v5927_v33 = vrot.slane %v5918_v25, %v13901_v26  ;;  %v6001_v25 = vld [vmem:[%s14860_s12] sm:$0x3] }
 0xcfa   :  { %5704 = vmatpush1.bf16.msra.mxu0 %v11559_v32  ;;  %5887 = vmatprep.subr.bf16.mxu1 %v11567_v34  ;;  %v11645_v34 = vld [vmem:[%s14857_s14 + $0x384] ss:$16 sps:$4 sm:$0xff]  }
 0xcfd   :  { %5888 = vmatpush1.bf16.msra.mxu1 %v11565_v38 }
 0xcfe   :  { %5889 = vmatprep.subr.bf16.mxu1 %v11570_v39 }
 0xd01   :  { %5890 = vmatpush1.bf16.msra.mxu1 %v11568_v40 }
 0xd02   :  { %6575 = vmatprep.subr.bf16.mxu1 %v11573_v27 }
 0xda7   :  { %v5351_v41 = vpop.f32.mrb[112].mxu0 }
 0xda8   :  { %v5358_v42 = vadd.f32 %v5351_v41, %v13708_v62  ;;  %v5353_v43 = vpop.f32.mrb[113].mxu0 }
 0xda9   :  { %v5359_v44 = vadd.f32 %v5353_v43, %v13710_v58  ;;  %v5355_v46 = vpop.f32.mrb[114].mxu0 }
 0xdaa   :  { %v5356_v47 = vpop.f32.mrb[115].mxu0 }
 0xdab   :  { %v11651_v47 = vld [vmem:[%s14857_s14 + $0x3a4] ss:$16 sps:$4 sm:$0xff]  }
 0xdaf   :  { %v5537_v49 = vpop.f32.mrb[76].mxu1  ;;  %v5585_v50 = vpop.f32.mrb[116].mxu0 }
 0xdb0   :  { %v5544_v51 = vadd.f32 %v5537_v49, %v5358_v42  ;;  %v5591_v52 = vpack.c.bf16 %v5585_v50, %v5585_v50  ;;  %v5539_v53 = vpop.f32.mrb[77].mxu1  ;;  %v11008_v54 = vpop.f32.mrb[117].mxu0  ;;  %v11649_v50 = vld [vmem:[%s14857_s14 + $0x3a0] ss:$16 sps:$4 sm:$0xff]  }
 0xdb1   :  { %v5545_v61 = vadd.f32 %v5539_v53, %v5359_v44  ;;  %v5541_v0 = vpop.f32.mrb[78].mxu1  ;;  %v5588_v56 = vpop.f32.mrb[118].mxu0  ;;  %v11643_v44 = vld [vmem:[%s14857_s14 + $0x380] ss:$16 sps:$4 sm:$0xff]  }
 0xdb2   :  { %v5542_v60 = vpop.f32.mrb[79].mxu1  ;;  %5722 = vmatmul.mubr.bf16.vlgmr.msra.gmra.mrb[120].mxu0 %v5591_v52  ;;  %v11009_v63 = vpop.f32.mrb[119].mxu0 }
 0xdb3   :  { %6067 = vmatprep.mubr.bf16.mxu0 %v12007_v11 }
 0xdb7   :  { %v5771_v62 = vpop.f32.mrb[80].mxu1 }
 0xdb8   :  { %v5777_v2 = vpack.c.bf16 %v5771_v62, %v5771_v62  ;;  %v11016_v18 = vpop.f32.mrb[81].mxu1 }
 0xdb9   :  { %v5774_v58 = vpop.f32.mrb[82].mxu1 }
 0xdba   :  { %v11017_v5 = vpop.f32.mrb[83].mxu1  ;;  %5908 = vmatmul.mubr.bf16.vlgmr.msra.gmra.mrb[84].mxu1 %v5777_v2 }
 0xdbb   :  { %6576 = vmatpush1.bf16.msra.mxu1 %v11571_v1 }
 0xdbc   :  { %6577 = vmatprep.subr.bf16.mxu1 %v11579_v59 }
 0xdbf   :  { %6578 = vmatpush1.bf16.msra.mxu1 %v11577_v30 }
 0xdc0   :  { %6579 = vmatprep.subr.bf16.mxu1 %v11585_v57 }
 0xdc3   :  { %6580 = vmatpush1.bf16.msra.mxu1 %v11583_v45 }
 0xdc4   :  { %6581 = vmatprep.subr.bf16.mxu1 %v11591_v4 }
 0xdc7   :  { %6582 = vmatpush1.bf16.msra.mxu1 %v11589_v48 }
 0xdc8   :  { %6583 = vmatprep.subr.bf16.mxu1 %v11597_v55 }
 0xdcb   :  { %6584 = vmatpush1.bf16.msra.mxu1 %v11595_v3 }
 0xdcc   :  { %6585 = vmatprep.subr.bf16.mxu1 %v11603_v6 }
 0xdcf   :  { %6586 = vmatpush1.bf16.msra.mxu1 %v11601_v7 }
 0xdd0   :  { %6587 = vmatprep.subr.bf16.mxu1 %v11609_v36 }
 0xdd3   :  { %6588 = vmatpush1.bf16.msra.mxu1 %v11607_v35 }
 0xdd4   :  { %6589 = vmatprep.subr.bf16.mxu1 %v11615_v9 }
 0xdd7   :  { %6590 = vmatpush1.bf16.msra.mxu1 %v11613_v12 }
 0xdd8   :  { %6591 = vmatprep.subr.bf16.mxu1 %v11621_v37 }
 0xddb   :  { %6592 = vmatpush1.bf16.msra.mxu1 %v11619_v13 }
 0xddc   :  { %6593 = vmatprep.subr.bf16.mxu1 %v11627_v14 }
 0xddf   :  { %6594 = vmatpush1.bf16.msra.mxu1 %v11625_v15  ;;  %v12008_v15 = vmov 1966171168  }
 0xde0   :  { %6595 = vmatprep.subr.bf16.mxu1 %v11633_v17 }
 0xde3   :  { %6596 = vmatpush1.bf16.msra.mxu1 %v11631_v24 }
 0xde4   :  { %6597 = vmatprep.subr.bf16.mxu1 %v11639_v28 }
 0xde7   :  { %6598 = vmatpush1.bf16.msra.mxu1 %v11637_v31 }
 0xde8   :  { %6599 = vmatprep.subr.bf16.mxu1 %v11645_v34  ;;  %v6006_v34 = vrot.slane %v6001_v25, %v12846_v10 }
 0xdeb   :  { %6600 = vmatpush1.bf16.msra.mxu1 %v11643_v44 }
 0xdec   :  { %6601 = vmatprep.subr.bf16.mxu1 %v11651_v47 }
 0xdef   :  { %6602 = vmatpush1.bf16.msra.mxu1 %v11649_v50 }
 0xe85   :  { %v5723_v16 = vpop.f32.mrb[120].mxu0 }
 0xe86   :  { %v5730_v19 = vadd.f32 %v5723_v16, %v5544_v51  ;;  %v5725_v20 = vpop.f32.mrb[121].mxu0  ;;  %v5973_v16 = vunpack.c.l.s4 %v12008_v15  ;;  %v11660_v15 = vld [vmem:[%s14857_s14 + $0x3cc] ss:$16 sps:$4 sm:$0xff]  }
 0xe87   :  { %v5731_v21 = vadd.f32 %v5725_v20, %v5545_v61  ;;  %v5727_v22 = vpop.f32.mrb[122].mxu0 }
 0xe88   :  { %v5728_v23 = vpop.f32.mrb[123].mxu0  ;;  %v5974_v17 = vunpack.c.0.s8 %v5973_v16  ;;  %v11663_v16 = vld [vmem:[%s14857_s14 + $0x3e4] ss:$16 sps:$4 sm:$0xff]  }
 0xe89   :  { %v5964_v23 = vld [vmem:[%s14859_s11] sm:$0x3] }
 0xe8a   :  { %v13924_v20 = vsub.s32 %v5974_v17, %v12840_v8  ;;  %v11666_v17 = vld [vmem:[%s14857_s14 + $0x3ec] ss:$16 sps:$4 sm:$0xff]  }
 0xe8d   :  { %v5909_v32 = vpop.f32.mrb[84].mxu1 }
 0xe8e   :  { %v5916_v38 = vadd.f32 %v5909_v32, %v5730_v19  ;;  %v5911_v39 = vpop.f32.mrb[85].mxu1  ;;  %v6010_v32 = vrot.slane %v6001_v25, %v13901_v26 }
 0xe8f   :  { %v5917_v40 = vadd.f32 %v5911_v39, %v5731_v21  ;;  %v5913_v41 = vpop.f32.mrb[86].mxu1 }
 0xe90   :  { %v5930_v42 = vadd.f32 %v5923_v29, %v5916_v38  ;;  %v5914_v43 = vpop.f32.mrb[87].mxu1 }
 0xe91   :  { %v5931_v46 = vadd.f32 %v5927_v33, %v5917_v40 }
 0xe92   :  { %v5932_v49 = vrot.slane %v5930_v42, 4 }
 0xe93   :  { %v5938_v51 = vrot.slane %v5931_v46, 4 }
 0xe94   :  { %v5933_v52 = vadd.f32 %v5932_v49, %v5930_v42 }
 0xe95   :  { %v5939_v53 = vadd.f32 %v5938_v51, %v5931_v46  ;;  %v6023_v51 = vld [vmem:[%s14861_s13] sm:$0x1] }
 0xe96   :  { %v5934_v54 = vrot.slane %v5933_v52, 2 }
 0xe97   :  { %v5940_v61 = vrot.slane %v5939_v53, 2 }
 0xe98   :  { %v5935_v0 = vadd.f32 %v5934_v54, %v5933_v52  ;;  %v11576_v52 = vld [vmem:[%s14857_s14 + $0x20c] ss:$16 sps:$4 sm:$0xff]   ;;  %v11574_v54 = vld [vmem:[%s14857_s14 + $0x208] ss:$16 sps:$4 sm:$0xff]  }
 0xe99   :  { %v5941_v56 = vadd.f32 %v5940_v61, %v5939_v53  ;;  %v9513_v53 = vld [vmem:[%s14861_s13 + $0x1] sm:$0x1]  ;;  %v11582_v61 = vld [vmem:[%s14857_s14 + $0x22c] ss:$16 sps:$4 sm:$0xff]  }
 0xe9a   :  { %v5936_v60 = vrot.slane %v5935_v0, 1 }
 0xe9b   :  { %v5942_v63 = vrot.slane %v5941_v56, 1 }
 0xe9c   :  { %v5937_v62 = vadd.f32 %v5936_v60, %v5935_v0  ;;  %v11580_v0 = vld [vmem:[%s14857_s14 + $0x228] ss:$16 sps:$4 sm:$0xff]  }
 0xe9d   :  { %v5943_v2 = vadd.f32 %v5942_v63, %v5941_v56  ;;  %v11588_v56 = vld [vmem:[%s14857_s14 + $0x24c] ss:$16 sps:$4 sm:$0xff]   ;;  %v11586_v60 = vld [vmem:[%s14857_s14 + $0x248] ss:$16 sps:$4 sm:$0xff]  }
 0xe9e   :  { %v5944_v18 = vmul.f32 0.125, %v5937_v62  ;;  %v11594_v63 = vld [vmem:[%s14857_s14 + $0x26c] ss:$16 sps:$4 sm:$0xff]   ;;  %v11592_v62 = vld [vmem:[%s14857_s14 + $0x268] ss:$16 sps:$4 sm:$0xff]  }
 0xe9f   :  { %v5945_v58 = vmul.f32 0.125, %v5943_v2  ;;  %v11600_v2 = vld [vmem:[%s14857_s14 + $0x28c] ss:$16 sps:$4 sm:$0xff]  }
 0xea0   :  { %v5946_v5 = vsub.f32 %v5930_v42, %v5944_v18  ;;  %v11598_v18 = vld [vmem:[%s14857_s14 + $0x288] ss:$16 sps:$4 sm:$0xff]  }
 0xea1   :  { %v5947_v1 = vsub.f32 %v5931_v46, %v5945_v58  ;;  %v11606_v58 = vld [vmem:[%s14857_s14 + $0x2ac] ss:$16 sps:$4 sm:$0xff]  }
 0xea2   :  { %v5948_v27 = vmul.f32 %v5946_v5, %v5946_v5 }
 0xea3   :  { %v5949_v59 = vmul.f32 %v5947_v1, %v5947_v1 }
 0xea4   :  { %v5950_v30 = vrot.slane %v5948_v27, 4 }
 0xea5   :  { %v5956_v57 = vrot.slane %v5949_v59, 4 }
 0xea6   :  { %v5951_v45 = vadd.f32 %v5950_v30, %v5948_v27  ;;  %v11610_v27 = vld [vmem:[%s14857_s14 + $0x2c8] ss:$16 sps:$4 sm:$0xff]  }
 0xea7   :  { %v5957_v4 = vadd.f32 %v5956_v57, %v5949_v59  ;;  %v11618_v59 = vld [vmem:[%s14857_s14 + $0x2ec] ss:$16 sps:$4 sm:$0xff]   ;;  %v11616_v30 = vld [vmem:[%s14857_s14 + $0x2e8] ss:$16 sps:$4 sm:$0xff]  }
 0xea8   :  { %v5952_v48 = vrot.slane %v5951_v45, 2  ;;  %v11624_v57 = vld [vmem:[%s14857_s14 + $0x30c] ss:$16 sps:$4 sm:$0xff]  }
 0xea9   :  { %v5958_v55 = vrot.slane %v5957_v4, 2 }
 0xeaa   :  { %v5953_v3 = vadd.f32 %v5952_v48, %v5951_v45  ;;  %v11622_v45 = vld [vmem:[%s14857_s14 + $0x308] ss:$16 sps:$4 sm:$0xff]  }
 0xeab   :  { %v5959_v6 = vadd.f32 %v5958_v55, %v5957_v4  ;;  %v11630_v4 = vld [vmem:[%s14857_s14 + $0x32c] ss:$16 sps:$4 sm:$0xff]   ;;  %v11628_v48 = vld [vmem:[%s14857_s14 + $0x328] ss:$16 sps:$4 sm:$0xff]  }
 0xeac   :  { %v5954_v7 = vrot.slane %v5953_v3, 1  ;;  %v11636_v55 = vld [vmem:[%s14857_s14 + $0x34c] ss:$16 sps:$4 sm:$0xff]  }
 0xead   :  { %v5960_v36 = vrot.slane %v5959_v6, 1 }
 0xeae   :  { %v5955_v35 = vadd.f32 %v5954_v7, %v5953_v3  ;;  %v11634_v3 = vld [vmem:[%s14857_s14 + $0x348] ss:$16 sps:$4 sm:$0xff]  }
 0xeaf   :  { %v5961_v9 = vadd.f32 %v5960_v36, %v5959_v6  ;;  %v11642_v6 = vld [vmem:[%s14857_s14 + $0x36c] ss:$16 sps:$4 sm:$0xff]   ;;  %v11640_v7 = vld [vmem:[%s14857_s14 + $0x368] ss:$16 sps:$4 sm:$0xff]  }
 0xeb0   :  { %v5962_v12 = vmul.f32 0.125, %v5955_v35  ;;  %v11648_v36 = vld [vmem:[%s14857_s14 + $0x38c] ss:$16 sps:$4 sm:$0xff]   ;;  %v11646_v35 = vld [vmem:[%s14857_s14 + $0x388] ss:$16 sps:$4 sm:$0xff]  }
 0xeb1   :  { %v5963_v37 = vmul.f32 0.125, %v5961_v9  ;;  %v11654_v9 = vld [vmem:[%s14857_s14 + $0x3ac] ss:$16 sps:$4 sm:$0xff]  }
 0xeb2   :  { %v5965_v13 = vadd.f32 1e-05, %v5962_v12  ;;  %v11652_v12 = vld [vmem:[%s14857_s14 + $0x3a8] ss:$16 sps:$4 sm:$0xff]  }
 0xeb3   :  { %v5966_v14 = vadd.f32 1e-05, %v5963_v37  ;;  %v11655_v37 = vld [vmem:[%s14857_s14 + $0x3c0] ss:$16 sps:$4 sm:$0xff]  }
 0xeb4   :  { %11989 = vrsqrt.f32 %v5965_v13  ;;  %v11657_v13 = vld [vmem:[%s14857_s14 + $0x3c4] ss:$16 sps:$4 sm:$0xff]  }
 0xeb5   :  { %11991 = vrsqrt.f32 %v5966_v14  ;;  %v11658_v14 = vld [vmem:[%s14857_s14 + $0x3c8] ss:$16 sps:$4 sm:$0xff]   ;;  %6603 = vmatprep.subr.bf16.mxu1 %v11657_v13 }
 0xeb6   :  { %6604 = vmatpush1.bf16.msra.mxu1 %v11655_v37  ;;  %v11721_v37 = vld [vmem:[%s14857_s14 + $0x120] ss:$16 sps:$4 sm:$0xff]   ;;  %v11724_v13 = vld [vmem:[%s14857_s14 + $0x128] ss:$16 sps:$4 sm:$0xff]  }
 0xeb7   :  { %6605 = vmatprep.subr.bf16.mxu1 %v11663_v16  ;;  %v11727_v16 = vld [vmem:[%s14857_s14 + $0x140] ss:$16 sps:$4 sm:$0xff]  }
 0xebe   :  { %v11990_v19 = vpop.eup %11989 }
 0xebf   :  { %v11992_v21 = vpop.eup %11991 }
 0xec0   :  { %v5971_v22 = vcombine.low %v11990_v19, %v11992_v21  ;;  %v11661_v19 = vld [vmem:[%s14857_s14 + $0x3e0] ss:$16 sps:$4 sm:$0xff]   ;;  %v11664_v21 = vld [vmem:[%s14857_s14 + $0x3e8] ss:$16 sps:$4 sm:$0xff]  }
 0xec1   :  { %6606 = vmatpush1.bf16.msra.mxu1 %v11661_v19  ;;  %v11735_v19 = vld [vmem:[%s14857_s14 + $0x164] ss:$16 sps:$4 sm:$0xff]  }
 0xec2   :  { %v5978_v24 = vrot.slane %v5971_v22, %v13924_v20  ;;  %v11669_v22 = vld [vmem:[%s14857_s14 + $0x4] ss:$16 sps:$4 sm:$0xff]  }
 0xec3   :  { %6977 = vmatprep.subr.bf16.mxu1 %v11669_v22  ;;  %v11733_v22 = vld [vmem:[%s14857_s14 + $0x160] ss:$16 sps:$4 sm:$0xff]  }
 0xec4   :  { %v5985_v28 = vrot.slane %v5978_v24, %v13924_v20 }
 0xec6   :  { %v5987_v29 = vmul.f32 %v5985_v28, %v5964_v23  ;;  %v11672_v23 = vld [vmem:[%s14857_s14 + $0xc] ss:$16 sps:$4 sm:$0xff]  }
 0xec8   :  { %v5996_v31 = vrot.slane %v5987_v29, %v13901_v26  ;;  %v5992_v33 = vrot.slane %v5987_v29, %v12846_v10 }
 0xeca   :  { %v6000_v38 = vmul.f32 %v5996_v31, %v5947_v1  ;;  %v5999_v39 = vmul.f32 %v5992_v33, %v5946_v5  ;;  %v11604_v5 = vld [vmem:[%s14857_s14 + $0x2a8] ss:$16 sps:$4 sm:$0xff]   ;;  %v11612_v1 = vld [vmem:[%s14857_s14 + $0x2cc] ss:$16 sps:$4 sm:$0xff]  }
 0xecc   :  { %v6014_v40 = vadd.f32 %v6010_v32, %v6000_v38  ;;  %v6013_v41 = vadd.f32 %v6006_v34, %v5999_v39  ;;  %v11667_v38 = vld [vmem:[%s14857_s14] ss:$16 sps:$4 sm:$0xff]   ;;  %v11670_v39 = vld [vmem:[%s14857_s14 + $0x8] ss:$16 sps:$4 sm:$0xff]  }
 0xece   :  { %vm6016_vm8 = vcmp.ge.f32.partialorder %v6014_v40, 0.0  ;;  %v6018_v42 = vmul.f32 0.2, %v6014_v40  ;;  %vm6015_vm9 = vcmp.ge.f32.partialorder %v6013_v41, 0.0  ;;  %v6017_v43 = vmul.f32 0.2, %v6013_v41 }
 0xed0   :  { %v6020_v44 = vsel %vm6016_vm8, %v6014_v40, %v6018_v42  ;;  %v6019_v46 = vsel %vm6015_vm9, %v6013_v41, %v6017_v43  ;;  %v11675_v42 = vld [vmem:[%s14857_s14 + $0x24] ss:$16 sps:$4 sm:$0xff]   ;;  %v11678_v43 = vld [vmem:[%s14857_s14 + $0x2c] ss:$16 sps:$4 sm:$0xff]  }
 0xed1   :  { %v13938_v47 = vpack.c.bf16 %v6020_v44, %v6020_v44  ;;  %v6021_v49 = vpack.c.bf16 %v6019_v46, %v6019_v46  ;;  %v11673_v46 = vld [vmem:[%s14857_s14 + $0x20] ss:$16 sps:$4 sm:$0xff]  }
 0xed3   :  { %9511 = vmatprep.subr.msk.bf16.mxu0 %vm6028_vm10, %v13938_v47  ;;  %v13943_v50 = vsel %vm6028_vm10, %v6021_v49, 0  ;;  %v11676_v49 = vld [vmem:[%s14857_s14 + $0x28] ss:$16 sps:$4 sm:$0xff]  }
 0xed4   :  { %6036 = vmatpush1.bf16.msra.mxu0 %v13943_v50 }
 0xed5   :  { %9514 = vmatprep.subr.msk.bf16.mxu0 %vm6028_vm10, %v13938_v47 }
 0xed7   :  { %9512 = vmatmul.mubr.msk.bf16.vlgmr.msra.gmra.mrb[124].mxu0 %vm6024_vm11, %v6023_v51  ;;  %v11681_v51 = vld [vmem:[%s14857_s14 + $0x44] ss:$16 sps:$4 sm:$0xff]  }
 0xed8   :  { %6148 = vmatpush1.bf16.msra.mxu0 %v13943_v50  ;;  %6179 = vmatprep.mubr.bf16.mxu0 %v12007_v11 }
 0xed9   :  { %6616 = vmatprep.subr.bf16.mxu0 %v11576_v52  ;;  %v11684_v52 = vld [vmem:[%s14857_s14 + $0x4c] ss:$16 sps:$4 sm:$0xff]  }
 0xedf   :  { %9515 = vmatmul.mubr.msk.bf16.vlgmr.msra.gmra.mrb[128].mxu0 %vm6024_vm11, %v9513_v53  ;;  %v11679_v53 = vld [vmem:[%s14857_s14 + $0x40] ss:$16 sps:$4 sm:$0xff]  }
 0xee0   :  { %6617 = vmatpush1.bf16.msra.mxu0 %v11574_v54  ;;  %v11682_v54 = vld [vmem:[%s14857_s14 + $0x48] ss:$16 sps:$4 sm:$0xff]  }
 0xee1   :  { %6618 = vmatprep.subr.bf16.mxu0 %v11582_v61  ;;  %v11687_v61 = vld [vmem:[%s14857_s14 + $0x64] ss:$16 sps:$4 sm:$0xff]  }
 0xee4   :  { %6619 = vmatpush1.bf16.msra.mxu0 %v11580_v0  ;;  %v11690_v0 = vld [vmem:[%s14857_s14 + $0x6c] ss:$16 sps:$4 sm:$0xff]  }
 0xee5   :  { %6620 = vmatprep.subr.bf16.mxu0 %v11588_v56  ;;  %v11685_v56 = vld [vmem:[%s14857_s14 + $0x60] ss:$16 sps:$4 sm:$0xff]  }
 0xee8   :  { %6621 = vmatpush1.bf16.msra.mxu0 %v11586_v60  ;;  %v11688_v60 = vld [vmem:[%s14857_s14 + $0x68] ss:$16 sps:$4 sm:$0xff]  }
 0xee9   :  { %6622 = vmatprep.subr.bf16.mxu0 %v11594_v63  ;;  %v11693_v63 = vld [vmem:[%s14857_s14 + $0x84] ss:$16 sps:$4 sm:$0xff]  }
 0xeec   :  { %6623 = vmatpush1.bf16.msra.mxu0 %v11592_v62  ;;  %v11696_v62 = vld [vmem:[%s14857_s14 + $0x8c] ss:$16 sps:$4 sm:$0xff]  }
 0xeed   :  { %6624 = vmatprep.subr.bf16.mxu0 %v11600_v2  ;;  %v11691_v2 = vld [vmem:[%s14857_s14 + $0x80] ss:$16 sps:$4 sm:$0xff]  }
 0xef0   :  { %6625 = vmatpush1.bf16.msra.mxu0 %v11598_v18  ;;  %v11694_v18 = vld [vmem:[%s14857_s14 + $0x88] ss:$16 sps:$4 sm:$0xff]  }
 0xef1   :  { %6626 = vmatprep.subr.bf16.mxu0 %v11606_v58  ;;  %v11699_v58 = vld [vmem:[%s14857_s14 + $0xa4] ss:$16 sps:$4 sm:$0xff]  }
 0xef4   :  { %6627 = vmatpush1.bf16.msra.mxu0 %v11604_v5  ;;  %v11702_v5 = vld [vmem:[%s14857_s14 + $0xac] ss:$16 sps:$4 sm:$0xff]  }
 0xef5   :  { %6628 = vmatprep.subr.bf16.mxu0 %v11612_v1  ;;  %v11697_v1 = vld [vmem:[%s14857_s14 + $0xa0] ss:$16 sps:$4 sm:$0xff]  }
 0xef8   :  { %6629 = vmatpush1.bf16.msra.mxu0 %v11610_v27  ;;  %v11700_v27 = vld [vmem:[%s14857_s14 + $0xa8] ss:$16 sps:$4 sm:$0xff]  }
 0xef9   :  { %6630 = vmatprep.subr.bf16.mxu0 %v11618_v59  ;;  %v11705_v59 = vld [vmem:[%s14857_s14 + $0xc4] ss:$16 sps:$4 sm:$0xff]  }
 0xefc   :  { %6631 = vmatpush1.bf16.msra.mxu0 %v11616_v30  ;;  %v11708_v30 = vld [vmem:[%s14857_s14 + $0xcc] ss:$16 sps:$4 sm:$0xff]  }
 0xefd   :  { %6632 = vmatprep.subr.bf16.mxu0 %v11624_v57  ;;  %v11703_v57 = vld [vmem:[%s14857_s14 + $0xc0] ss:$16 sps:$4 sm:$0xff]  }
 0xf00   :  { %6633 = vmatpush1.bf16.msra.mxu0 %v11622_v45  ;;  %v11706_v45 = vld [vmem:[%s14857_s14 + $0xc8] ss:$16 sps:$4 sm:$0xff]  }
 0xf01   :  { %6634 = vmatprep.subr.bf16.mxu0 %v11630_v4  ;;  %v11711_v4 = vld [vmem:[%s14857_s14 + $0xe4] ss:$16 sps:$4 sm:$0xff]  }
 0xf04   :  { %6635 = vmatpush1.bf16.msra.mxu0 %v11628_v48  ;;  %v11714_v48 = vld [vmem:[%s14857_s14 + $0xec] ss:$16 sps:$4 sm:$0xff]  }
 0xf05   :  { %6636 = vmatprep.subr.bf16.mxu0 %v11636_v55  ;;  %v11709_v55 = vld [vmem:[%s14857_s14 + $0xe0] ss:$16 sps:$4 sm:$0xff]  }
 0xf08   :  { %6637 = vmatpush1.bf16.msra.mxu0 %v11634_v3  ;;  %v11712_v3 = vld [vmem:[%s14857_s14 + $0xe8] ss:$16 sps:$4 sm:$0xff]  }
 0xf09   :  { %6638 = vmatprep.subr.bf16.mxu0 %v11642_v6  ;;  %v11717_v6 = vld [vmem:[%s14857_s14 + $0x104] ss:$16 sps:$4 sm:$0xff]  }
 0xf0c   :  { %6639 = vmatpush1.bf16.msra.mxu0 %v11640_v7  ;;  %v11720_v7 = vld [vmem:[%s14857_s14 + $0x10c] ss:$16 sps:$4 sm:$0xff]  }
 0xf0d   :  { %6640 = vmatprep.subr.bf16.mxu0 %v11648_v36  ;;  %v11715_v36 = vld [vmem:[%s14857_s14 + $0x100] ss:$16 sps:$4 sm:$0xff]  }
 0xf10   :  { %6641 = vmatpush1.bf16.msra.mxu0 %v11646_v35  ;;  %v11718_v35 = vld [vmem:[%s14857_s14 + $0x108] ss:$16 sps:$4 sm:$0xff]  }
 0xf11   :  { %6642 = vmatprep.subr.bf16.mxu0 %v11654_v9  ;;  %v11723_v9 = vld [vmem:[%s14857_s14 + $0x124] ss:$16 sps:$4 sm:$0xff]  }
 0xf14   :  { %6643 = vmatpush1.bf16.msra.mxu0 %v11652_v12  ;;  %v11726_v12 = vld [vmem:[%s14857_s14 + $0x12c] ss:$16 sps:$4 sm:$0xff]  }
 0xf15   :  { %6644 = vmatprep.subr.bf16.mxu0 %v11660_v15  ;;  %v11732_v15 = vld [vmem:[%s14857_s14 + $0x14c] ss:$16 sps:$4 sm:$0xff]  }
 0xf18   :  { %6645 = vmatpush1.bf16.msra.mxu0 %v11658_v14  ;;  %v11729_v14 = vld [vmem:[%s14857_s14 + $0x144] ss:$16 sps:$4 sm:$0xff]  }
 0xf19   :  { %6646 = vmatprep.subr.bf16.mxu0 %v11666_v17  ;;  %v11730_v17 = vld [vmem:[%s14857_s14 + $0x148] ss:$16 sps:$4 sm:$0xff]  }
 0xf1c   :  { %6647 = vmatpush1.bf16.msra.mxu0 %v11664_v21  ;;  %v11738_v21 = vld [vmem:[%s14857_s14 + $0x16c] ss:$16 sps:$4 sm:$0xff]  }
 0xf1d   :  { %7018 = vmatprep.subr.bf16.mxu0 %v11672_v23  ;;  %v11736_v23 = vld [vmem:[%s14857_s14 + $0x168] ss:$16 sps:$4 sm:$0xff]  }
 0xfaa   :  { %v14072_v24 = vpop.f32.mrb[124].mxu0 }
 0xfab   :  { %v6071_v25 = vpop.f32.mrb[125].mxu0 }
 0xfac   :  { %v6073_v28 = vpop.f32.mrb[126].mxu0  ;;  %v6077_v44 = vpack.c.bf16 %v6071_v25, %v6071_v25  ;;  %v11741_v25 = vld [vmem:[%s14857_s14 + $0x184] ss:$16 sps:$4 sm:$0xff]  }
 0xfad   :  { %v6074_v29 = vpop.f32.mrb[127].mxu0  ;;  %v11744_v28 = vld [vmem:[%s14857_s14 + $0x18c] ss:$16 sps:$4 sm:$0xff]  }
 0xfae   :  { %v11739_v29 = vld [vmem:[%s14857_s14 + $0x180] ss:$16 sps:$4 sm:$0xff]  }
 0xfb2   :  { %v6181_v31 = vpop.f32.mrb[128].mxu0 }
 0xfb3   :  { %v6183_v32 = vpop.f32.mrb[129].mxu0  ;;  %v6188_v40 = vpack.c.bf16 %v6181_v31, %v6181_v31  ;;  %v11742_v31 = vld [vmem:[%s14857_s14 + $0x188] ss:$16 sps:$4 sm:$0xff]  }
 0xfb4   :  { %v6189_v33 = vpack.c.bf16 %v6183_v32, %v6183_v32  ;;  %v6185_v34 = vpop.f32.mrb[130].mxu0  ;;  %v11747_v32 = vld [vmem:[%s14857_s14 + $0x1a4] ss:$16 sps:$4 sm:$0xff]  }
 0xfb5   :  { %v6186_v41 = vpop.f32.mrb[131].mxu0  ;;  %v11745_v34 = vld [vmem:[%s14857_s14 + $0x1a0] ss:$16 sps:$4 sm:$0xff]  }
 0xfb6   :  { %6607 = vmatprep.mubr.bf16.mxu1 %v6189_v33  ;;  %6648 = vmatprep.mubr.bf16.mxu0 %v6189_v33  ;;  %v11750_v33 = vld [vmem:[%s14857_s14 + $0x1ac] ss:$16 sps:$4 sm:$0xff]   ;;  %v11751_v41 = vld [vmem:[%s14857_s14 + $0x1c0] ss:$16 sps:$4 sm:$0xff]  }
 0xfb7   :  { %6608 = vmatmul.mubr.bf16.vlgmr.msra.gmra.mrb[88].mxu1 %v6188_v40  ;;  %6649 = vmatmul.mubr.bf16.vlgmr.msra.gmra.mrb[132].mxu0 %v6188_v40  ;;  %v11756_v40 = vld [vmem:[%s14857_s14 + $0x1cc] ss:$16 sps:$4 sm:$0xff]  }
 0xfb8   :  { %6978 = vmatpush1.bf16.msra.mxu1 %v11667_v38  ;;  %7019 = vmatpush1.bf16.msra.mxu0 %v11670_v39  ;;  %v11748_v38 = vld [vmem:[%s14857_s14 + $0x1a8] ss:$16 sps:$4 sm:$0xff]   ;;  %v11753_v39 = vld [vmem:[%s14857_s14 + $0x1c4] ss:$16 sps:$4 sm:$0xff]  }
 0xfb9   :  { %7009 = vmatprep.mubr.bf16.mxu1 %v6077_v44  ;;  %7050 = vmatprep.mubr.bf16.mxu0 %v6077_v44  ;;  %v11762_v44 = vld [vmem:[%s14857_s14 + $0x1ec] ss:$16 sps:$4 sm:$0xff]  }
 0xfba   :  { %6979 = vmatprep.subr.bf16.mxu1 %v11675_v42  ;;  %7020 = vmatprep.subr.bf16.mxu0 %v11678_v43  ;;  %v11754_v42 = vld [vmem:[%s14857_s14 + $0x1c8] ss:$16 sps:$4 sm:$0xff]   ;;  %v11759_v43 = vld [vmem:[%s14857_s14 + $0x1e4] ss:$16 sps:$4 sm:$0xff]  }
 0xfbc   :  { %6980 = vmatpush1.bf16.msra.mxu1 %v11673_v46  ;;  %7021 = vmatpush1.bf16.msra.mxu0 %v11676_v49  ;;  %v11757_v46 = vld [vmem:[%s14857_s14 + $0x1e0] ss:$16 sps:$4 sm:$0xff]   ;;  %v11760_v49 = vld [vmem:[%s14857_s14 + $0x1e8] ss:$16 sps:$4 sm:$0xff]  }
 0xfbd   :  { %6981 = vmatprep.subr.bf16.mxu1 %v11681_v51  ;;  %7022 = vmatprep.subr.bf16.mxu0 %v11684_v52  ;;  %v11765_v51 = vld [vmem:[%s14857_s14 + $0x404] ss:$16 sps:$4 sm:$0xff]   ;;  %v11763_v52 = vld [vmem:[%s14857_s14 + $0x400] ss:$16 sps:$4 sm:$0xff]  }
 0xfc0   :  { %6982 = vmatpush1.bf16.msra.mxu1 %v11679_v53  ;;  %7023 = vmatpush1.bf16.msra.mxu0 %v11682_v54  ;;  %v6076_v53 = vpack.c.bf16 %v14072_v24, %v14072_v24  ;;  %v11768_v54 = vld [vmem:[%s14857_s14 + $0x424] ss:$16 sps:$4 sm:$0xff]  }
 0xfc1   :  { %6983 = vmatprep.subr.bf16.mxu1 %v11687_v61  ;;  %7024 = vmatprep.subr.bf16.mxu0 %v11690_v0  ;;  %v11766_v61 = vld [vmem:[%s14857_s14 + $0x420] ss:$16 sps:$4 sm:$0xff]   ;;  %v11771_v24 = vld [vmem:[%s14857_s14 + $0x444] ss:$16 sps:$4 sm:$0xff]  }
 0xfc2   :  { %v9708_v0 = vld [vmem:[%s14861_s13 + $0x2] sm:$0x1] }
 0xfc4   :  { %6984 = vmatpush1.bf16.msra.mxu1 %v11685_v56  ;;  %7025 = vmatpush1.bf16.msra.mxu0 %v11688_v60  ;;  %v11769_v56 = vld [vmem:[%s14857_s14 + $0x440] ss:$16 sps:$4 sm:$0xff]   ;;  %v11774_v60 = vld [vmem:[%s14857_s14 + $0x464] ss:$16 sps:$4 sm:$0xff]  }
 0xfc5   :  { %6985 = vmatprep.subr.bf16.mxu1 %v11693_v63  ;;  %7026 = vmatprep.subr.bf16.mxu0 %v11696_v62  ;;  %v11772_v63 = vld [vmem:[%s14857_s14 + $0x460] ss:$16 sps:$4 sm:$0xff]   ;;  %v11777_v62 = vld [vmem:[%s14857_s14 + $0x484] ss:$16 sps:$4 sm:$0xff]  }
 0xfc8   :  { %6986 = vmatpush1.bf16.msra.mxu1 %v11691_v2  ;;  %7027 = vmatpush1.bf16.msra.mxu0 %v11694_v18  ;;  %v11775_v2 = vld [vmem:[%s14857_s14 + $0x480] ss:$16 sps:$4 sm:$0xff]   ;;  %v11780_v18 = vld [vmem:[%s14857_s14 + $0x4a4] ss:$16 sps:$4 sm:$0xff]  }
 0xfc9   :  { %6987 = vmatprep.subr.bf16.mxu1 %v11699_v58  ;;  %7028 = vmatprep.subr.bf16.mxu0 %v11702_v5  ;;  %v11778_v58 = vld [vmem:[%s14857_s14 + $0x4a0] ss:$16 sps:$4 sm:$0xff]   ;;  %v11783_v5 = vld [vmem:[%s14857_s14 + $0x4c4] ss:$16 sps:$4 sm:$0xff]  }
 0xfcc   :  { %6988 = vmatpush1.bf16.msra.mxu1 %v11697_v1  ;;  %7029 = vmatpush1.bf16.msra.mxu0 %v11700_v27  ;;  %v11781_v1 = vld [vmem:[%s14857_s14 + $0x4c0] ss:$16 sps:$4 sm:$0xff]   ;;  %v11786_v27 = vld [vmem:[%s14857_s14 + $0x4e4] ss:$16 sps:$4 sm:$0xff]  }
 0xfcd   :  { %6989 = vmatprep.subr.bf16.mxu1 %v11705_v59  ;;  %7030 = vmatprep.subr.bf16.mxu0 %v11708_v30  ;;  %v11811_v59 = vld [vmem:[%s14857_s14 + $0x408] ss:$16 sps:$4 sm:$0xff]   ;;  %v11813_v30 = vld [vmem:[%s14857_s14 + $0x40c] ss:$16 sps:$4 sm:$0xff]  }
 0xfd0   :  { %6990 = vmatpush1.bf16.msra.mxu1 %v11703_v57  ;;  %7031 = vmatpush1.bf16.msra.mxu0 %v11706_v45  ;;  %v11816_v57 = vld [vmem:[%s14857_s14 + $0x42c] ss:$16 sps:$4 sm:$0xff]   ;;  %v11784_v45 = vld [vmem:[%s14857_s14 + $0x4e0] ss:$16 sps:$4 sm:$0xff]  }
 0xfd1   :  { %6991 = vmatprep.subr.bf16.mxu1 %v11711_v4  ;;  %7032 = vmatprep.subr.bf16.mxu0 %v11714_v48  ;;  %v11814_v4 = vld [vmem:[%s14857_s14 + $0x428] ss:$16 sps:$4 sm:$0xff]   ;;  %v11789_v48 = vld [vmem:[%s14857_s14 + $0x504] ss:$16 sps:$4 sm:$0xff]  }
 0xfd4   :  { %6992 = vmatpush1.bf16.msra.mxu1 %v11709_v55  ;;  %7033 = vmatpush1.bf16.msra.mxu0 %v11712_v3  ;;  %v11819_v55 = vld [vmem:[%s14857_s14 + $0x44c] ss:$16 sps:$4 sm:$0xff]   ;;  %v11787_v3 = vld [vmem:[%s14857_s14 + $0x500] ss:$16 sps:$4 sm:$0xff]  }
 0xfd5   :  { %6993 = vmatprep.subr.bf16.mxu1 %v11717_v6  ;;  %7034 = vmatprep.subr.bf16.mxu0 %v11720_v7  ;;  %v11817_v6 = vld [vmem:[%s14857_s14 + $0x448] ss:$16 sps:$4 sm:$0xff]   ;;  %v11792_v7 = vld [vmem:[%s14857_s14 + $0x524] ss:$16 sps:$4 sm:$0xff]  }
 0xfd8   :  { %6994 = vmatpush1.bf16.msra.mxu1 %v11715_v36  ;;  %7035 = vmatpush1.bf16.msra.mxu0 %v11718_v35  ;;  %v11822_v36 = vld [vmem:[%s14857_s14 + $0x46c] ss:$16 sps:$4 sm:$0xff]   ;;  %v11790_v35 = vld [vmem:[%s14857_s14 + $0x520] ss:$16 sps:$4 sm:$0xff]  }
 0xfd9   :  { %6995 = vmatprep.subr.bf16.mxu1 %v11723_v9  ;;  %7036 = vmatprep.subr.bf16.mxu0 %v11726_v12  ;;  %v11820_v9 = vld [vmem:[%s14857_s14 + $0x468] ss:$16 sps:$4 sm:$0xff]   ;;  %v11795_v12 = vld [vmem:[%s14857_s14 + $0x544] ss:$16 sps:$4 sm:$0xff]  }
 0xfdc   :  { %6996 = vmatpush1.bf16.msra.mxu1 %v11721_v37  ;;  %7037 = vmatpush1.bf16.msra.mxu0 %v11724_v13  ;;  %v11825_v37 = vld [vmem:[%s14857_s14 + $0x48c] ss:$16 sps:$4 sm:$0xff]   ;;  %v11793_v13 = vld [vmem:[%s14857_s14 + $0x540] ss:$16 sps:$4 sm:$0xff]  }
 0xfdd   :  { %6997 = vmatprep.subr.bf16.mxu1 %v11729_v14  ;;  %7038 = vmatprep.subr.bf16.mxu0 %v11732_v15  ;;  %v11823_v14 = vld [vmem:[%s14857_s14 + $0x488] ss:$16 sps:$4 sm:$0xff]   ;;  %v11798_v15 = vld [vmem:[%s14857_s14 + $0x564] ss:$16 sps:$4 sm:$0xff]  }
 0xfe0   :  { %6998 = vmatpush1.bf16.msra.mxu1 %v11727_v16  ;;  %7039 = vmatpush1.bf16.msra.mxu0 %v11730_v17  ;;  %v11828_v16 = vld [vmem:[%s14857_s14 + $0x4ac] ss:$16 sps:$4 sm:$0xff]   ;;  %v11796_v17 = vld [vmem:[%s14857_s14 + $0x560] ss:$16 sps:$4 sm:$0xff]  }
 0xfe1   :  { %6999 = vmatprep.subr.bf16.mxu1 %v11735_v19  ;;  %7040 = vmatprep.subr.bf16.mxu0 %v11738_v21  ;;  %v11826_v19 = vld [vmem:[%s14857_s14 + $0x4a8] ss:$16 sps:$4 sm:$0xff]   ;;  %v11801_v21 = vld [vmem:[%s14857_s14 + $0x584] ss:$16 sps:$4 sm:$0xff]  }
 0xfe4   :  { %7000 = vmatpush1.bf16.msra.mxu1 %v11733_v22  ;;  %7041 = vmatpush1.bf16.msra.mxu0 %v11736_v23  ;;  %v11831_v22 = vld [vmem:[%s14857_s14 + $0x4cc] ss:$16 sps:$4 sm:$0xff]   ;;  %v11799_v23 = vld [vmem:[%s14857_s14 + $0x580] ss:$16 sps:$4 sm:$0xff]  }
 0xfe5   :  { %7001 = vmatprep.subr.bf16.mxu1 %v11741_v25  ;;  %7042 = vmatprep.subr.bf16.mxu0 %v11744_v28  ;;  %v11829_v25 = vld [vmem:[%s14857_s14 + $0x4c8] ss:$16 sps:$4 sm:$0xff]   ;;  %v11804_v28 = vld [vmem:[%s14857_s14 + $0x5a4] ss:$16 sps:$4 sm:$0xff]  }
 0xfe8   :  { %7002 = vmatpush1.bf16.msra.mxu1 %v11739_v29  ;;  %7043 = vmatpush1.bf16.msra.mxu0 %v11742_v31  ;;  %v11834_v29 = vld [vmem:[%s14857_s14 + $0x4ec] ss:$16 sps:$4 sm:$0xff]   ;;  %v11802_v31 = vld [vmem:[%s14857_s14 + $0x5a0] ss:$16 sps:$4 sm:$0xff]  }
 0xfe9   :  { %7003 = vmatprep.subr.bf16.mxu1 %v11747_v32  ;;  %7044 = vmatprep.subr.bf16.mxu0 %v11750_v33  ;;  %v11832_v32 = vld [vmem:[%s14857_s14 + $0x4e8] ss:$16 sps:$4 sm:$0xff]   ;;  %v11807_v33 = vld [vmem:[%s14857_s14 + $0x5c4] ss:$16 sps:$4 sm:$0xff]  }
 0xfec   :  { %7004 = vmatpush1.bf16.msra.mxu1 %v11745_v34  ;;  %7045 = vmatpush1.bf16.msra.mxu0 %v11748_v38  ;;  %v11837_v34 = vld [vmem:[%s14857_s14 + $0x50c] ss:$16 sps:$4 sm:$0xff]   ;;  %v11805_v38 = vld [vmem:[%s14857_s14 + $0x5c0] ss:$16 sps:$4 sm:$0xff]  }
 0xfed   :  { %7005 = vmatprep.subr.bf16.mxu1 %v11753_v39  ;;  %7046 = vmatprep.subr.bf16.mxu0 %v11756_v40  ;;  %v11835_v39 = vld [vmem:[%s14857_s14 + $0x508] ss:$16 sps:$4 sm:$0xff]   ;;  %v11810_v40 = vld [vmem:[%s14857_s14 + $0x5e4] ss:$16 sps:$4 sm:$0xff]  }
 0xff0   :  { %7006 = vmatpush1.bf16.msra.mxu1 %v11751_v41  ;;  %7047 = vmatpush1.bf16.msra.mxu0 %v11754_v42  ;;  %v11840_v41 = vld [vmem:[%s14857_s14 + $0x52c] ss:$16 sps:$4 sm:$0xff]   ;;  %v11808_v42 = vld [vmem:[%s14857_s14 + $0x5e0] ss:$16 sps:$4 sm:$0xff]  }
 0xff1   :  { %7007 = vmatprep.subr.bf16.mxu1 %v11759_v43  ;;  %7048 = vmatprep.subr.bf16.mxu0 %v11762_v44  ;;  %v11838_v43 = vld [vmem:[%s14857_s14 + $0x528] ss:$16 sps:$4 sm:$0xff]   ;;  %v11843_v44 = vld [vmem:[%s14857_s14 + $0x54c] ss:$16 sps:$4 sm:$0xff]  }
 0xff4   :  { %7008 = vmatpush1.bf16.msra.mxu1 %v11757_v46  ;;  %7049 = vmatpush1.bf16.msra.mxu0 %v11760_v49  ;;  %v11841_v46 = vld [vmem:[%s14857_s14 + $0x548] ss:$16 sps:$4 sm:$0xff]   ;;  %v11846_v49 = vld [vmem:[%s14857_s14 + $0x56c] ss:$16 sps:$4 sm:$0xff]  }
 0xff5   :  { %9709 = vmatprep.subr.msk.bf16.mxu1 %vm6028_vm10, %v13938_v47  ;;  %7492 = vmatprep.subr.bf16.mxu0 %v11765_v51  ;;  %v11844_v51 = vld [vmem:[%s14857_s14 + $0x568] ss:$16 sps:$4 sm:$0xff]  }
 0xff7   :  { %7010 = vmatmul.mubr.bf16.vlgmr.msra.gmra.mrb[92].mxu1 %v6076_v53  ;;  %7051 = vmatmul.mubr.bf16.vlgmr.msra.gmra.mrb[136].mxu0 %v6076_v53  ;;  %v11852_v53 = vld [vmem:[%s14857_s14 + $0x5ac] ss:$16 sps:$4 sm:$0xff]  }
 0xff8   :  { %7065 = vmatpush1.bf16.msra.mxu1 %v13943_v50  ;;  %7493 = vmatpush1.bf16.msra.mxu0 %v11763_v52  ;;  %v11849_v52 = vld [vmem:[%s14857_s14 + $0x58c] ss:$16 sps:$4 sm:$0xff]  }
 0xff9   :  { %7494 = vmatprep.subr.bf16.mxu0 %v11768_v54  ;;  %7096 = vmatprep.mubr.bf16.mxu1 %v12007_v11  ;;  %v11850_v54 = vld [vmem:[%s14857_s14 + $0x5a8] ss:$16 sps:$4 sm:$0xff]  }
 0xffa   :  { %7533 = vmatprep.subr.bf16.mxu1 %v11813_v30 }
 0xffc   :  { %7495 = vmatpush1.bf16.msra.mxu0 %v11766_v61  ;;  %v11853_v61 = vld [vmem:[%s14857_s14 + $0x5c8] ss:$16 sps:$4 sm:$0xff]  }
 0xffd   :  { %7496 = vmatprep.subr.bf16.mxu0 %v11771_v24  ;;  %v11855_v24 = vld [vmem:[%s14857_s14 + $0x5cc] ss:$16 sps:$4 sm:$0xff]  }
 0xfff   :  { %9710 = vmatmul.mubr.msk.bf16.vlgmr.msra.gmra.mrb[96].mxu1 %vm6024_vm11, %v9708_v0  ;;  %v11858_v0 = vld [vmem:[%s14857_s14 + $0x5ec] ss:$16 sps:$4 sm:$0xff]  }
0x1000   :  { %7497 = vmatpush1.bf16.msra.mxu0 %v11769_v56  ;;  %7534 = vmatpush1.bf16.msra.mxu1 %v11811_v59  ;;  %v11856_v56 = vld [vmem:[%s14857_s14 + $0x5e8] ss:$16 sps:$4 sm:$0xff]  }
0x1001   :  { %7498 = vmatprep.subr.bf16.mxu0 %v11774_v60  ;;  %7535 = vmatprep.subr.bf16.mxu1 %v11816_v57  ;;  %v11861_v60 = vld [vmem:[%s14857_s14 + $0x604] ss:$16 sps:$4 sm:$0xff]  }
0x1004   :  { %7499 = vmatpush1.bf16.msra.mxu0 %v11772_v63  ;;  %7536 = vmatpush1.bf16.msra.mxu1 %v11814_v4 }
0x1005   :  { %7500 = vmatprep.subr.bf16.mxu0 %v11777_v62  ;;  %7537 = vmatprep.subr.bf16.mxu1 %v11819_v55 }
0x1008   :  { %7501 = vmatpush1.bf16.msra.mxu0 %v11775_v2  ;;  %7538 = vmatpush1.bf16.msra.mxu1 %v11817_v6 }
0x1009   :  { %7502 = vmatprep.subr.bf16.mxu0 %v11780_v18  ;;  %7539 = vmatprep.subr.bf16.mxu1 %v11822_v36 }
0x100c   :  { %7503 = vmatpush1.bf16.msra.mxu0 %v11778_v58  ;;  %7540 = vmatpush1.bf16.msra.mxu1 %v11820_v9 }
0x100d   :  { %7504 = vmatprep.subr.bf16.mxu0 %v11783_v5  ;;  %7541 = vmatprep.subr.bf16.mxu1 %v11825_v37 }
0x1010   :  { %7505 = vmatpush1.bf16.msra.mxu0 %v11781_v1  ;;  %7542 = vmatpush1.bf16.msra.mxu1 %v11823_v14 }
0x1011   :  { %7506 = vmatprep.subr.bf16.mxu0 %v11786_v27  ;;  %7543 = vmatprep.subr.bf16.mxu1 %v11828_v16  ;;  %v11859_v16 = vld [vmem:[%s14857_s14 + $0x600] ss:$16 sps:$4 sm:$0xff]  }
0x1014   :  { %7507 = vmatpush1.bf16.msra.mxu0 %v11784_v45  ;;  %7544 = vmatpush1.bf16.msra.mxu1 %v11826_v19  ;;  %v11867_v19 = vld [vmem:[%s14857_s14 + $0x624] ss:$16 sps:$4 sm:$0xff]  }
0x1015   :  { %7508 = vmatprep.subr.bf16.mxu0 %v11789_v48  ;;  %7545 = vmatprep.subr.bf16.mxu1 %v11831_v22  ;;  %v11873_v22 = vld [vmem:[%s14857_s14 + $0x644] ss:$16 sps:$4 sm:$0xff]  }
0x1018   :  { %7509 = vmatpush1.bf16.msra.mxu0 %v11787_v3  ;;  %7546 = vmatpush1.bf16.msra.mxu1 %v11829_v25  ;;  %v11871_v25 = vld [vmem:[%s14857_s14 + $0x640] ss:$16 sps:$4 sm:$0xff]  }
0x1019   :  { %7510 = vmatprep.subr.bf16.mxu0 %v11792_v7  ;;  %7547 = vmatprep.subr.bf16.mxu1 %v11834_v29  ;;  %v11868_v29 = vld [vmem:[%s14857_s14 + $0x628] ss:$16 sps:$4 sm:$0xff]  }
0x101c   :  { %7511 = vmatpush1.bf16.msra.mxu0 %v11790_v35  ;;  %7548 = vmatpush1.bf16.msra.mxu1 %v11832_v32  ;;  %v11877_v32 = vld [vmem:[%s14857_s14 + $0x660] ss:$16 sps:$4 sm:$0xff]  }
0x101d   :  { %7512 = vmatprep.subr.bf16.mxu0 %v11795_v12  ;;  %7549 = vmatprep.subr.bf16.mxu1 %v11837_v34  ;;  %v11874_v34 = vld [vmem:[%s14857_s14 + $0x648] ss:$16 sps:$4 sm:$0xff]  }
0x1020   :  { %7513 = vmatpush1.bf16.msra.mxu0 %v11793_v13  ;;  %7550 = vmatpush1.bf16.msra.mxu1 %v11835_v39  ;;  %v11883_v39 = vld [vmem:[%s14857_s14 + $0x680] ss:$16 sps:$4 sm:$0xff]  }
0x1021   :  { %7514 = vmatprep.subr.bf16.mxu0 %v11798_v15  ;;  %7551 = vmatprep.subr.bf16.mxu1 %v11840_v41  ;;  %v11880_v41 = vld [vmem:[%s14857_s14 + $0x668] ss:$16 sps:$4 sm:$0xff]  }
0x1024   :  { %7515 = vmatpush1.bf16.msra.mxu0 %v11796_v17  ;;  %7552 = vmatpush1.bf16.msra.mxu1 %v11838_v43  ;;  %v11864_v17 = vld [vmem:[%s14857_s14 + $0x60c] ss:$16 sps:$4 sm:$0xff]   ;;  %v11889_v43 = vld [vmem:[%s14857_s14 + $0x6a0] ss:$16 sps:$4 sm:$0xff]  }
0x1025   :  { %7516 = vmatprep.subr.bf16.mxu0 %v11801_v21  ;;  %7553 = vmatprep.subr.bf16.mxu1 %v11843_v44  ;;  %v11865_v21 = vld [vmem:[%s14857_s14 + $0x620] ss:$16 sps:$4 sm:$0xff]   ;;  %v11897_v44 = vld [vmem:[%s14857_s14 + $0x6c4] ss:$16 sps:$4 sm:$0xff]  }
0x1028   :  { %7517 = vmatpush1.bf16.msra.mxu0 %v11799_v23  ;;  %7554 = vmatpush1.bf16.msra.mxu1 %v11841_v46  ;;  %v9839_v23 = vld [vmem:[%s14861_s13 + $0x3] sm:$0x1]  ;;  %v11886_v46 = vld [vmem:[%s14857_s14 + $0x688] ss:$16 sps:$4 sm:$0xff]  }
0x1029   :  { %7518 = vmatprep.subr.bf16.mxu0 %v11804_v28  ;;  %7555 = vmatprep.subr.bf16.mxu1 %v11846_v49  ;;  %v11879_v28 = vld [vmem:[%s14857_s14 + $0x664] ss:$16 sps:$4 sm:$0xff]   ;;  %v11894_v49 = vld [vmem:[%s14857_s14 + $0x6ac] ss:$16 sps:$4 sm:$0xff]  }
0x102c   :  { %7519 = vmatpush1.bf16.msra.mxu0 %v11802_v31  ;;  %7556 = vmatpush1.bf16.msra.mxu1 %v11844_v51  ;;  %v11876_v31 = vld [vmem:[%s14857_s14 + $0x64c] ss:$16 sps:$4 sm:$0xff]   ;;  %v11895_v51 = vld [vmem:[%s14857_s14 + $0x6c0] ss:$16 sps:$4 sm:$0xff]  }
0x102d   :  { %7520 = vmatprep.subr.bf16.mxu0 %v11807_v33  ;;  %7557 = vmatprep.subr.bf16.mxu1 %v11849_v52  ;;  %v11885_v33 = vld [vmem:[%s14857_s14 + $0x684] ss:$16 sps:$4 sm:$0xff]  }
0x102e   :  { %v11903_v52 = vld [vmem:[%s14857_s14 + $0x6e4] ss:$16 sps:$4 sm:$0xff]  }
0x1030   :  { %7521 = vmatpush1.bf16.msra.mxu0 %v11805_v38  ;;  %v11882_v38 = vld [vmem:[%s14857_s14 + $0x66c] ss:$16 sps:$4 sm:$0xff]  }
0x1031   :  { %7522 = vmatprep.subr.bf16.mxu0 %v11810_v40  ;;  %v11891_v40 = vld [vmem:[%s14857_s14 + $0x6a4] ss:$16 sps:$4 sm:$0xff]  }
0x1034   :  { %7523 = vmatpush1.bf16.msra.mxu0 %v11808_v42  ;;  %v11888_v42 = vld [vmem:[%s14857_s14 + $0x68c] ss:$16 sps:$4 sm:$0xff]  }
0x1035   :  { %9840 = vmatprep.subr.msk.bf16.mxu0 %vm6028_vm10, %v13938_v47  ;;  %v11847_v47 = vld [vmem:[%s14857_s14 + $0x588] ss:$16 sps:$4 sm:$0xff]  }
0x1036   :  { %7558 = vmatpush1.bf16.msra.mxu1 %v11847_v47  ;;  %v11892_v47 = vld [vmem:[%s14857_s14 + $0x6a8] ss:$16 sps:$4 sm:$0xff]  }
0x1037   :  { %7559 = vmatprep.subr.bf16.mxu1 %v11852_v53  ;;  %v11900_v53 = vld [vmem:[%s14857_s14 + $0x6cc] ss:$16 sps:$4 sm:$0xff]  }
0x103a   :  { %7560 = vmatpush1.bf16.msra.mxu1 %v11850_v54  ;;  %v11901_v54 = vld [vmem:[%s14857_s14 + $0x6e0] ss:$16 sps:$4 sm:$0xff]  }
0x103b   :  { %7561 = vmatprep.subr.bf16.mxu1 %v11855_v24  ;;  %v11898_v24 = vld [vmem:[%s14857_s14 + $0x6c8] ss:$16 sps:$4 sm:$0xff]  }
0x103e   :  { %7562 = vmatpush1.bf16.msra.mxu1 %v11853_v61  ;;  %v11909_v61 = vld [vmem:[%s14857_s14 + $0x704] ss:$16 sps:$4 sm:$0xff]  }
0x103f   :  { %7563 = vmatprep.subr.bf16.mxu1 %v11858_v0  ;;  %v11906_v0 = vld [vmem:[%s14857_s14 + $0x6ec] ss:$16 sps:$4 sm:$0xff]  }
0x1042   :  { %7564 = vmatpush1.bf16.msra.mxu1 %v11856_v56  ;;  %v11907_v56 = vld [vmem:[%s14857_s14 + $0x700] ss:$16 sps:$4 sm:$0xff]  }
0x1043   :  { %8011 = vmatprep.subr.bf16.mxu1 %v11861_v60  ;;  %v11915_v60 = vld [vmem:[%s14857_s14 + $0x724] ss:$16 sps:$4 sm:$0xff]  }
0x108a   :  { %v6609_v63 = vpop.f32.mrb[88].mxu1  ;;  %v6650_v62 = vpop.f32.mrb[132].mxu0 }
0x108b   :  { %v6611_v2 = vpop.f32.mrb[89].mxu1  ;;  %v6652_v18 = vpop.f32.mrb[133].mxu0 }
0x108c   :  { %v6613_v58 = vpop.f32.mrb[90].mxu1  ;;  %v6654_v5 = vpop.f32.mrb[134].mxu0 }
0x108d   :  { %v6614_v1 = vpop.f32.mrb[91].mxu1  ;;  %v6655_v27 = vpop.f32.mrb[135].mxu0  ;;  %v11910_v58 = vld [vmem:[%s14857_s14 + $0x708] ss:$16 sps:$4 sm:$0xff]   ;;  %v11918_v5 = vld [vmem:[%s14857_s14 + $0x72c] ss:$16 sps:$4 sm:$0xff]  }
0x108e   :  { %v11919_v1 = vld [vmem:[%s14857_s14 + $0x740] ss:$16 sps:$4 sm:$0xff]   ;;  %v11927_v27 = vld [vmem:[%s14857_s14 + $0x764] ss:$16 sps:$4 sm:$0xff]  }
0x10ca   :  { %v7011_v59 = vpop.f32.mrb[92].mxu1  ;;  %v7052_v30 = vpop.f32.mrb[136].mxu0 }
0x10cb   :  { %v14467_v57 = vadd.f32 %v7011_v59, %v6609_v63  ;;  %v14469_v45 = vadd.f32 %v7052_v30, %v6650_v62  ;;  %v7013_v4 = vpop.f32.mrb[93].mxu1  ;;  %v7054_v48 = vpop.f32.mrb[137].mxu0  ;;  %v11904_v63 = vld [vmem:[%s14857_s14 + $0x6e8] ss:$16 sps:$4 sm:$0xff]   ;;  %v11912_v62 = vld [vmem:[%s14857_s14 + $0x70c] ss:$16 sps:$4 sm:$0xff]  }
0x10cc   :  { %v14471_v55 = vadd.f32 %v7013_v4, %v6611_v2  ;;  %v14473_v3 = vadd.f32 %v7054_v48, %v6652_v18  ;;  %v7015_v6 = vpop.f32.mrb[94].mxu1  ;;  %v7056_v7 = vpop.f32.mrb[138].mxu0  ;;  %v11913_v2 = vld [vmem:[%s14857_s14 + $0x720] ss:$16 sps:$4 sm:$0xff]   ;;  %v11921_v18 = vld [vmem:[%s14857_s14 + $0x744] ss:$16 sps:$4 sm:$0xff]  }
0x10cd   :  { %v7016_v36 = vpop.f32.mrb[95].mxu1  ;;  %v7057_v35 = vpop.f32.mrb[139].mxu0  ;;  %v11916_v59 = vld [vmem:[%s14857_s14 + $0x728] ss:$16 sps:$4 sm:$0xff]   ;;  %v11924_v30 = vld [vmem:[%s14857_s14 + $0x74c] ss:$16 sps:$4 sm:$0xff]  }
0x10ce   :  { %v11925_v4 = vld [vmem:[%s14857_s14 + $0x760] ss:$16 sps:$4 sm:$0xff]   ;;  %v11933_v48 = vld [vmem:[%s14857_s14 + $0x784] ss:$16 sps:$4 sm:$0xff]   ;;  %v11922_v6 = vld [vmem:[%s14857_s14 + $0x748] ss:$16 sps:$4 sm:$0xff]  }
0x10cf   :  { %v11930_v7 = vld [vmem:[%s14857_s14 + $0x76c] ss:$16 sps:$4 sm:$0xff]   ;;  %v11931_v36 = vld [vmem:[%s14857_s14 + $0x780] ss:$16 sps:$4 sm:$0xff]   ;;  %v11928_v35 = vld [vmem:[%s14857_s14 + $0x768] ss:$16 sps:$4 sm:$0xff]  }
0x10d2   :  { %v7098_v9 = vpop.f32.mrb[96].mxu1 }
0x10d3   :  { %v7100_v12 = vpop.f32.mrb[97].mxu1  ;;  %v7105_v14 = vpack.c.bf16 %v7098_v9, %v7098_v9  ;;  %v11936_v9 = vld [vmem:[%s14857_s14 + $0x78c] ss:$16 sps:$4 sm:$0xff]  }
0x10d4   :  { %v7106_v37 = vpack.c.bf16 %v7100_v12, %v7100_v12  ;;  %v7102_v13 = vpop.f32.mrb[98].mxu1  ;;  %v11934_v12 = vld [vmem:[%s14857_s14 + $0x788] ss:$16 sps:$4 sm:$0xff]  }
0x10d5   :  { %v7103_v15 = vpop.f32.mrb[99].mxu1  ;;  %v11942_v13 = vld [vmem:[%s14857_s14 + $0x7ac] ss:$16 sps:$4 sm:$0xff]  }
0x10d6   :  { %7524 = vmatprep.mubr.bf16.mxu0 %v7106_v37  ;;  %7565 = vmatprep.mubr.bf16.mxu1 %v7106_v37  ;;  %v11939_v37 = vld [vmem:[%s14857_s14 + $0x7a4] ss:$16 sps:$4 sm:$0xff]   ;;  %v11940_v15 = vld [vmem:[%s14857_s14 + $0x7a8] ss:$16 sps:$4 sm:$0xff]  }
0x10d7   :  { %7525 = vmatmul.mubr.bf16.vlgmr.msra.gmra.mrb[140].mxu0 %v7105_v14  ;;  %7566 = vmatmul.mubr.bf16.vlgmr.msra.gmra.mrb[100].mxu1 %v7105_v14  ;;  %v11937_v14 = vld [vmem:[%s14857_s14 + $0x7a0] ss:$16 sps:$4 sm:$0xff]  }
0x10d8   :  { %7584 = vmatpush1.bf16.msra.mxu0 %v13943_v50  ;;  %7615 = vmatprep.mubr.bf16.mxu0 %v12007_v11  ;;  %v11862_v50 = vld [vmem:[%s14857_s14 + $0x608] ss:$16 sps:$4 sm:$0xff]   ;;  %v11870_v11 = vld [vmem:[%s14857_s14 + $0x62c] ss:$16 sps:$4 sm:$0xff]  }
0x10d9   :  { %8052 = vmatprep.subr.bf16.mxu0 %v11864_v17  ;;  %8012 = vmatpush1.bf16.msra.mxu1 %v11859_v16  ;;  %v11943_v16 = vld [vmem:[%s14857_s14 + $0x7c0] ss:$16 sps:$4 sm:$0xff]   ;;  %v11945_v17 = vld [vmem:[%s14857_s14 + $0x7c4] ss:$16 sps:$4 sm:$0xff]  }
0x10da   :  { %8013 = vmatprep.subr.bf16.mxu1 %v11867_v19  ;;  %v11946_v19 = vld [vmem:[%s14857_s14 + $0x7c8] ss:$16 sps:$4 sm:$0xff]  }
0x10dd   :  { %8014 = vmatpush1.bf16.msra.mxu1 %v11865_v21  ;;  %v11948_v21 = vld [vmem:[%s14857_s14 + $0x7cc] ss:$16 sps:$4 sm:$0xff]  }
0x10de   :  { %8015 = vmatprep.subr.bf16.mxu1 %v11873_v22  ;;  %v11951_v22 = vld [vmem:[%s14857_s14 + $0x7e4] ss:$16 sps:$4 sm:$0xff]  }
0x10df   :  { %9841 = vmatmul.mubr.msk.bf16.vlgmr.msra.gmra.mrb[144].mxu0 %vm6024_vm11, %v9839_v23  ;;  %v11954_v23 = vld [vmem:[%s14857_s14 + $0x7ec] ss:$16 sps:$4 sm:$0xff]  }
0x10e0   :  { %8053 = vmatpush1.bf16.msra.mxu0 %v11862_v50  ;;  %v11949_v50 = vld [vmem:[%s14857_s14 + $0x7e0] ss:$16 sps:$4 sm:$0xff]  }
0x10e1   :  { %8054 = vmatprep.subr.bf16.mxu0 %v11870_v11  ;;  %8016 = vmatpush1.bf16.msra.mxu1 %v11871_v25  ;;  %v11952_v11 = vld [vmem:[%s14857_s14 + $0x7e8] ss:$16 sps:$4 sm:$0xff]  }
0x10e2   :  { %8017 = vmatprep.subr.bf16.mxu1 %v11879_v28 }
0x10e4   :  { %8055 = vmatpush1.bf16.msra.mxu0 %v11868_v29 }
0x10e5   :  { %8056 = vmatprep.subr.bf16.mxu0 %v11876_v31  ;;  %8018 = vmatpush1.bf16.msra.mxu1 %v11877_v32 }
0x10e6   :  { %8019 = vmatprep.subr.bf16.mxu1 %v11885_v33 }
0x10e8   :  { %8057 = vmatpush1.bf16.msra.mxu0 %v11874_v34 }
0x10e9   :  { %8058 = vmatprep.subr.bf16.mxu0 %v11882_v38  ;;  %8020 = vmatpush1.bf16.msra.mxu1 %v11883_v39 }
0x10ea   :  { %8021 = vmatprep.subr.bf16.mxu1 %v11891_v40 }
0x10ec   :  { %8059 = vmatpush1.bf16.msra.mxu0 %v11880_v41 }
0x10ed   :  { %8060 = vmatprep.subr.bf16.mxu0 %v11888_v42  ;;  %8022 = vmatpush1.bf16.msra.mxu1 %v11889_v43 }
0x10ee   :  { %8023 = vmatprep.subr.bf16.mxu1 %v11897_v44 }
0x10f0   :  { %8061 = vmatpush1.bf16.msra.mxu0 %v11886_v46 }
0x10f1   :  { %8062 = vmatprep.subr.bf16.mxu0 %v11894_v49  ;;  %8024 = vmatpush1.bf16.msra.mxu1 %v11895_v51 }
0x10f2   :  { %8025 = vmatprep.subr.bf16.mxu1 %v11903_v52  ;;  %v11958_v52 = vld [vmem:[%s14862_s19 + $0x80] sm:$0xff]  }
0x10f4   :  { %8063 = vmatpush1.bf16.msra.mxu0 %v11892_v47  ;;  %v11959_v47 = vld [vmem:[%s14862_s19 + $0x48] sm:$0xff]  }
0x10f5   :  { %8064 = vmatprep.subr.bf16.mxu0 %v11900_v53  ;;  %8026 = vmatpush1.bf16.msra.mxu1 %v11901_v54  ;;  %v11960_v53 = vld [vmem:[%s14862_s19 + $0xc8] sm:$0xff]  }
0x10f6   :  { %8027 = vmatprep.subr.bf16.mxu1 %v11909_v61  ;;  %v11961_v54 = vld [vmem:[%s14862_s19 + $0x8] sm:$0xff]  }
0x10f7   :  { %v11962_v61 = vld [vmem:[%s14862_s19 + $0x88] sm:$0xff]  }
0x10f8   :  { %8065 = vmatpush1.bf16.msra.mxu0 %v11898_v24  ;;  %v11963_v24 = vld [vmem:[%s14862_s19 + $0x50] sm:$0xff]  }
0x10f9   :  { %8066 = vmatprep.subr.bf16.mxu0 %v11906_v0  ;;  %8028 = vmatpush1.bf16.msra.mxu1 %v11907_v56  ;;  %v11964_v0 = vld [vmem:[%s14862_s19 + $0xd0] sm:$0xff]  }
0x10fa   :  { %8029 = vmatprep.subr.bf16.mxu1 %v11915_v60  ;;  %v11965_v56 = vld [vmem:[%s14862_s19 + $0x10] sm:$0xff]  }
0x10fb   :  { %v11966_v60 = vld [vmem:[%s14862_s19 + $0x90] sm:$0xff]  }
0x10fc   :  { %8067 = vmatpush1.bf16.msra.mxu0 %v11904_v63  ;;  %v11967_v63 = vld [vmem:[%s14862_s19 + $0x58] sm:$0xff]  }
0x10fd   :  { %8068 = vmatprep.subr.bf16.mxu0 %v11912_v62  ;;  %8030 = vmatpush1.bf16.msra.mxu1 %v11913_v2  ;;  %v11968_v62 = vld [vmem:[%s14862_s19 + $0xd8] sm:$0xff]  }
0x10fe   :  { %8031 = vmatprep.subr.bf16.mxu1 %v11921_v18  ;;  %v11969_v2 = vld [vmem:[%s14862_s19 + $0x18] sm:$0xff]  }
0x10ff   :  { %v11970_v18 = vld [vmem:[%s14862_s19 + $0x98] sm:$0xff]  }
0x1100   :  { %8069 = vmatpush1.bf16.msra.mxu0 %v11910_v58  ;;  %v11971_v58 = vld [vmem:[%s14862_s19 + $0x60] sm:$0xff]  }
0x1101   :  { %8070 = vmatprep.subr.bf16.mxu0 %v11918_v5  ;;  %8032 = vmatpush1.bf16.msra.mxu1 %v11919_v1  ;;  %v11972_v5 = vld [vmem:[%s14862_s19 + $0xe0] sm:$0xff]  }
0x1102   :  { %8033 = vmatprep.subr.bf16.mxu1 %v11927_v27  ;;  %v11973_v1 = vld [vmem:[%s14862_s19 + $0x20] sm:$0xff]  }
0x1103   :  { %v11974_v27 = vld [vmem:[%s14862_s19 + $0xa0] sm:$0xff]  }
0x1104   :  { %8071 = vmatpush1.bf16.msra.mxu0 %v11916_v59  ;;  %v11975_v59 = vld [vmem:[%s14862_s19 + $0x68] sm:$0xff]  }
0x1105   :  { %8072 = vmatprep.subr.bf16.mxu0 %v11924_v30  ;;  %8034 = vmatpush1.bf16.msra.mxu1 %v11925_v4  ;;  %v11976_v30 = vld [vmem:[%s14862_s19 + $0xe8] sm:$0xff]  }
0x1106   :  { %8035 = vmatprep.subr.bf16.mxu1 %v11933_v48  ;;  %v11977_v4 = vld [vmem:[%s14862_s19 + $0x28] sm:$0xff]  }
0x1107   :  { %v11978_v48 = vld [vmem:[%s14862_s19 + $0xa8] sm:$0xff]  }
0x1108   :  { %8073 = vmatpush1.bf16.msra.mxu0 %v11922_v6  ;;  %v11979_v6 = vld [vmem:[%s14862_s19 + $0x70] sm:$0xff]  }
0x1109   :  { %8074 = vmatprep.subr.bf16.mxu0 %v11930_v7  ;;  %8036 = vmatpush1.bf16.msra.mxu1 %v11931_v36  ;;  %v11980_v7 = vld [vmem:[%s14862_s19 + $0xf0] sm:$0xff]  }
0x110a   :  { %8037 = vmatprep.subr.bf16.mxu1 %v11939_v37  ;;  %v11981_v36 = vld [vmem:[%s14862_s19 + $0x30] sm:$0xff]   ;;  %v11985_v37 = vld [vmem:[%s14862_s19 + $0x38] sm:$0xff]  }
0x110c   :  { %8075 = vmatpush1.bf16.msra.mxu0 %v11928_v35  ;;  %v11982_v35 = vld [vmem:[%s14862_s19 + $0xb0] sm:$0xff]  }
0x110d   :  { %8076 = vmatprep.subr.bf16.mxu0 %v11936_v9  ;;  %8038 = vmatpush1.bf16.msra.mxu1 %v11937_v14  ;;  %v11983_v9 = vld [vmem:[%s14862_s19 + $0x78] sm:$0xff]   ;;  %v14779_v14 = vsub.s32 2, %v12840_v8 }
0x110e   :  { %8039 = vmatprep.subr.bf16.mxu1 %v11945_v17 }
0x1110   :  { %8077 = vmatpush1.bf16.msra.mxu0 %v11934_v12  ;;  %v11984_v12 = vld [vmem:[%s14862_s19 + $0xf8] sm:$0xff]  }
0x1111   :  { %8078 = vmatprep.subr.bf16.mxu0 %v11942_v13  ;;  %8040 = vmatpush1.bf16.msra.mxu1 %v11943_v16  ;;  %v11986_v13 = vld [vmem:[%s14862_s19 + $0xb8] sm:$0xff]   ;;  %v14785_v16 = vsub.s32 3, %v12840_v8 }
0x1112   :  { %8041 = vmatprep.subr.bf16.mxu1 %v11951_v22 }
0x1114   :  { %8079 = vmatpush1.bf16.msra.mxu0 %v11940_v15  ;;  %v8097_v15 = vld [vmem:[%s14863_s15] sm:$0xf] }
0x1115   :  { %8080 = vmatprep.subr.bf16.mxu0 %v11948_v21  ;;  %8042 = vmatpush1.bf16.msra.mxu1 %v11949_v50  ;;  %v8102_v17 = vrot.slane %v8097_v15, %v12846_v10  ;;  %v8114_v50 = vrot.slane %v8097_v15, %v14785_v16 }
0x1118   :  { %8081 = vmatpush1.bf16.msra.mxu0 %v11946_v19  ;;  %v8110_v19 = vrot.slane %v8097_v15, %v14779_v14 }
0x1119   :  { %8082 = vmatprep.subr.bf16.mxu0 %v11954_v23  ;;  %v8106_v23 = vrot.slane %v8097_v15, %v13901_v26 }
0x111c   :  { %8083 = vmatpush1.bf16.msra.mxu0 %v11952_v11 }
0x11aa   :  { %v7526_v25 = vpop.f32.mrb[140].mxu0  ;;  %v7567_v28 = vpop.f32.mrb[100].mxu1 }
0x11ab   :  { %v14671_v29 = vadd.f32 %v7526_v25, %v14467_v57  ;;  %v14674_v31 = vadd.f32 %v7567_v28, %v14469_v45  ;;  %v7528_v32 = vpop.f32.mrb[141].mxu0  ;;  %v7569_v33 = vpop.f32.mrb[101].mxu1  ;;  %v11955_v45 = vld [vmem:[%s14862_s19 + $0x40] sm:$0xff]  }
0x11ac   :  { %v14677_v34 = vadd.f32 %v7528_v32, %v14471_v55  ;;  %v14680_v38 = vadd.f32 %v7569_v33, %v14473_v3  ;;  %v7530_v39 = vpop.f32.mrb[142].mxu0  ;;  %v7571_v40 = vpop.f32.mrb[102].mxu1  ;;  %10316 = vmatprep.subr.bf16.mxu1 %v11955_v45  ;;  %v11956_v55 = vld [vmem:[%s14862_s19 + $0xc0] sm:$0xff]  }
0x11ad   :  { %v7531_v41 = vpop.f32.mrb[143].mxu0  ;;  %v7572_v42 = vpop.f32.mrb[103].mxu1  ;;  %v11957_v3 = vld [vmem:[%s14862_s19] sm:$0xff]   ;;  %10338 = vmatprep.subr.bf16.mxu0 %v11956_v55 }
0x11b2   :  { %v7617_v43 = vpop.f32.mrb[144].mxu0 }
0x11b3   :  { %v7619_v44 = vpop.f32.mrb[145].mxu0  ;;  %v7624_v49 = vpack.c.bf16 %v7617_v43, %v7617_v43 }
0x11b4   :  { %v7625_v46 = vpack.c.bf16 %v7619_v44, %v7619_v44  ;;  %v7621_v57 = vpop.f32.mrb[146].mxu0 }
0x11b5   :  { %v7622_v51 = vpop.f32.mrb[147].mxu0 }
0x11b6   :  { %8043 = vmatprep.mubr.bf16.mxu1 %v7625_v46  ;;  %8084 = vmatprep.mubr.bf16.mxu0 %v7625_v46 }
0x11b7   :  { %8044 = vmatmul.mubr.bf16.vlgmr.msra.gmra.mrb[104].mxu1 %v7624_v49  ;;  %8085 = vmatmul.mubr.bf16.vlgmr.msra.gmra.mrb[148].mxu0 %v7624_v49 }
0x11b8   :  { %10317 = vmatpush3.bf16.msra.mxu1 %v11957_v3  ;;  %10339 = vmatpush3.bf16.msra.mxu0 %v11958_v52 }
0x11b9   :  { %10318 = vmatprep.subr.bf16.mxu1 %v11959_v47  ;;  %10340 = vmatprep.subr.bf16.mxu0 %v11960_v53 }
0x11bc   :  { %10319 = vmatpush3.bf16.msra.mxu1 %v11961_v54  ;;  %10341 = vmatpush3.bf16.msra.mxu0 %v11962_v61 }
0x11bd   :  { %10320 = vmatprep.subr.bf16.mxu1 %v11963_v24  ;;  %10342 = vmatprep.subr.bf16.mxu0 %v11964_v0 }
0x11c0   :  { %10321 = vmatpush3.bf16.msra.mxu1 %v11965_v56  ;;  %10343 = vmatpush3.bf16.msra.mxu0 %v11966_v60 }
0x11c1   :  { %10322 = vmatprep.subr.bf16.mxu1 %v11967_v63  ;;  %10344 = vmatprep.subr.bf16.mxu0 %v11968_v62 }
0x11c4   :  { %10323 = vmatpush3.bf16.msra.mxu1 %v11969_v2  ;;  %10345 = vmatpush3.bf16.msra.mxu0 %v11970_v18 }
0x11c5   :  { %10324 = vmatprep.subr.bf16.mxu1 %v11971_v58  ;;  %10346 = vmatprep.subr.bf16.mxu0 %v11972_v5 }
0x11c8   :  { %10325 = vmatpush3.bf16.msra.mxu1 %v11973_v1  ;;  %10347 = vmatpush3.bf16.msra.mxu0 %v11974_v27 }
0x11c9   :  { %10326 = vmatprep.subr.bf16.mxu1 %v11975_v59  ;;  %10348 = vmatprep.subr.bf16.mxu0 %v11976_v30 }
0x11cc   :  { %10327 = vmatpush3.bf16.msra.mxu1 %v11977_v4  ;;  %10349 = vmatpush3.bf16.msra.mxu0 %v11978_v48 }
0x11cd   :  { %10328 = vmatprep.subr.bf16.mxu1 %v11979_v6  ;;  %10350 = vmatprep.subr.bf16.mxu0 %v11980_v7 }
0x11d0   :  { %10329 = vmatpush3.bf16.msra.mxu1 %v11981_v36  ;;  %10351 = vmatpush3.bf16.msra.mxu0 %v11982_v35 }
0x11d1   :  { %10330 = vmatprep.subr.bf16.mxu1 %v11983_v9  ;;  %10352 = vmatprep.subr.bf16.mxu0 %v11984_v12 }
0x11d4   :  { %10331 = vmatpush3.bf16.msra.mxu1 %v11985_v37  ;;  %10353 = vmatpush3.bf16.msra.mxu0 %v11986_v13 }
0x128a   :  { %v8045_v21 = vpop.f32.mrb[104].mxu1  ;;  %v8086_v22 = vpop.f32.mrb[148].mxu0 }
0x128b   :  { %v8093_v11 = vadd.f32 %v8045_v21, %v14671_v29  ;;  %v8095_v25 = vadd.f32 %v8086_v22, %v14674_v31  ;;  %v8047_v28 = vpop.f32.mrb[105].mxu1  ;;  %v8088_v32 = vpop.f32.mrb[149].mxu0 }
0x128c   :  { %v8094_v8 = vadd.f32 %v8047_v28, %v14677_v34  ;;  %v8096_v33 = vadd.f32 %v8088_v32, %v14680_v38  ;;  %v8049_v39 = vpop.f32.mrb[106].mxu1  ;;  %v8090_v40 = vpop.f32.mrb[150].mxu0 }
0x128d   :  { %v8119_v41 = vadd.f32 %v8102_v17, %v8093_v11  ;;  %v8121_v42 = vadd.f32 %v8110_v19, %v8095_v25  ;;  %v8050_v43 = vpop.f32.mrb[107].mxu1  ;;  %v8091_v44 = vpop.f32.mrb[151].mxu0 }
0x128e   :  { %v8120_v46 = vadd.f32 %v8106_v23, %v8094_v8  ;;  %v8122_v57 = vadd.f32 %v8114_v50, %v8096_v33 }
0x128f   :  { %v8124_v49 = vsel %vm8123_vm12, %v8119_v41, 0.0  ;;  %v8138_v29 = vsel %vm8123_vm12, %v8121_v42, 0.0 }
0x1290   :  { %v8125_v31 = vrot.slane %v8124_v49, 4  ;;  %v8139_v51 = vrot.slane %v8138_v29, 4  ;;  %v8131_v45 = vsel %vm8123_vm12, %v8120_v46, 0.0  ;;  %v8145_v34 = vsel %vm8123_vm12, %v8122_v57, 0.0 }
0x1291   :  { %v8132_v55 = vrot.slane %v8131_v45, 4  ;;  %v8146_v38 = vrot.slane %v8145_v34, 4 }
0x1292   :  { %v8126_v3 = vadd.f32 %v8125_v31, %v8124_v49  ;;  %v8140_v52 = vadd.f32 %v8139_v51, %v8138_v29 }
0x1293   :  { %v8133_v47 = vadd.f32 %v8132_v55, %v8131_v45  ;;  %v8147_v53 = vadd.f32 %v8146_v38, %v8145_v34 }
0x1294   :  { %v8127_v54 = vrot.slane %v8126_v3, 2  ;;  %v8141_v61 = vrot.slane %v8140_v52, 2 }
0x1295   :  { %v8134_v24 = vrot.slane %v8133_v47, 2  ;;  %v8148_v0 = vrot.slane %v8147_v53, 2 }
0x1296   :  { %v8128_v56 = vadd.f32 %v8127_v54, %v8126_v3  ;;  %v8142_v60 = vadd.f32 %v8141_v61, %v8140_v52 }
0x1297   :  { %v8135_v63 = vadd.f32 %v8134_v24, %v8133_v47  ;;  %v8149_v62 = vadd.f32 %v8148_v0, %v8147_v53 }
0x1298   :  { %v8129_v2 = vrot.slane %v8128_v56, 1  ;;  %v8143_v18 = vrot.slane %v8142_v60, 1 }
0x1299   :  { %v8136_v58 = vrot.slane %v8135_v63, 1  ;;  %v8150_v5 = vrot.slane %v8149_v62, 1 }
0x129a   :  { %v8130_v1 = vadd.f32 %v8129_v2, %v8128_v56  ;;  %v8144_v27 = vadd.f32 %v8143_v18, %v8142_v60 }
0x129b   :  { %v8137_v59 = vadd.f32 %v8136_v58, %v8135_v63  ;;  %v8151_v30 = vadd.f32 %v8150_v5, %v8149_v62 }
0x129c   :  { %v8152_v4 = vmul.f32 0.5, %v8130_v1  ;;  %v8154_v48 = vmul.f32 0.5, %v8144_v27 }
0x129d   :  { %v8153_v6 = vmul.f32 0.5, %v8137_v59  ;;  %v8155_v7 = vmul.f32 0.5, %v8151_v30  ;;  %v8196_v59 = vld [vmem:[%s14864_s16] sm:$0xf] }
0x129e   :  { %v14799_v36 = vsub.f32 %v8119_v41, %v8152_v4  ;;  %v14801_v35 = vsub.f32 %v8121_v42, %v8154_v48  ;;  %v8260_v30 = vld [vmem:[%s14865_s17] sm:$0xf] }
0x129f   :  { %v14803_v9 = vsub.f32 %v8120_v46, %v8153_v6  ;;  %v14805_v12 = vsub.f32 %v8122_v57, %v8155_v7  ;;  %v8273_v6 = vrot.slane %v8260_v30, %v14779_v14  ;;  %v8277_v7 = vrot.slane %v8260_v30, %v14785_v16 }
0x12a0   :  { %v8160_v37 = vmul.f32 %v14799_v36, %v14799_v36  ;;  %v8162_v13 = vmul.f32 %v14801_v35, %v14801_v35 }
0x12a1   :  { %v8161_v15 = vmul.f32 %v14803_v9, %v14803_v9  ;;  %v8163_v17 = vmul.f32 %v14805_v12, %v14805_v12 }
0x12a2   :  { %v8164_v19 = vsel %vm8123_vm12, %v8160_v37, 0.0  ;;  %v8178_v21 = vsel %vm8123_vm12, %v8162_v13, 0.0  ;;  %v8269_v37 = vrot.slane %v8260_v30, %v13901_v26  ;;  %v8265_v13 = vrot.slane %v8260_v30, %v12846_v10 }
0x12a3   :  { %v8165_v22 = vrot.slane %v8164_v19, 4  ;;  %v8179_v23 = vrot.slane %v8178_v21, 4  ;;  %v8171_v50 = vsel %vm8123_vm12, %v8161_v15, 0.0  ;;  %v8185_v11 = vsel %vm8123_vm12, %v8163_v17, 0.0 }
0x12a4   :  { %v8172_v25 = vrot.slane %v8171_v50, 4  ;;  %v8186_v28 = vrot.slane %v8185_v11, 4 }
0x12a5   :  { %v8166_v32 = vadd.f32 %v8165_v22, %v8164_v19  ;;  %v8180_v8 = vadd.f32 %v8179_v23, %v8178_v21 }
0x12a6   :  { %v8173_v33 = vadd.f32 %v8172_v25, %v8171_v50  ;;  %v8187_v39 = vadd.f32 %v8186_v28, %v8185_v11 }
0x12a7   :  { %v8167_v40 = vrot.slane %v8166_v32, 2  ;;  %v8181_v41 = vrot.slane %v8180_v8, 2 }
0x12a8   :  { %v8174_v42 = vrot.slane %v8173_v33, 2  ;;  %v8188_v43 = vrot.slane %v8187_v39, 2 }
0x12a9   :  { %v8168_v44 = vadd.f32 %v8167_v40, %v8166_v32  ;;  %v8182_v46 = vadd.f32 %v8181_v41, %v8180_v8 }
0x12aa   :  { %v8175_v57 = vadd.f32 %v8174_v42, %v8173_v33  ;;  %v8189_v49 = vadd.f32 %v8188_v43, %v8187_v39  ;;  %v9970_v43 = vld [vmem:[%s14866_s20] ss:$0 sm:$0xff] }
0x12ab   :  { %v8169_v29 = vrot.slane %v8168_v44, 1  ;;  %v8183_v31 = vrot.slane %v8182_v46, 1 }
0x12ac   :  { %v8176_v51 = vrot.slane %v8175_v57, 1  ;;  %v8190_v45 = vrot.slane %v8189_v49, 1 }
0x12ad   :  { %v8170_v34 = vadd.f32 %v8169_v29, %v8168_v44  ;;  %v8184_v55 = vadd.f32 %v8183_v31, %v8182_v46 }
0x12ae   :  { %v8177_v38 = vadd.f32 %v8176_v51, %v8175_v57  ;;  %v8191_v3 = vadd.f32 %v8190_v45, %v8189_v49 }
0x12af   :  { %v8192_v52 = vmul.f32 0.5, %v8170_v34  ;;  %v8194_v47 = vmul.f32 0.5, %v8184_v55 }
0x12b0   :  { %v8193_v53 = vmul.f32 0.5, %v8177_v38  ;;  %v8195_v54 = vmul.f32 0.5, %v8191_v3 }
0x12b1   :  { %v8197_v61 = vadd.f32 1e-05, %v8192_v52  ;;  %v8199_v24 = vadd.f32 1e-05, %v8194_v47 }
0x12b2   :  { %v8198_v0 = vadd.f32 1e-05, %v8193_v53  ;;  %v8200_v56 = vadd.f32 1e-05, %v8195_v54 }
0x12b3   :  { %11993 = vrsqrt.f32 %v8197_v61 }
0x12b4   :  { %11995 = vrsqrt.f32 %v8199_v24 }
0x12b5   :  { %11997 = vrsqrt.f32 %v8198_v0 }
0x12b6   :  { %11999 = vrsqrt.f32 %v8200_v56 }
0x12bd   :  { %v11994_v60 = vpop.eup %11993 }
0x12be   :  { %v11996_v63 = vpop.eup %11995 }
0x12bf   :  { %v11998_v62 = vpop.eup %11997 }
0x12c0   :  { %v12000_v2 = vpop.eup %11999  ;;  %v8209_v18 = vcombine.low %v11994_v60, %v11998_v62 }
0x12c1   :  { %v8210_v58 = vcombine.low %v11996_v63, %v12000_v2 }
0x12c2   :  { %v8217_v5 = vrot.slane %v8209_v18, %v13924_v20 }
0x12c3   :  { %v8224_v1 = vrot.slane %v8210_v58, %v13924_v20 }
0x12c5   :  { %v8225_v27 = vcombine.low %v8217_v5, %v8224_v1 }
0x12c7   :  { %v8232_v4 = vrot.slane %v8225_v27, %v13924_v20 }
0x12c9   :  { %v8234_v48 = vmul.f32 %v8232_v4, %v8196_v59 }
0x12cb   :  { %v8251_v15 = vrot.slane %v8234_v48, %v14785_v16  ;;  %v8243_v17 = vrot.slane %v8234_v48, %v13901_v26  ;;  %v8239_v19 = vrot.slane %v8234_v48, %v12846_v10  ;;  %v8247_v21 = vrot.slane %v8234_v48, %v14779_v14 }
0x12cd   :  { %v8259_v22 = vmul.f32 %v8251_v15, %v14805_v12  ;;  %v8257_v20 = vmul.f32 %v8243_v17, %v14803_v9  ;;  %v8256_v23 = vmul.f32 %v8239_v19, %v14799_v36  ;;  %v8258_v50 = vmul.f32 %v8247_v21, %v14801_v35 }
0x12cf   :  { %v8285_v11 = vadd.f32 %v8277_v7, %v8259_v22  ;;  %v8283_v25 = vadd.f32 %v8269_v37, %v8257_v20  ;;  %v8282_v28 = vadd.f32 %v8265_v13, %v8256_v23  ;;  %v8284_v32 = vadd.f32 %v8273_v6, %v8258_v50 }
0x12d1   :  { %vm8287_vm13 = vcmp.ge.f32.partialorder %v8283_v25, 0.0  ;;  %v8291_v16 = vmul.f32 0.2, %v8283_v25  ;;  %vm8289_vm14 = vcmp.ge.f32.partialorder %v8285_v11, 0.0  ;;  %v8293_v26 = vmul.f32 0.2, %v8285_v11 }
0x12d2   :  { %vm8286_vm15 = vcmp.ge.f32.partialorder %v8282_v28, 0.0  ;;  %v8290_v10 = vmul.f32 0.2, %v8282_v28  ;;  %vm8288_vm0 = vcmp.ge.f32.partialorder %v8284_v32, 0.0  ;;  %v8292_v14 = vmul.f32 0.2, %v8284_v32 }
0x12d3   :  { %v8295_v8 = vsel %vm8287_vm13, %v8283_v25, %v8291_v16  ;;  %v8297_v12 = vsel %vm8289_vm14, %v8285_v11, %v8293_v26 }
0x12d4   :  { %v8299_v33 = vpack.c.bf16 %v8295_v8, %v8295_v8  ;;  %v8301_v9 = vpack.c.bf16 %v8297_v12, %v8297_v12  ;;  %v8294_v39 = vsel %vm8286_vm15, %v8282_v28, %v8290_v10  ;;  %v8296_v36 = vsel %vm8288_vm0, %v8284_v32, %v8292_v14 }
0x12d5   :  { %v8298_v40 = vpack.c.bf16 %v8294_v39, %v8294_v39  ;;  %v8300_v35 = vpack.c.bf16 %v8296_v36, %v8296_v36 }
0x12d6   :  { %8597 = vmatprep.mubr.bf16.mxu1 %v8299_v33  ;;  %8637 = vmatprep.mubr.bf16.mxu0 %v8301_v9 }
0x12d7   :  { %8598 = vmatmul.mubr.bf16.vlgmr.msra.gmra.mrb[108].mxu1 %v8298_v40  ;;  %8638 = vmatmul.mubr.bf16.vlgmr.msra.gmra.mrb[152].mxu0 %v8300_v35 }
0x13aa   :  { %v10332_v41 = vpop.f32.mrb[108].mxu1  ;;  %v10354_v42 = vpop.f32.mrb[152].mxu0 }
0x13ab   :  { %v10333_v44 = vpop.f32.mrb[109].mxu1  ;;  %v10355_v46 = vpop.f32.mrb[153].mxu0 }
0x13ac   :  { %v10334_v57 = vadd.f32 %v10333_v44, %v10332_v41  ;;  %v10356_v49 = vadd.f32 %v10355_v46, %v10354_v42  ;;  %v10335_v29 = vpop.f32.mrb[110].mxu1  ;;  %v10357_v31 = vpop.f32.mrb[154].mxu0 }
0x13ad   :  { %v10336_v51 = vpop.f32.mrb[111].mxu1  ;;  %v10358_v45 = vpop.f32.mrb[155].mxu0 }
0x13ae   :  { %v8600_v34 = vadd.f32 %v10334_v57, %v9970_v43 }
0x13b0   :  { %v8640_v55 = vadd.f32 %v10356_v49, %v8600_v34 }
0x13b2   :  { %v8645_v38 = vsub.f32 0.0, %v8640_v55 }
0x13b4   :  { %v8646_v3 = vmul.f32 1.442695, %v8645_v38 }
0x13b6   :  { %12001 = vpow2.f32 %v8646_v3 }
0x13c0   :  { %v12002_v52 = vpop.eup %12001 }
0x13c1   :  { %v8648_v47 = vadd.f32 1.0, %v12002_v52 }
0x13c3   :  { %12003 = vrcp.f32 %v8648_v47 }
0x13cd   :  { %v12004_v53 = vpop.eup %12003 }
0x13ce   :  { %8651 = vst [vmem:[%s14867_s21] sm:$0x3] %v12004_v53 }

</bundles_post_ra>
